<compile_context>
chip_gen: v5e
topology: v5e:2x2
jax: 0.10.0
libtpu: 0.0.40
codegen_flags: <defaults>
</compile_context>

<pallas_src>
import jax
import jax.numpy as jnp
from jax.experimental import pallas as pl
from jax.experimental.pallas import tpu as pltpu


def _round_up(n, m):
    return ((n + m - 1) // m) * m


# ------------------------- Pallas kernels -------------------------

def _make_linear_kernel(n_in, relu):
    """Fused multi-input linear: o = sum_i x_i @ w_i + b (optional ReLU)."""
    def kernel(*refs):
        x_refs = refs[:n_in]
        w_refs = refs[n_in:2 * n_in]
        b_ref = refs[2 * n_in]
        o_ref = refs[2 * n_in + 1]
        acc = b_ref[...] + jnp.dot(x_refs[0][...], w_refs[0][...],
                                   preferred_element_type=jnp.float32)
        for xr, wr in zip(x_refs[1:], w_refs[1:]):
            acc = acc + jnp.dot(xr[...], wr[...],
                                preferred_element_type=jnp.float32)
        if relu:
            acc = jnp.maximum(acc, 0.0)
        o_ref[...] = acc
    return kernel


def pallas_linear(xs, ws, b, relu=False, row_tile=512):
    """y = concat(xs, -1) @ concat(ws, 0) + b without materializing the concat.

    xs: (M, K_i) arrays (or a single array), ws: (K_i, N) arrays, b: (1, N).
    Tiled over M with resident weights and parallel grid semantics.
    """
    if not isinstance(xs, (list, tuple)):
        xs, ws = (xs,), (ws,)
    xs = tuple(xs)
    ws = tuple(ws)
    M = xs[0].shape[0]
    N = ws[0].shape[1]
    tm = min(row_tile, _round_up(M, 8))      # row tile, multiple of 8 sublanes
    Mp = _round_up(M, tm)
    if Mp != M:
        xs = tuple(jnp.pad(x, ((0, Mp - M), (0, 0))) for x in xs)
    n_in = len(xs)

    in_specs = ([pl.BlockSpec((tm, x.shape[1]), lambda i: (i, 0)) for x in xs]
                + [pl.BlockSpec(w.shape, lambda i: (0, 0)) for w in ws]
                + [pl.BlockSpec((1, N), lambda i: (0, 0))])

    out = pl.pallas_call(
        _make_linear_kernel(n_in, relu),
        out_shape=jax.ShapeDtypeStruct((Mp, N), jnp.float32),
        grid=(Mp // tm,),
        in_specs=in_specs,
        out_specs=pl.BlockSpec((tm, N), lambda i: (i, 0)),
        compiler_params=pltpu.CompilerParams(
            dimension_semantics=("parallel",)),
    )(*xs, *ws, b)
    return out[:M] if Mp != M else out


def _gru_kernel(gx_ref, w_ref, b_ref, ho_ref, h_scr):
    """One time-chunk of the GRU recurrence.

    gx_ref: (Tc, B, 3H) precomputed input gates (time-major),
    w_ref:  (H, 3H) fused hidden weights [r|z|n],
    b_ref:  (1, 3H) fused hidden bias,
    ho_ref: (Tc, B, H) hidden-state outputs,
    h_scr:  (B, H) VMEM scratch carrying h across grid steps.
    """
    @pl.when(pl.program_id(0) == 0)
    def _():
        h_scr[...] = jnp.zeros_like(h_scr)

    H = h_scr.shape[-1]
    w = w_ref[...]            # resident across grid steps (constant index_map)
    b = b_ref[...]
    h = h_scr[...]
    # Fully unrolled over the static time chunk; h stays in vregs.
    for t in range(gx_ref.shape[0]):
        gh = jnp.dot(h, w, preferred_element_type=jnp.float32) + b   # (B, 3H)
        gxt = gx_ref[t]                                              # (B, 3H)
        r = jax.nn.sigmoid(gxt[:, :H] + gh[:, :H])
        z = jax.nn.sigmoid(gxt[:, H:2 * H] + gh[:, H:2 * H])
        n = jnp.tanh(gxt[:, 2 * H:] + r * gh[:, 2 * H:])
        h = (1.0 - z) * n + z * h
        ho_ref[t] = h
    h_scr[...] = h


def pallas_gru(x_list, w_ih, b_ih, w_hh, b_hh, time_chunk=16):
    """Single-layer GRU, h0 = 0, time-major.

    x_list: (T, B, In_i) arrays (or a single array) whose feature-concat is the
    GRU input; the concat is folded into a split-K input-gate matmul.
    Returns (T, B, H).
    """
    if not isinstance(x_list, (list, tuple)):
        x_list = (x_list,)
    T, B = x_list[0].shape[:2]
    H = w_hh.shape[1]

    # Input-side gates for all timesteps at once (one big tiled MXU matmul),
    # produced directly in time-major (T, B, 3H) layout.
    w_ih_t = jnp.transpose(w_ih)                       # (In_total, 3H)
    sizes = [x.shape[-1] for x in x_list]
    offs = [0]
    for s in sizes:
        offs.append(offs[-1] + s)
    ws = tuple(w_ih_t[offs[i]:offs[i + 1]] for i in range(len(sizes)))
    xs = tuple(x.reshape(T * B, x.shape[-1]) for x in x_list)
    gx = pallas_linear(xs, ws, b_ih[None, :])          # (T*B, 3H)
    gx = gx.reshape(T, B, 3 * H)

    # Fused hidden-side weights / bias, gate order [r | z | n].
    w_hh_t = jnp.transpose(w_hh)                       # (H, 3H)
    b_hh2 = b_hh[None, :]                              # (1, 3H)

    tc = min(time_chunk, T)
    Tp = _round_up(T, tc)
    if Tp != T:
        gx = jnp.pad(gx, ((0, Tp - T), (0, 0), (0, 0)))

    h_seq = pl.pallas_call(
        _gru_kernel,
        out_shape=jax.ShapeDtypeStruct((Tp, B, H), jnp.float32),
        grid=(Tp // tc,),
        in_specs=[pl.BlockSpec((tc, B, 3 * H), lambda c: (c, 0, 0)),
                  pl.BlockSpec((H, 3 * H), lambda c: (0, 0)),
                  pl.BlockSpec((1, 3 * H), lambda c: (0, 0))],
        out_specs=pl.BlockSpec((tc, B, H), lambda c: (c, 0, 0)),
        scratch_shapes=[pltpu.VMEM((B, H), jnp.float32)],
        compiler_params=pltpu.CompilerParams(
            dimension_semantics=("arbitrary",)),   # recurrence: must be serial
    )(gx, w_hh_t, b_hh2)
    return h_seq[:T]


# ------------------------- pure-JAX reference impls -------------------------

def jax_linear(xs, ws, b, relu=False):
    if not isinstance(xs, (list, tuple)):
        xs, ws = (xs,), (ws,)
    y = b
    for x, w in zip(xs, ws):
        y = y + x @ w
    return jnp.maximum(y, 0.0) if relu else y


def jax_gru(x_list, w_ih, b_ih, w_hh, b_hh):
    if not isinstance(x_list, (list, tuple)):
        x_list = (x_list,)
    x_seq = jnp.concatenate(x_list, axis=-1)           # (T, B, In)
    T, B, _ = x_seq.shape
    H = w_hh.shape[1]
    gx = x_seq @ w_ih.T + b_ih                         # (T, B, 3H)

    def step(h, gxt):
        gh = h @ w_hh.T + b_hh
        r = jax.nn.sigmoid(gxt[:, :H] + gh[:, :H])
        z = jax.nn.sigmoid(gxt[:, H:2 * H] + gh[:, H:2 * H])
        n = jnp.tanh(gxt[:, 2 * H:] + r * gh[:, 2 * H:])
        h_new = (1.0 - z) * n + z * h
        return h_new, h_new

    _, hs = jax.lax.scan(step, jnp.zeros((B, H), jnp.float32), gx)
    return hs                                          # (T, B, H)


# ------------------------- model glue (plain JAX) -------------------------

def batch_norm(x, gamma, beta, eps=1e-5):
    # x: (B, T, C); training-mode BatchNorm1d (batch statistics, biased var).
    mean = jnp.mean(x, axis=(0, 1), keepdims=True)
    var = jnp.mean(jnp.square(x - mean), axis=(0, 1), keepdims=True)
    return (x - mean) * jax.lax.rsqrt(var + eps) * gamma + beta


def mel_resnet(params, m, pad, linear_fn):
    # m: (B, C_in, T) (PyTorch NCL)
    B, Cin, T = m.shape
    k = 2 * pad + 1
    T_out = T - 2 * pad
    # im2col for conv_in (kernel size k, no padding, no bias)
    cols = jnp.stack([m[:, :, j:j + T_out] for j in range(k)], axis=-1)
    cols = cols.transpose(0, 2, 1, 3).reshape(B * T_out, Cin * k)
    C = params["conv_in_w"].shape[1]
    zb = jnp.zeros((1, C), jnp.float32)
    h = linear_fn(cols, params["conv_in_w"], zb)
    h = h.reshape(B, T_out, C)
    h = jnp.maximum(batch_norm(h, *params["bn_in"]), 0.0)
    for blk in params["res_blocks"]:
        res = h
        y = linear_fn(h.reshape(B * T_out, C), blk["w1"], zb)
        y = jnp.maximum(batch_norm(y.reshape(B, T_out, C), *blk["bn1"]), 0.0)
        y = linear_fn(y.reshape(B * T_out, C), blk["w2"], zb)
        y = batch_norm(y.reshape(B, T_out, C), *blk["bn2"])
        h = y + res
    out = linear_fn(h.reshape(B * T_out, C),
                    params["conv_out_w"], params["conv_out_b"])
    return out.reshape(B, T_out, -1)          # channels-last aux


def moving_avg_width(x, s):
    # Conv2d(1, 1, kernel=(1, 2s+1), padding=(0, s), bias=False, weight=1/(2s+1))
    w = 2 * s + 1
    W = x.shape[-1]
    xp = jnp.pad(x, ((0, 0), (0, 0), (s, s)))
    acc = xp[:, :, 0:W]
    for j in range(1, w):
        acc = acc + xp[:, :, j:j + W]
    return acc / float(w)


def upsample_network(params, mels, cfg, linear_fn):
    total_scale = 1
    for s in cfg["upsample_scales"]:
        total_scale *= s
    aux = mel_resnet(params["resnet"], mels, cfg["pad"], linear_fn)  # (B,Tr,Cres)
    aux = jnp.repeat(aux, total_scale, axis=1)                       # resnet_stretch
    m = mels
    for s in cfg["upsample_scales"]:
        m = jnp.repeat(m, s, axis=-1)       # Stretch2d(scale, 1)
        m = moving_avg_width(m, s)          # averaging Conv2d
    indent = cfg["pad"] * total_scale
    m = m[:, :, indent:-indent]
    return jnp.transpose(m, (0, 2, 1)), aux


def wavernn_forward(params, x, mels, cfg, linear_fn, gru_fn):
    mels_bt, aux_bt = upsample_network(params["upsample"], mels, cfg, linear_fn)

    # Time-major (T, B, C) for the whole autoregressive tail: one transpose in,
    # one transpose out, no per-GRU-call layout shuffles.
    mels_tm = jnp.transpose(mels_bt, (1, 0, 2))         # (T, B, mel)
    aux_tm = jnp.transpose(aux_bt, (1, 0, 2))           # (T, B, 4d)
    x_tm = jnp.transpose(x)[..., None]                  # (T, B, 1)

    d = cfg["aux_size"]
    a1 = aux_tm[..., 0:d]
    a2 = aux_tm[..., d:2 * d]
    a3 = aux_tm[..., 2 * d:3 * d]
    a4 = aux_tm[..., 3 * d:4 * d]

    T, B = x_tm.shape[:2]
    M = T * B
    mel = cfg["mel_size"]
    R = cfg["rnn_size"]
    FC = cfg["fc_size"]

    def flat(t):
        return t.reshape(M, t.shape[-1])

    def unflat(t):
        return t.reshape(T, B, -1)

    # I layer: concat([x, mels, a1]) @ W  done as a split-K sum of dots.
    Iw = params["I_w"]                                   # (1 + mel + d, R)
    h = unflat(linear_fn((flat(x_tm), flat(mels_tm), flat(a1)),
                         (Iw[:1], Iw[1:1 + mel], Iw[1 + mel:]),
                         params["I_b"]))
    res = h
    h = gru_fn(h, *params["rnn1"]) + res
    res = h
    # rnn2: concat([h, a2]) folded into the input-gate matmul.
    h = gru_fn((h, a2), *params["rnn2"]) + res
    # fc1: concat([h, a3]) fused, ReLU in-kernel.
    w1 = params["fc1_w"]                                 # (R + d, FC)
    h = unflat(linear_fn((flat(h), flat(a3)), (w1[:R], w1[R:]),
                         params["fc1_b"], relu=True))
    # fc2: concat([h, a4]) fused, ReLU in-kernel.
    w2 = params["fc2_w"]                                 # (FC + d, FC)
    h = unflat(linear_fn((flat(h), flat(a4)), (w2[:FC], w2[FC:]),
                         params["fc2_b"], relu=True))
    out = unflat(linear_fn(flat(h), params["fc3_w"], params["fc3_b"]))
    return jnp.transpose(out, (1, 0, 2))                 # (B, T, n_classes)


# ------------------------- deterministic param init -------------------------

def init_params(key, cfg):
    keys = iter(jax.random.split(key, 64))

    def nrm(shape, scale=0.1):
        return scale * jax.random.normal(next(keys), shape, dtype=jnp.float32)

    mel = cfg["mel_size"]
    C = cfg["compute_size"]
    Cres = cfg["res_out_size"]
    pad = cfg["pad"]
    k = 2 * pad + 1
    R = cfg["rnn_size"]
    d = cfg["aux_size"]
    FC = cfg["fc_size"]
    ncls = cfg["n_classes"]

    ones = lambda n: jnp.ones((n,), jnp.float32)
    zeros = lambda n: jnp.zeros((n,), jnp.float32)

    resnet = {
        "conv_in_w": nrm((C, mel, k)).reshape(C, mel * k).T,   # (mel*k, C)
        "bn_in": (ones(C), zeros(C)),                          # PyTorch BN init
        "res_blocks": [],
        "conv_out_w": nrm((Cres, C, 1)).reshape(Cres, C).T,
        "conv_out_b": nrm((Cres,))[None, :],
    }
    for _ in range(cfg["res_blocks"]):
        resnet["res_blocks"].append({
            "w1": nrm((C, C, 1)).reshape(C, C).T,
            "bn1": (ones(C), zeros(C)),
            "w2": nrm((C, C, 1)).reshape(C, C).T,
            "bn2": (ones(C), zeros(C)),
        })

    def gru_params(in_size):
        return (nrm((3 * R, in_size)), nrm((3 * R,)),
                nrm((3 * R, R)), nrm((3 * R,)))

    return {
        "upsample": {"resnet": resnet},
        "I_w": nrm((R, mel + d + 1)).T, "I_b": nrm((R,))[None, :],
        "rnn1": gru_params(R),
        "rnn2": gru_params(R + d),
        "fc1_w": nrm((FC, R + d)).T, "fc1_b": nrm((FC,))[None, :],
        "fc2_w": nrm((FC, FC + d)).T, "fc2_b": nrm((FC,))[None, :],
        "fc3_w": nrm((ncls, FC)).T, "fc3_b": nrm((ncls,))[None, :],
    }


# ------------------------- main -------------------------

if __name__ == "__main__":
    cfg = dict(
        mel_size=16,               # config.mel_size
        upsample_scales=(2, 2),    # config.voc_upsample_factors
        compute_size=32,           # config.voc_compute_size
        res_blocks=2,              # config.voc_res_blocks
        res_out_size=32,           # config.voc_res_out_size
        pad=2,                     # config.voc_pad
        rnn_size=32,               # config.voc_rnn_size
        fc_size=32,                # config.voc_fc_size
        bits=4,                    # 'RAW' mode -> n_classes = 2**bits
    )
    cfg["aux_size"] = cfg["res_out_size"] // 4
    cfg["n_classes"] = 2 ** cfg["bits"]
    # TODO(synk): for production shapes, pad channel dims to multiples of 128
    # lanes (and consider bf16 operands) for full lane/MXU utilization.

    total_scale = 1
    for s in cfg["upsample_scales"]:
        total_scale *= s

    B, T_in = 2, 10
    T_out = (T_in - 2 * cfg["pad"]) * total_scale   # = 24

    key = jax.random.PRNGKey(0)
    kp, kx, km = jax.random.split(key, 3)
    params = init_params(kp, cfg)
    x = jax.random.uniform(kx, (B, T_out), jnp.float32, minval=-1.0, maxval=1.0)
    mels = jax.random.normal(km, (B, cfg["mel_size"], T_in), dtype=jnp.float32)

    fwd_pallas = jax.jit(
        lambda p, xx, mm: wavernn_forward(p, xx, mm, cfg, pallas_linear, pallas_gru))
    fwd_ref = jax.jit(
        lambda p, xx, mm: wavernn_forward(p, xx, mm, cfg, jax_linear, jax_gru))

    out = jax.block_until_ready(fwd_pallas(params, x, mels))

    # pure-JAX reference check (same f32 math, shared model glue)
    ref = jax.block_until_ready(fwd_ref(params, x, mels))
    assert out.shape == (B, T_out, cfg["n_classes"]), out.shape
    max_err = float(jnp.max(jnp.abs(out - ref)))
    assert jnp.allclose(out, ref, atol=1e-4, rtol=1e-4), max_err

    print("KERNEL_OK")
</pallas_src>

<mosaic_0001>
module attributes {stable_mosaic.version = 11 : i64} {
  func.func @kernel(%arg0: i32, %arg1: memref<16x80xf32, #tpu.memory_space<vmem>>, %arg2: memref<80x32xf32, #tpu.memory_space<vmem>>, %arg3: memref<1x32xf32, #tpu.memory_space<vmem>>, %arg4: memref<16x32xf32, #tpu.memory_space<vmem>>) attributes {dimension_semantics = [#tpu.dimension_semantics<parallel>], iteration_bounds = array<i64: 1>, scalar_prefetch = 0 : i64, scratch_operands = 0 : i64, tpu.core_type = #tpu.core_type<tc>, window_params = [{transform_indices = @transform_0, window_bounds = array<i64: 16, 80>}, {pipeline_mode = #tpu.pipeline_mode<synchronous>, transform_indices = @transform_1, window_bounds = array<i64: 80, 32>}, {pipeline_mode = #tpu.pipeline_mode<synchronous>, transform_indices = @transform_2, window_bounds = array<i64: 1, 32>}, {transform_indices = @transform_3, window_bounds = array<i64: 16, 32>}]} {
    %c0 = arith.constant 0 : index
    %c0_0 = arith.constant 0 : index
    %0 = vector.load %arg3[%c0, %c0_0] : memref<1x32xf32, #tpu.memory_space<vmem>>, vector<1x32xf32>
    %c0_1 = arith.constant 0 : index
    %c0_2 = arith.constant 0 : index
    %1 = vector.load %arg1[%c0_1, %c0_2] : memref<16x80xf32, #tpu.memory_space<vmem>>, vector<16x80xf32>
    %c0_3 = arith.constant 0 : index
    %c0_4 = arith.constant 0 : index
    %2 = vector.load %arg2[%c0_3, %c0_4] : memref<80x32xf32, #tpu.memory_space<vmem>>, vector<80x32xf32>
    %cst = arith.constant dense<0.000000e+00> : vector<16x32xf32>
    %3 = tpu.matmul %1, %2, %cst {dimension_numbers = #tpu.dot_dimension_numbers<[1], [0], [0], [1], [0, 0, 1, 1], [], []>} : vector<16x80xf32>, vector<80x32xf32>, vector<16x32xf32> -> vector<16x32xf32>
    %4 = vector.broadcast %0 : vector<1x32xf32> to vector<16x32xf32>
    %5 = arith.addf %4, %3 : vector<16x32xf32>
    %c0_5 = arith.constant 0 : index
    %c0_6 = arith.constant 0 : index
    %6 = vector.load %arg4[%c0_5, %c0_6] : memref<16x32xf32, #tpu.memory_space<vmem>>, vector<16x32xf32>
    tpu.vector_store %arg4[%c0_5, %c0_6], %5 {strides = array<i32>} : memref<16x32xf32, #tpu.memory_space<vmem>>, vector<16x32xf32>,
    return
  }
  func.func @transform_0(%arg0: i32) -> (i32, i32) {
    %c0_i32 = arith.constant 0 : i32
    %c0_i32_0 = arith.constant 0 : i32
    return %arg0, %c0_i32 : i32, i32
  }
  func.func @transform_1(%arg0: i32) -> (i32, i32) {
    %c0_i32 = arith.constant 0 : i32
    %c0_i32_0 = arith.constant 0 : i32
    %c0_i32_1 = arith.constant 0 : i32
    return %c0_i32, %c0_i32_0 : i32, i32
  }
  func.func @transform_2(%arg0: i32) -> (i32, i32) {
    %c0_i32 = arith.constant 0 : i32
    %c0_i32_0 = arith.constant 0 : i32
    %c0_i32_1 = arith.constant 0 : i32
    return %c0_i32, %c0_i32_0 : i32, i32
  }
  func.func @transform_3(%arg0: i32) -> (i32, i32) {
    %c0_i32 = arith.constant 0 : i32
    %c0_i32_0 = arith.constant 0 : i32
    return %arg0, %c0_i32 : i32, i32
  }
}

module attributes {stable_mosaic.version = 11 : i64} {
  func.func @kernel(%arg0: i32, %arg1: memref<16x32xf32, #tpu.memory_space<vmem>>, %arg2: memref<32x32xf32, #tpu.memory_space<vmem>>, %arg3: memref<1x32xf32, #tpu.memory_space<vmem>>, %arg4: memref<16x32xf32, #tpu.memory_space<vmem>>) attributes {dimension_semantics = [#tpu.dimension_semantics<parallel>], iteration_bounds = array<i64: 1>, scalar_prefetch = 0 : i64, scratch_operands = 0 : i64, tpu.core_type = #tpu.core_type<tc>, window_params = [{transform_indices = @transform_0, window_bounds = array<i64: 16, 32>}, {pipeline_mode = #tpu.pipeline_mode<synchronous>, transform_indices = @transform_1, window_bounds = array<i64: 32, 32>}, {pipeline_mode = #tpu.pipeline_mode<synchronous>, transform_indices = @transform_2, window_bounds = array<i64: 1, 32>}, {transform_indices = @transform_3, window_bounds = array<i64: 16, 32>}]} {
    %c0 = arith.constant 0 : index
    %c0_0 = arith.constant 0 : index
    %0 = vector.load %arg3[%c0, %c0_0] : memref<1x32xf32, #tpu.memory_space<vmem>>, vector<1x32xf32>
    %c0_1 = arith.constant 0 : index
    %c0_2 = arith.constant 0 : index
    %1 = vector.load %arg1[%c0_1, %c0_2] : memref<16x32xf32, #tpu.memory_space<vmem>>, vector<16x32xf32>
    %c0_3 = arith.constant 0 : index
    %c0_4 = arith.constant 0 : index
    %2 = vector.load %arg2[%c0_3, %c0_4] : memref<32x32xf32, #tpu.memory_space<vmem>>, vector<32x32xf32>
    %cst = arith.constant dense<0.000000e+00> : vector<16x32xf32>
    %3 = tpu.matmul %1, %2, %cst {dimension_numbers = #tpu.dot_dimension_numbers<[1], [0], [0], [1], [0, 0, 1, 1], [], []>} : vector<16x32xf32>, vector<32x32xf32>, vector<16x32xf32> -> vector<16x32xf32>
    %4 = vector.broadcast %0 : vector<1x32xf32> to vector<16x32xf32>
    %5 = arith.addf %4, %3 : vector<16x32xf32>
    %c0_5 = arith.constant 0 : index
    %c0_6 = arith.constant 0 : index
    %6 = vector.load %arg4[%c0_5, %c0_6] : memref<16x32xf32, #tpu.memory_space<vmem>>, vector<16x32xf32>
    tpu.vector_store %arg4[%c0_5, %c0_6], %5 {strides = array<i32>} : memref<16x32xf32, #tpu.memory_space<vmem>>, vector<16x32xf32>,
    return
  }
  func.func @transform_0(%arg0: i32) -> (i32, i32) {
    %c0_i32 = arith.constant 0 : i32
    %c0_i32_0 = arith.constant 0 : i32
    return %arg0, %c0_i32 : i32, i32
  }
  func.func @transform_1(%arg0: i32) -> (i32, i32) {
    %c0_i32 = arith.constant 0 : i32
    %c0_i32_0 = arith.constant 0 : i32
    %c0_i32_1 = arith.constant 0 : i32
    return %c0_i32, %c0_i32_0 : i32, i32
  }
  func.func @transform_2(%arg0: i32) -> (i32, i32) {
    %c0_i32 = arith.constant 0 : i32
    %c0_i32_0 = arith.constant 0 : i32
    %c0_i32_1 = arith.constant 0 : i32
    return %c0_i32, %c0_i32_0 : i32, i32
  }
  func.func @transform_3(%arg0: i32) -> (i32, i32) {
    %c0_i32 = arith.constant 0 : i32
    %c0_i32_0 = arith.constant 0 : i32
    return %arg0, %c0_i32 : i32, i32
  }
}

module attributes {stable_mosaic.version = 11 : i64} {
  func.func @kernel(%arg0: i32, %arg1: memref<48x1xf32, #tpu.memory_space<vmem>>, %arg2: memref<48x16xf32, #tpu.memory_space<vmem>>, %arg3: memref<48x8xf32, #tpu.memory_space<vmem>>, %arg4: memref<1x32xf32, #tpu.memory_space<vmem>>, %arg5: memref<16x32xf32, #tpu.memory_space<vmem>>, %arg6: memref<8x32xf32, #tpu.memory_space<vmem>>, %arg7: memref<1x32xf32, #tpu.memory_space<vmem>>, %arg8: memref<48x32xf32, #tpu.memory_space<vmem>>) attributes {dimension_semantics = [#tpu.dimension_semantics<parallel>], iteration_bounds = array<i64: 1>, scalar_prefetch = 0 : i64, scratch_operands = 0 : i64, tpu.core_type = #tpu.core_type<tc>, window_params = [{transform_indices = @transform_0, window_bounds = array<i64: 48, 1>}, {transform_indices = @transform_1, window_bounds = array<i64: 48, 16>}, {transform_indices = @transform_2, window_bounds = array<i64: 48, 8>}, {pipeline_mode = #tpu.pipeline_mode<synchronous>, transform_indices = @transform_3, window_bounds = array<i64: 1, 32>}, {pipeline_mode = #tpu.pipeline_mode<synchronous>, transform_indices = @transform_4, window_bounds = array<i64: 16, 32>}, {pipeline_mode = #tpu.pipeline_mode<synchronous>, transform_indices = @transform_5, window_bounds = array<i64: 8, 32>}, {pipeline_mode = #tpu.pipeline_mode<synchronous>, transform_indices = @transform_6, window_bounds = array<i64: 1, 32>}, {transform_indices = @transform_7, window_bounds = array<i64: 48, 32>}]} {
    %c0 = arith.constant 0 : index
    %c0_0 = arith.constant 0 : index
    %0 = vector.load %arg7[%c0, %c0_0] : memref<1x32xf32, #tpu.memory_space<vmem>>, vector<1x32xf32>
    %c0_1 = arith.constant 0 : index
    %c0_2 = arith.constant 0 : index
    %1 = vector.load %arg1[%c0_1, %c0_2] : memref<48x1xf32, #tpu.memory_space<vmem>>, vector<48x1xf32>
    %c0_3 = arith.constant 0 : index
    %c0_4 = arith.constant 0 : index
    %2 = vector.load %arg4[%c0_3, %c0_4] : memref<1x32xf32, #tpu.memory_space<vmem>>, vector<1x32xf32>
    %cst = arith.constant dense<0.000000e+00> : vector<48x32xf32>
    %3 = tpu.matmul %1, %2, %cst {dimension_numbers = #tpu.dot_dimension_numbers<[1], [0], [0], [1], [0, 0, 1, 1], [], []>} : vector<48x1xf32>, vector<1x32xf32>, vector<48x32xf32> -> vector<48x32xf32>
    %4 = vector.broadcast %0 : vector<1x32xf32> to vector<48x32xf32>
    %5 = arith.addf %4, %3 : vector<48x32xf32>
    %c0_5 = arith.constant 0 : index
    %c0_6 = arith.constant 0 : index
    %6 = vector.load %arg2[%c0_5, %c0_6] : memref<48x16xf32, #tpu.memory_space<vmem>>, vector<48x16xf32>
    %c0_7 = arith.constant 0 : index
    %c0_8 = arith.constant 0 : index
    %7 = vector.load %arg5[%c0_7, %c0_8] : memref<16x32xf32, #tpu.memory_space<vmem>>, vector<16x32xf32>
    %cst_9 = arith.constant dense<0.000000e+00> : vector<48x32xf32>
    %8 = tpu.matmul %6, %7, %cst_9 {dimension_numbers = #tpu.dot_dimension_numbers<[1], [0], [0], [1], [0, 0, 1, 1], [], []>} : vector<48x16xf32>, vector<16x32xf32>, vector<48x32xf32> -> vector<48x32xf32>
    %9 = arith.addf %5, %8 : vector<48x32xf32>
    %c0_10 = arith.constant 0 : index
    %c0_11 = arith.constant 0 : index
    %10 = vector.load %arg3[%c0_10, %c0_11] : memref<48x8xf32, #tpu.memory_space<vmem>>, vector<48x8xf32>
    %c0_12 = arith.constant 0 : index
    %c0_13 = arith.constant 0 : index
    %11 = vector.load %arg6[%c0_12, %c0_13] : memref<8x32xf32, #tpu.memory_space<vmem>>, vector<8x32xf32>
    %cst_14 = arith.constant dense<0.000000e+00> : vector<48x32xf32>
    %12 = tpu.matmul %10, %11, %cst_14 {dimension_numbers = #tpu.dot_dimension_numbers<[1], [0], [0], [1], [0, 0, 1, 1], [], []>} : vector<48x8xf32>, vector<8x32xf32>, vector<48x32xf32> -> vector<48x32xf32>
    %13 = arith.addf %9, %12 : vector<48x32xf32>
    %c0_15 = arith.constant 0 : index
    %c0_16 = arith.constant 0 : index
    %14 = vector.load %arg8[%c0_15, %c0_16] : memref<48x32xf32, #tpu.memory_space<vmem>>, vector<48x32xf32>
    tpu.vector_store %arg8[%c0_15, %c0_16], %13 {strides = array<i32>} : memref<48x32xf32, #tpu.memory_space<vmem>>, vector<48x32xf32>,
    return
  }
  func.func @transform_0(%arg0: i32) -> (i32, i32) {
    %c0_i32 = arith.constant 0 : i32
    %c0_i32_0 = arith.constant 0 : i32
    return %arg0, %c0_i32 : i32, i32
  }
  func.func @transform_1(%arg0: i32) -> (i32, i32) {
    %c0_i32 = arith.constant 0 : i32
    %c0_i32_0 = arith.constant 0 : i32
    return %arg0, %c0_i32 : i32, i32
  }
  func.func @transform_2(%arg0: i32) -> (i32, i32) {
    %c0_i32 = arith.constant 0 : i32
    %c0_i32_0 = arith.constant 0 : i32
    return %arg0, %c0_i32 : i32, i32
  }
  func.func @transform_3(%arg0: i32) -> (i32, i32) {
    %c0_i32 = arith.constant 0 : i32
    %c0_i32_0 = arith.constant 0 : i32
    %c0_i32_1 = arith.constant 0 : i32
    return %c0_i32, %c0_i32_0 : i32, i32
  }
  func.func @transform_4(%arg0: i32) -> (i32, i32) {
    %c0_i32 = arith.constant 0 : i32
    %c0_i32_0 = arith.constant 0 : i32
    %c0_i32_1 = arith.constant 0 : i32
    return %c0_i32, %c0_i32_0 : i32, i32
  }
  func.func @transform_5(%arg0: i32) -> (i32, i32) {
    %c0_i32 = arith.constant 0 : i32
    %c0_i32_0 = arith.constant 0 : i32
    %c0_i32_1 = arith.constant 0 : i32
    return %c0_i32, %c0_i32_0 : i32, i32
  }
  func.func @transform_6(%arg0: i32) -> (i32, i32) {
    %c0_i32 = arith.constant 0 : i32
    %c0_i32_0 = arith.constant 0 : i32
    %c0_i32_1 = arith.constant 0 : i32
    return %c0_i32, %c0_i32_0 : i32, i32
  }
  func.func @transform_7(%arg0: i32) -> (i32, i32) {
    %c0_i32 = arith.constant 0 : i32
    %c0_i32_0 = arith.constant 0 : i32
    return %arg0, %c0_i32 : i32, i32
  }
}

module attributes {stable_mosaic.version = 11 : i64} {
  func.func @kernel(%arg0: i32, %arg1: memref<48x32xf32, #tpu.memory_space<vmem>>, %arg2: memref<32x96xf32, #tpu.memory_space<vmem>>, %arg3: memref<1x96xf32, #tpu.memory_space<vmem>>, %arg4: memref<48x96xf32, #tpu.memory_space<vmem>>) attributes {dimension_semantics = [#tpu.dimension_semantics<parallel>], iteration_bounds = array<i64: 1>, scalar_prefetch = 0 : i64, scratch_operands = 0 : i64, tpu.core_type = #tpu.core_type<tc>, window_params = [{transform_indices = @transform_0, window_bounds = array<i64: 48, 32>}, {pipeline_mode = #tpu.pipeline_mode<synchronous>, transform_indices = @transform_1, window_bounds = array<i64: 32, 96>}, {pipeline_mode = #tpu.pipeline_mode<synchronous>, transform_indices = @transform_2, window_bounds = array<i64: 1, 96>}, {transform_indices = @transform_3, window_bounds = array<i64: 48, 96>}]} {
    %c0 = arith.constant 0 : index
    %c0_0 = arith.constant 0 : index
    %0 = vector.load %arg3[%c0, %c0_0] : memref<1x96xf32, #tpu.memory_space<vmem>>, vector<1x96xf32>
    %c0_1 = arith.constant 0 : index
    %c0_2 = arith.constant 0 : index
    %1 = vector.load %arg1[%c0_1, %c0_2] : memref<48x32xf32, #tpu.memory_space<vmem>>, vector<48x32xf32>
    %c0_3 = arith.constant 0 : index
    %c0_4 = arith.constant 0 : index
    %2 = vector.load %arg2[%c0_3, %c0_4] : memref<32x96xf32, #tpu.memory_space<vmem>>, vector<32x96xf32>
    %cst = arith.constant dense<0.000000e+00> : vector<48x96xf32>
    %3 = tpu.matmul %1, %2, %cst {dimension_numbers = #tpu.dot_dimension_numbers<[1], [0], [0], [1], [0, 0, 1, 1], [], []>} : vector<48x32xf32>, vector<32x96xf32>, vector<48x96xf32> -> vector<48x96xf32>
    %4 = vector.broadcast %0 : vector<1x96xf32> to vector<48x96xf32>
    %5 = arith.addf %4, %3 : vector<48x96xf32>
    %c0_5 = arith.constant 0 : index
    %c0_6 = arith.constant 0 : index
    %6 = vector.load %arg4[%c0_5, %c0_6] : memref<48x96xf32, #tpu.memory_space<vmem>>, vector<48x96xf32>
    tpu.vector_store %arg4[%c0_5, %c0_6], %5 {strides = array<i32>} : memref<48x96xf32, #tpu.memory_space<vmem>>, vector<48x96xf32>,
    return
  }
  func.func @transform_0(%arg0: i32) -> (i32, i32) {
    %c0_i32 = arith.constant 0 : i32
    %c0_i32_0 = arith.constant 0 : i32
    return %arg0, %c0_i32 : i32, i32
  }
  func.func @transform_1(%arg0: i32) -> (i32, i32) {
    %c0_i32 = arith.constant 0 : i32
    %c0_i32_0 = arith.constant 0 : i32
    %c0_i32_1 = arith.constant 0 : i32
    return %c0_i32, %c0_i32_0 : i32, i32
  }
  func.func @transform_2(%arg0: i32) -> (i32, i32) {
    %c0_i32 = arith.constant 0 : i32
    %c0_i32_0 = arith.constant 0 : i32
    %c0_i32_1 = arith.constant 0 : i32
    return %c0_i32, %c0_i32_0 : i32, i32
  }
  func.func @transform_3(%arg0: i32) -> (i32, i32) {
    %c0_i32 = arith.constant 0 : i32
    %c0_i32_0 = arith.constant 0 : i32
    return %arg0, %c0_i32 : i32, i32
  }
}

module attributes {stable_mosaic.version = 11 : i64} {
  func.func @_gru_kernel(%arg0: i32, %arg1: memref<16x2x96xf32, #tpu.memory_space<vmem>>, %arg2: memref<32x96xf32, #tpu.memory_space<vmem>>, %arg3: memref<1x96xf32, #tpu.memory_space<vmem>>, %arg4: memref<16x2x32xf32, #tpu.memory_space<vmem>>, %arg5: memref<2x32xf32, #tpu.memory_space<vmem>>) attributes {dimension_semantics = [#tpu.dimension_semantics<arbitrary>], iteration_bounds = array<i64: 2>, scalar_prefetch = 0 : i64, scratch_operands = 1 : i64, tpu.core_type = #tpu.core_type<tc>, window_params = [{transform_indices = @transform_0, window_bounds = array<i64: 16, 2, 96>}, {pipeline_mode = #tpu.pipeline_mode<synchronous>, transform_indices = @transform_1, window_bounds = array<i64: 32, 96>}, {pipeline_mode = #tpu.pipeline_mode<synchronous>, transform_indices = @transform_2, window_bounds = array<i64: 1, 96>}, {transform_indices = @transform_3, window_bounds = array<i64: 16, 2, 32>}]} {
    %c0_i32 = arith.constant 0 : i32
    %0 = arith.cmpi eq, %arg0, %c0_i32 : i32
    %1 = arith.extui %0 : i1 to i32
    %c0_i32_0 = arith.constant 0 : i32
    %2 = arith.cmpi ne, %1, %c0_i32_0 : i32
    scf.if %2 {
      %cst_152 = arith.constant 0.000000e+00 : f32
      %551 = vector.broadcast %cst_152 : f32 to vector<2x32xf32>
      %c0_153 = arith.constant 0 : index
      %c0_154 = arith.constant 0 : index
      %552 = vector.load %arg5[%c0_153, %c0_154] : memref<2x32xf32, #tpu.memory_space<vmem>>, vector<2x32xf32>
      tpu.vector_store %arg5[%c0_153, %c0_154], %551 {strides = array<i32>} : memref<2x32xf32, #tpu.memory_space<vmem>>, vector<2x32xf32>,
    } else {
    }
    %c0 = arith.constant 0 : index
    %c0_1 = arith.constant 0 : index
    %3 = vector.load %arg2[%c0, %c0_1] : memref<32x96xf32, #tpu.memory_space<vmem>>, vector<32x96xf32>
    %c0_2 = arith.constant 0 : index
    %c0_3 = arith.constant 0 : index
    %4 = vector.load %arg3[%c0_2, %c0_3] : memref<1x96xf32, #tpu.memory_space<vmem>>, vector<1x96xf32>
    %c0_4 = arith.constant 0 : index
    %c0_5 = arith.constant 0 : index
    %5 = vector.load %arg5[%c0_4, %c0_5] : memref<2x32xf32, #tpu.memory_space<vmem>>, vector<2x32xf32>
    %cst = arith.constant dense<0.000000e+00> : vector<2x96xf32>
    %6 = tpu.matmul %5, %3, %cst {dimension_numbers = #tpu.dot_dimension_numbers<[1], [0], [0], [1], [0, 0, 1, 1], [], []>} : vector<2x32xf32>, vector<32x96xf32>, vector<2x96xf32> -> vector<2x96xf32>
    %7 = vector.broadcast %4 : vector<1x96xf32> to vector<2x96xf32>
    %8 = arith.addf %6, %7 : vector<2x96xf32>
    %c0_6 = arith.constant 0 : index
    %c0_7 = arith.constant 0 : index
    %c0_8 = arith.constant 0 : index
    %9 = vector.load %arg1[%c0_6, %c0_7, %c0_8] : memref<16x2x96xf32, #tpu.memory_space<vmem>>, vector<1x2x96xf32>
    %10 = vector.shape_cast %9 : vector<1x2x96xf32> to vector<2x96xf32>
    %11 = vector.extract_strided_slice %10 {offsets = [0, 0], sizes = [2, 32], strides = [1, 1]} : vector<2x96xf32> to vector<2x32xf32>
    %12 = vector.extract_strided_slice %8 {offsets = [0, 0], sizes = [2, 32], strides = [1, 1]} : vector<2x96xf32> to vector<2x32xf32>
    %13 = arith.addf %11, %12 : vector<2x32xf32>
    %14 = arith.negf %13 : vector<2x32xf32>
    %15 = math.exp %14 : vector<2x32xf32>
    %cst_9 = arith.constant 1.000000e+00 : f32
    %16 = vector.broadcast %cst_9 : f32 to vector<2x32xf32>
    %17 = arith.addf %16, %15 : vector<2x32xf32>
    %18 = arith.divf %16, %17 : vector<2x32xf32>
    %19 = vector.extract_strided_slice %10 {offsets = [0, 32], sizes = [2, 32], strides = [1, 1]} : vector<2x96xf32> to vector<2x32xf32>
    %20 = vector.extract_strided_slice %8 {offsets = [0, 32], sizes = [2, 32], strides = [1, 1]} : vector<2x96xf32> to vector<2x32xf32>
    %21 = arith.addf %19, %20 : vector<2x32xf32>
    %22 = arith.negf %21 : vector<2x32xf32>
    %23 = math.exp %22 : vector<2x32xf32>
    %cst_10 = arith.constant 1.000000e+00 : f32
    %24 = vector.broadcast %cst_10 : f32 to vector<2x32xf32>
    %25 = arith.addf %24, %23 : vector<2x32xf32>
    %26 = arith.divf %24, %25 : vector<2x32xf32>
    %27 = vector.extract_strided_slice %10 {offsets = [0, 64], sizes = [2, 32], strides = [1, 1]} : vector<2x96xf32> to vector<2x32xf32>
    %28 = vector.extract_strided_slice %8 {offsets = [0, 64], sizes = [2, 32], strides = [1, 1]} : vector<2x96xf32> to vector<2x32xf32>
    %29 = arith.mulf %18, %28 : vector<2x32xf32>
    %30 = arith.addf %27, %29 : vector<2x32xf32>
    %31 = math.tanh %30 : vector<2x32xf32>
    %cst_11 = arith.constant 1.000000e+00 : f32
    %32 = vector.broadcast %cst_11 : f32 to vector<2x32xf32>
    %33 = arith.subf %32, %26 : vector<2x32xf32>
    %34 = arith.mulf %33, %31 : vector<2x32xf32>
    %35 = arith.mulf %26, %5 : vector<2x32xf32>
    %36 = arith.addf %34, %35 : vector<2x32xf32>
    %c0_12 = arith.constant 0 : index
    %c0_13 = arith.constant 0 : index
    %c0_14 = arith.constant 0 : index
    %37 = vector.load %arg4[%c0_12, %c0_13, %c0_14] : memref<16x2x32xf32, #tpu.memory_space<vmem>>, vector<1x2x32xf32>
    %38 = vector.shape_cast %37 : vector<1x2x32xf32> to vector<2x32xf32>
    %39 = vector.shape_cast %36 : vector<2x32xf32> to vector<1x2x32xf32>
    tpu.vector_store %arg4[%c0_12, %c0_13, %c0_14], %39 {strides = array<i32>} : memref<16x2x32xf32, #tpu.memory_space<vmem>>, vector<1x2x32xf32>,
    %cst_15 = arith.constant dense<0.000000e+00> : vector<2x96xf32>
    %40 = tpu.matmul %36, %3, %cst_15 {dimension_numbers = #tpu.dot_dimension_numbers<[1], [0], [0], [1], [0, 0, 1, 1], [], []>} : vector<2x32xf32>, vector<32x96xf32>, vector<2x96xf32> -> vector<2x96xf32>
    %41 = vector.broadcast %4 : vector<1x96xf32> to vector<2x96xf32>
    %42 = arith.addf %40, %41 : vector<2x96xf32>
    %c1 = arith.constant 1 : index
    %c0_16 = arith.constant 0 : index
    %c0_17 = arith.constant 0 : index
    %43 = vector.load %arg1[%c1, %c0_16, %c0_17] : memref<16x2x96xf32, #tpu.memory_space<vmem>>, vector<1x2x96xf32>
    %44 = vector.shape_cast %43 : vector<1x2x96xf32> to vector<2x96xf32>
    %45 = vector.extract_strided_slice %44 {offsets = [0, 0], sizes = [2, 32], strides = [1, 1]} : vector<2x96xf32> to vector<2x32xf32>
    %46 = vector.extract_strided_slice %42 {offsets = [0, 0], sizes = [2, 32], strides = [1, 1]} : vector<2x96xf32> to vector<2x32xf32>
    %47 = arith.addf %45, %46 : vector<2x32xf32>
    %48 = arith.negf %47 : vector<2x32xf32>
    %49 = math.exp %48 : vector<2x32xf32>
    %cst_18 = arith.constant 1.000000e+00 : f32
    %50 = vector.broadcast %cst_18 : f32 to vector<2x32xf32>
    %51 = arith.addf %50, %49 : vector<2x32xf32>
    %52 = arith.divf %50, %51 : vector<2x32xf32>
    %53 = vector.extract_strided_slice %44 {offsets = [0, 32], sizes = [2, 32], strides = [1, 1]} : vector<2x96xf32> to vector<2x32xf32>
    %54 = vector.extract_strided_slice %42 {offsets = [0, 32], sizes = [2, 32], strides = [1, 1]} : vector<2x96xf32> to vector<2x32xf32>
    %55 = arith.addf %53, %54 : vector<2x32xf32>
    %56 = arith.negf %55 : vector<2x32xf32>
    %57 = math.exp %56 : vector<2x32xf32>
    %cst_19 = arith.constant 1.000000e+00 : f32
    %58 = vector.broadcast %cst_19 : f32 to vector<2x32xf32>
    %59 = arith.addf %58, %57 : vector<2x32xf32>
    %60 = arith.divf %58, %59 : vector<2x32xf32>
    %61 = vector.extract_strided_slice %44 {offsets = [0, 64], sizes = [2, 32], strides = [1, 1]} : vector<2x96xf32> to vector<2x32xf32>
    %62 = vector.extract_strided_slice %42 {offsets = [0, 64], sizes = [2, 32], strides = [1, 1]} : vector<2x96xf32> to vector<2x32xf32>
    %63 = arith.mulf %52, %62 : vector<2x32xf32>
    %64 = arith.addf %61, %63 : vector<2x32xf32>
    %65 = math.tanh %64 : vector<2x32xf32>
    %cst_20 = arith.constant 1.000000e+00 : f32
    %66 = vector.broadcast %cst_20 : f32 to vector<2x32xf32>
    %67 = arith.subf %66, %60 : vector<2x32xf32>
    %68 = arith.mulf %67, %65 : vector<2x32xf32>
    %69 = arith.mulf %60, %36 : vector<2x32xf32>
    %70 = arith.addf %68, %69 : vector<2x32xf32>
    %c1_21 = arith.constant 1 : index
    %c0_22 = arith.constant 0 : index
    %c0_23 = arith.constant 0 : index
    %71 = vector.load %arg4[%c1_21, %c0_22, %c0_23] : memref<16x2x32xf32, #tpu.memory_space<vmem>>, vector<1x2x32xf32>
    %72 = vector.shape_cast %71 : vector<1x2x32xf32> to vector<2x32xf32>
    %73 = vector.shape_cast %70 : vector<2x32xf32> to vector<1x2x32xf32>
    tpu.vector_store %arg4[%c1_21, %c0_22, %c0_23], %73 {strides = array<i32>} : memref<16x2x32xf32, #tpu.memory_space<vmem>>, vector<1x2x32xf32>,
    %cst_24 = arith.constant dense<0.000000e+00> : vector<2x96xf32>
    %74 = tpu.matmul %70, %3, %cst_24 {dimension_numbers = #tpu.dot_dimension_numbers<[1], [0], [0], [1], [0, 0, 1, 1], [], []>} : vector<2x32xf32>, vector<32x96xf32>, vector<2x96xf32> -> vector<2x96xf32>
    %75 = vector.broadcast %4 : vector<1x96xf32> to vector<2x96xf32>
    %76 = arith.addf %74, %75 : vector<2x96xf32>
    %c2 = arith.constant 2 : index
    %c0_25 = arith.constant 0 : index
    %c0_26 = arith.constant 0 : index
    %77 = vector.load %arg1[%c2, %c0_25, %c0_26] : memref<16x2x96xf32, #tpu.memory_space<vmem>>, vector<1x2x96xf32>
    %78 = vector.shape_cast %77 : vector<1x2x96xf32> to vector<2x96xf32>
    %79 = vector.extract_strided_slice %78 {offsets = [0, 0], sizes = [2, 32], strides = [1, 1]} : vector<2x96xf32> to vector<2x32xf32>
    %80 = vector.extract_strided_slice %76 {offsets = [0, 0], sizes = [2, 32], strides = [1, 1]} : vector<2x96xf32> to vector<2x32xf32>
    %81 = arith.addf %79, %80 : vector<2x32xf32>
    %82 = arith.negf %81 : vector<2x32xf32>
    %83 = math.exp %82 : vector<2x32xf32>
    %cst_27 = arith.constant 1.000000e+00 : f32
    %84 = vector.broadcast %cst_27 : f32 to vector<2x32xf32>
    %85 = arith.addf %84, %83 : vector<2x32xf32>
    %86 = arith.divf %84, %85 : vector<2x32xf32>
    %87 = vector.extract_strided_slice %78 {offsets = [0, 32], sizes = [2, 32], strides = [1, 1]} : vector<2x96xf32> to vector<2x32xf32>
    %88 = vector.extract_strided_slice %76 {offsets = [0, 32], sizes = [2, 32], strides = [1, 1]} : vector<2x96xf32> to vector<2x32xf32>
    %89 = arith.addf %87, %88 : vector<2x32xf32>
    %90 = arith.negf %89 : vector<2x32xf32>
    %91 = math.exp %90 : vector<2x32xf32>
    %cst_28 = arith.constant 1.000000e+00 : f32
    %92 = vector.broadcast %cst_28 : f32 to vector<2x32xf32>
    %93 = arith.addf %92, %91 : vector<2x32xf32>
    %94 = arith.divf %92, %93 : vector<2x32xf32>
    %95 = vector.extract_strided_slice %78 {offsets = [0, 64], sizes = [2, 32], strides = [1, 1]} : vector<2x96xf32> to vector<2x32xf32>
    %96 = vector.extract_strided_slice %76 {offsets = [0, 64], sizes = [2, 32], strides = [1, 1]} : vector<2x96xf32> to vector<2x32xf32>
    %97 = arith.mulf %86, %96 : vector<2x32xf32>
    %98 = arith.addf %95, %97 : vector<2x32xf32>
    %99 = math.tanh %98 : vector<2x32xf32>
    %cst_29 = arith.constant 1.000000e+00 : f32
    %100 = vector.broadcast %cst_29 : f32 to vector<2x32xf32>
    %101 = arith.subf %100, %94 : vector<2x32xf32>
    %102 = arith.mulf %101, %99 : vector<2x32xf32>
    %103 = arith.mulf %94, %70 : vector<2x32xf32>
    %104 = arith.addf %102, %103 : vector<2x32xf32>
    %c2_30 = arith.constant 2 : index
    %c0_31 = arith.constant 0 : index
    %c0_32 = arith.constant 0 : index
    %105 = vector.load %arg4[%c2_30, %c0_31, %c0_32] : memref<16x2x32xf32, #tpu.memory_space<vmem>>, vector<1x2x32xf32>
    %106 = vector.shape_cast %105 : vector<1x2x32xf32> to vector<2x32xf32>
    %107 = vector.shape_cast %104 : vector<2x32xf32> to vector<1x2x32xf32>
    tpu.vector_store %arg4[%c2_30, %c0_31, %c0_32], %107 {strides = array<i32>} : memref<16x2x32xf32, #tpu.memory_space<vmem>>, vector<1x2x32xf32>,
    %cst_33 = arith.constant dense<0.000000e+00> : vector<2x96xf32>
    %108 = tpu.matmul %104, %3, %cst_33 {dimension_numbers = #tpu.dot_dimension_numbers<[1], [0], [0], [1], [0, 0, 1, 1], [], []>} : vector<2x32xf32>, vector<32x96xf32>, vector<2x96xf32> -> vector<2x96xf32>
    %109 = vector.broadcast %4 : vector<1x96xf32> to vector<2x96xf32>
    %110 = arith.addf %108, %109 : vector<2x96xf32>
    %c3 = arith.constant 3 : index
    %c0_34 = arith.constant 0 : index
    %c0_35 = arith.constant 0 : index
    %111 = vector.load %arg1[%c3, %c0_34, %c0_35] : memref<16x2x96xf32, #tpu.memory_space<vmem>>, vector<1x2x96xf32>
    %112 = vector.shape_cast %111 : vector<1x2x96xf32> to vector<2x96xf32>
    %113 = vector.extract_strided_slice %112 {offsets = [0, 0], sizes = [2, 32], strides = [1, 1]} : vector<2x96xf32> to vector<2x32xf32>
    %114 = vector.extract_strided_slice %110 {offsets = [0, 0], sizes = [2, 32], strides = [1, 1]} : vector<2x96xf32> to vector<2x32xf32>
    %115 = arith.addf %113, %114 : vector<2x32xf32>
    %116 = arith.negf %115 : vector<2x32xf32>
    %117 = math.exp %116 : vector<2x32xf32>
    %cst_36 = arith.constant 1.000000e+00 : f32
    %118 = vector.broadcast %cst_36 : f32 to vector<2x32xf32>
    %119 = arith.addf %118, %117 : vector<2x32xf32>
    %120 = arith.divf %118, %119 : vector<2x32xf32>
    %121 = vector.extract_strided_slice %112 {offsets = [0, 32], sizes = [2, 32], strides = [1, 1]} : vector<2x96xf32> to vector<2x32xf32>
    %122 = vector.extract_strided_slice %110 {offsets = [0, 32], sizes = [2, 32], strides = [1, 1]} : vector<2x96xf32> to vector<2x32xf32>
    %123 = arith.addf %121, %122 : vector<2x32xf32>
    %124 = arith.negf %123 : vector<2x32xf32>
    %125 = math.exp %124 : vector<2x32xf32>
    %cst_37 = arith.constant 1.000000e+00 : f32
    %126 = vector.broadcast %cst_37 : f32 to vector<2x32xf32>
    %127 = arith.addf %126, %125 : vector<2x32xf32>
    %128 = arith.divf %126, %127 : vector<2x32xf32>
    %129 = vector.extract_strided_slice %112 {offsets = [0, 64], sizes = [2, 32], strides = [1, 1]} : vector<2x96xf32> to vector<2x32xf32>
    %130 = vector.extract_strided_slice %110 {offsets = [0, 64], sizes = [2, 32], strides = [1, 1]} : vector<2x96xf32> to vector<2x32xf32>
    %131 = arith.mulf %120, %130 : vector<2x32xf32>
    %132 = arith.addf %129, %131 : vector<2x32xf32>
    %133 = math.tanh %132 : vector<2x32xf32>
    %cst_38 = arith.constant 1.000000e+00 : f32
    %134 = vector.broadcast %cst_38 : f32 to vector<2x32xf32>
    %135 = arith.subf %134, %128 : vector<2x32xf32>
    %136 = arith.mulf %135, %133 : vector<2x32xf32>
    %137 = arith.mulf %128, %104 : vector<2x32xf32>
    %138 = arith.addf %136, %137 : vector<2x32xf32>
    %c3_39 = arith.constant 3 : index
    %c0_40 = arith.constant 0 : index
    %c0_41 = arith.constant 0 : index
    %139 = vector.load %arg4[%c3_39, %c0_40, %c0_41] : memref<16x2x32xf32, #tpu.memory_space<vmem>>, vector<1x2x32xf32>
    %140 = vector.shape_cast %139 : vector<1x2x32xf32> to vector<2x32xf32>
    %141 = vector.shape_cast %138 : vector<2x32xf32> to vector<1x2x32xf32>
    tpu.vector_store %arg4[%c3_39, %c0_40, %c0_41], %141 {strides = array<i32>} : memref<16x2x32xf32, #tpu.memory_space<vmem>>, vector<1x2x32xf32>,
    %cst_42 = arith.constant dense<0.000000e+00> : vector<2x96xf32>
    %142 = tpu.matmul %138, %3, %cst_42 {dimension_numbers = #tpu.dot_dimension_numbers<[1], [0], [0], [1], [0, 0, 1, 1], [], []>} : vector<2x32xf32>, vector<32x96xf32>, vector<2x96xf32> -> vector<2x96xf32>
    %143 = vector.broadcast %4 : vector<1x96xf32> to vector<2x96xf32>
    %144 = arith.addf %142, %143 : vector<2x96xf32>
    %c4 = arith.constant 4 : index
    %c0_43 = arith.constant 0 : index
    %c0_44 = arith.constant 0 : index
    %145 = vector.load %arg1[%c4, %c0_43, %c0_44] : memref<16x2x96xf32, #tpu.memory_space<vmem>>, vector<1x2x96xf32>
    %146 = vector.shape_cast %145 : vector<1x2x96xf32> to vector<2x96xf32>
    %147 = vector.extract_strided_slice %146 {offsets = [0, 0], sizes = [2, 32], strides = [1, 1]} : vector<2x96xf32> to vector<2x32xf32>
    %148 = vector.extract_strided_slice %144 {offsets = [0, 0], sizes = [2, 32], strides = [1, 1]} : vector<2x96xf32> to vector<2x32xf32>
    %149 = arith.addf %147, %148 : vector<2x32xf32>
    %150 = arith.negf %149 : vector<2x32xf32>
    %151 = math.exp %150 : vector<2x32xf32>
    %cst_45 = arith.constant 1.000000e+00 : f32
    %152 = vector.broadcast %cst_45 : f32 to vector<2x32xf32>
    %153 = arith.addf %152, %151 : vector<2x32xf32>
    %154 = arith.divf %152, %153 : vector<2x32xf32>
    %155 = vector.extract_strided_slice %146 {offsets = [0, 32], sizes = [2, 32], strides = [1, 1]} : vector<2x96xf32> to vector<2x32xf32>
    %156 = vector.extract_strided_slice %144 {offsets = [0, 32], sizes = [2, 32], strides = [1, 1]} : vector<2x96xf32> to vector<2x32xf32>
    %157 = arith.addf %155, %156 : vector<2x32xf32>
    %158 = arith.negf %157 : vector<2x32xf32>
    %159 = math.exp %158 : vector<2x32xf32>
    %cst_46 = arith.constant 1.000000e+00 : f32
    %160 = vector.broadcast %cst_46 : f32 to vector<2x32xf32>
    %161 = arith.addf %160, %159 : vector<2x32xf32>
    %162 = arith.divf %160, %161 : vector<2x32xf32>
    %163 = vector.extract_strided_slice %146 {offsets = [0, 64], sizes = [2, 32], strides = [1, 1]} : vector<2x96xf32> to vector<2x32xf32>
    %164 = vector.extract_strided_slice %144 {offsets = [0, 64], sizes = [2, 32], strides = [1, 1]} : vector<2x96xf32> to vector<2x32xf32>
    %165 = arith.mulf %154, %164 : vector<2x32xf32>
    %166 = arith.addf %163, %165 : vector<2x32xf32>
    %167 = math.tanh %166 : vector<2x32xf32>
    %cst_47 = arith.constant 1.000000e+00 : f32
    %168 = vector.broadcast %cst_47 : f32 to vector<2x32xf32>
    %169 = arith.subf %168, %162 : vector<2x32xf32>
    %170 = arith.mulf %169, %167 : vector<2x32xf32>
    %171 = arith.mulf %162, %138 : vector<2x32xf32>
    %172 = arith.addf %170, %171 : vector<2x32xf32>
    %c4_48 = arith.constant 4 : index
    %c0_49 = arith.constant 0 : index
    %c0_50 = arith.constant 0 : index
    %173 = vector.load %arg4[%c4_48, %c0_49, %c0_50] : memref<16x2x32xf32, #tpu.memory_space<vmem>>, vector<1x2x32xf32>
    %174 = vector.shape_cast %173 : vector<1x2x32xf32> to vector<2x32xf32>
    %175 = vector.shape_cast %172 : vector<2x32xf32> to vector<1x2x32xf32>
    tpu.vector_store %arg4[%c4_48, %c0_49, %c0_50], %175 {strides = array<i32>} : memref<16x2x32xf32, #tpu.memory_space<vmem>>, vector<1x2x32xf32>,
    %cst_51 = arith.constant dense<0.000000e+00> : vector<2x96xf32>
    %176 = tpu.matmul %172, %3, %cst_51 {dimension_numbers = #tpu.dot_dimension_numbers<[1], [0], [0], [1], [0, 0, 1, 1], [], []>} : vector<2x32xf32>, vector<32x96xf32>, vector<2x96xf32> -> vector<2x96xf32>
    %177 = vector.broadcast %4 : vector<1x96xf32> to vector<2x96xf32>
    %178 = arith.addf %176, %177 : vector<2x96xf32>
    %c5 = arith.constant 5 : index
    %c0_52 = arith.constant 0 : index
    %c0_53 = arith.constant 0 : index
    %179 = vector.load %arg1[%c5, %c0_52, %c0_53] : memref<16x2x96xf32, #tpu.memory_space<vmem>>, vector<1x2x96xf32>
    %180 = vector.shape_cast %179 : vector<1x2x96xf32> to vector<2x96xf32>
    %181 = vector.extract_strided_slice %180 {offsets = [0, 0], sizes = [2, 32], strides = [1, 1]} : vector<2x96xf32> to vector<2x32xf32>
    %182 = vector.extract_strided_slice %178 {offsets = [0, 0], sizes = [2, 32], strides = [1, 1]} : vector<2x96xf32> to vector<2x32xf32>
    %183 = arith.addf %181, %182 : vector<2x32xf32>
    %184 = arith.negf %183 : vector<2x32xf32>
    %185 = math.exp %184 : vector<2x32xf32>
    %cst_54 = arith.constant 1.000000e+00 : f32
    %186 = vector.broadcast %cst_54 : f32 to vector<2x32xf32>
    %187 = arith.addf %186, %185 : vector<2x32xf32>
    %188 = arith.divf %186, %187 : vector<2x32xf32>
    %189 = vector.extract_strided_slice %180 {offsets = [0, 32], sizes = [2, 32], strides = [1, 1]} : vector<2x96xf32> to vector<2x32xf32>
    %190 = vector.extract_strided_slice %178 {offsets = [0, 32], sizes = [2, 32], strides = [1, 1]} : vector<2x96xf32> to vector<2x32xf32>
    %191 = arith.addf %189, %190 : vector<2x32xf32>
    %192 = arith.negf %191 : vector<2x32xf32>
    %193 = math.exp %192 : vector<2x32xf32>
    %cst_55 = arith.constant 1.000000e+00 : f32
    %194 = vector.broadcast %cst_55 : f32 to vector<2x32xf32>
    %195 = arith.addf %194, %193 : vector<2x32xf32>
    %196 = arith.divf %194, %195 : vector<2x32xf32>
    %197 = vector.extract_strided_slice %180 {offsets = [0, 64], sizes = [2, 32], strides = [1, 1]} : vector<2x96xf32> to vector<2x32xf32>
    %198 = vector.extract_strided_slice %178 {offsets = [0, 64], sizes = [2, 32], strides = [1, 1]} : vector<2x96xf32> to vector<2x32xf32>
    %199 = arith.mulf %188, %198 : vector<2x32xf32>
    %200 = arith.addf %197, %199 : vector<2x32xf32>
    %201 = math.tanh %200 : vector<2x32xf32>
    %cst_56 = arith.constant 1.000000e+00 : f32
    %202 = vector.broadcast %cst_56 : f32 to vector<2x32xf32>
    %203 = arith.subf %202, %196 : vector<2x32xf32>
    %204 = arith.mulf %203, %201 : vector<2x32xf32>
    %205 = arith.mulf %196, %172 : vector<2x32xf32>
    %206 = arith.addf %204, %205 : vector<2x32xf32>
    %c5_57 = arith.constant 5 : index
    %c0_58 = arith.constant 0 : index
    %c0_59 = arith.constant 0 : index
    %207 = vector.load %arg4[%c5_57, %c0_58, %c0_59] : memref<16x2x32xf32, #tpu.memory_space<vmem>>, vector<1x2x32xf32>
    %208 = vector.shape_cast %207 : vector<1x2x32xf32> to vector<2x32xf32>
    %209 = vector.shape_cast %206 : vector<2x32xf32> to vector<1x2x32xf32>
    tpu.vector_store %arg4[%c5_57, %c0_58, %c0_59], %209 {strides = array<i32>} : memref<16x2x32xf32, #tpu.memory_space<vmem>>, vector<1x2x32xf32>,
    %cst_60 = arith.constant dense<0.000000e+00> : vector<2x96xf32>
    %210 = tpu.matmul %206, %3, %cst_60 {dimension_numbers = #tpu.dot_dimension_numbers<[1], [0], [0], [1], [0, 0, 1, 1], [], []>} : vector<2x32xf32>, vector<32x96xf32>, vector<2x96xf32> -> vector<2x96xf32>
    %211 = vector.broadcast %4 : vector<1x96xf32> to vector<2x96xf32>
    %212 = arith.addf %210, %211 : vector<2x96xf32>
    %c6 = arith.constant 6 : index
    %c0_61 = arith.constant 0 : index
    %c0_62 = arith.constant 0 : index
    %213 = vector.load %arg1[%c6, %c0_61, %c0_62] : memref<16x2x96xf32, #tpu.memory_space<vmem>>, vector<1x2x96xf32>
    %214 = vector.shape_cast %213 : vector<1x2x96xf32> to vector<2x96xf32>
    %215 = vector.extract_strided_slice %214 {offsets = [0, 0], sizes = [2, 32], strides = [1, 1]} : vector<2x96xf32> to vector<2x32xf32>
    %216 = vector.extract_strided_slice %212 {offsets = [0, 0], sizes = [2, 32], strides = [1, 1]} : vector<2x96xf32> to vector<2x32xf32>
    %217 = arith.addf %215, %216 : vector<2x32xf32>
    %218 = arith.negf %217 : vector<2x32xf32>
    %219 = math.exp %218 : vector<2x32xf32>
    %cst_63 = arith.constant 1.000000e+00 : f32
    %220 = vector.broadcast %cst_63 : f32 to vector<2x32xf32>
    %221 = arith.addf %220, %219 : vector<2x32xf32>
    %222 = arith.divf %220, %221 : vector<2x32xf32>
    %223 = vector.extract_strided_slice %214 {offsets = [0, 32], sizes = [2, 32], strides = [1, 1]} : vector<2x96xf32> to vector<2x32xf32>
    %224 = vector.extract_strided_slice %212 {offsets = [0, 32], sizes = [2, 32], strides = [1, 1]} : vector<2x96xf32> to vector<2x32xf32>
    %225 = arith.addf %223, %224 : vector<2x32xf32>
    %226 = arith.negf %225 : vector<2x32xf32>
    %227 = math.exp %226 : vector<2x32xf32>
    %cst_64 = arith.constant 1.000000e+00 : f32
    %228 = vector.broadcast %cst_64 : f32 to vector<2x32xf32>
    %229 = arith.addf %228, %227 : vector<2x32xf32>
    %230 = arith.divf %228, %229 : vector<2x32xf32>
    %231 = vector.extract_strided_slice %214 {offsets = [0, 64], sizes = [2, 32], strides = [1, 1]} : vector<2x96xf32> to vector<2x32xf32>
    %232 = vector.extract_strided_slice %212 {offsets = [0, 64], sizes = [2, 32], strides = [1, 1]} : vector<2x96xf32> to vector<2x32xf32>
    %233 = arith.mulf %222, %232 : vector<2x32xf32>
    %234 = arith.addf %231, %233 : vector<2x32xf32>
    %235 = math.tanh %234 : vector<2x32xf32>
    %cst_65 = arith.constant 1.000000e+00 : f32
    %236 = vector.broadcast %cst_65 : f32 to vector<2x32xf32>
    %237 = arith.subf %236, %230 : vector<2x32xf32>
    %238 = arith.mulf %237, %235 : vector<2x32xf32>
    %239 = arith.mulf %230, %206 : vector<2x32xf32>
    %240 = arith.addf %238, %239 : vector<2x32xf32>
    %c6_66 = arith.constant 6 : index
    %c0_67 = arith.constant 0 : index
    %c0_68 = arith.constant 0 : index
    %241 = vector.load %arg4[%c6_66, %c0_67, %c0_68] : memref<16x2x32xf32, #tpu.memory_space<vmem>>, vector<1x2x32xf32>
    %242 = vector.shape_cast %241 : vector<1x2x32xf32> to vector<2x32xf32>
    %243 = vector.shape_cast %240 : vector<2x32xf32> to vector<1x2x32xf32>
    tpu.vector_store %arg4[%c6_66, %c0_67, %c0_68], %243 {strides = array<i32>} : memref<16x2x32xf32, #tpu.memory_space<vmem>>, vector<1x2x32xf32>,
    %cst_69 = arith.constant dense<0.000000e+00> : vector<2x96xf32>
    %244 = tpu.matmul %240, %3, %cst_69 {dimension_numbers = #tpu.dot_dimension_numbers<[1], [0], [0], [1], [0, 0, 1, 1], [], []>} : vector<2x32xf32>, vector<32x96xf32>, vector<2x96xf32> -> vector<2x96xf32>
    %245 = vector.broadcast %4 : vector<1x96xf32> to vector<2x96xf32>
    %246 = arith.addf %244, %245 : vector<2x96xf32>
    %c7 = arith.constant 7 : index
    %c0_70 = arith.constant 0 : index
    %c0_71 = arith.constant 0 : index
    %247 = vector.load %arg1[%c7, %c0_70, %c0_71] : memref<16x2x96xf32, #tpu.memory_space<vmem>>, vector<1x2x96xf32>
    %248 = vector.shape_cast %247 : vector<1x2x96xf32> to vector<2x96xf32>
    %249 = vector.extract_strided_slice %248 {offsets = [0, 0], sizes = [2, 32], strides = [1, 1]} : vector<2x96xf32> to vector<2x32xf32>
    %250 = vector.extract_strided_slice %246 {offsets = [0, 0], sizes = [2, 32], strides = [1, 1]} : vector<2x96xf32> to vector<2x32xf32>
    %251 = arith.addf %249, %250 : vector<2x32xf32>
    %252 = arith.negf %251 : vector<2x32xf32>
    %253 = math.exp %252 : vector<2x32xf32>
    %cst_72 = arith.constant 1.000000e+00 : f32
    %254 = vector.broadcast %cst_72 : f32 to vector<2x32xf32>
    %255 = arith.addf %254, %253 : vector<2x32xf32>
    %256 = arith.divf %254, %255 : vector<2x32xf32>
    %257 = vector.extract_strided_slice %248 {offsets = [0, 32], sizes = [2, 32], strides = [1, 1]} : vector<2x96xf32> to vector<2x32xf32>
    %258 = vector.extract_strided_slice %246 {offsets = [0, 32], sizes = [2, 32], strides = [1, 1]} : vector<2x96xf32> to vector<2x32xf32>
    %259 = arith.addf %257, %258 : vector<2x32xf32>
    %260 = arith.negf %259 : vector<2x32xf32>
    %261 = math.exp %260 : vector<2x32xf32>
    %cst_73 = arith.constant 1.000000e+00 : f32
    %262 = vector.broadcast %cst_73 : f32 to vector<2x32xf32>
    %263 = arith.addf %262, %261 : vector<2x32xf32>
    %264 = arith.divf %262, %263 : vector<2x32xf32>
    %265 = vector.extract_strided_slice %248 {offsets = [0, 64], sizes = [2, 32], strides = [1, 1]} : vector<2x96xf32> to vector<2x32xf32>
    %266 = vector.extract_strided_slice %246 {offsets = [0, 64], sizes = [2, 32], strides = [1, 1]} : vector<2x96xf32> to vector<2x32xf32>
    %267 = arith.mulf %256, %266 : vector<2x32xf32>
    %268 = arith.addf %265, %267 : vector<2x32xf32>
    %269 = math.tanh %268 : vector<2x32xf32>
    %cst_74 = arith.constant 1.000000e+00 : f32
    %270 = vector.broadcast %cst_74 : f32 to vector<2x32xf32>
    %271 = arith.subf %270, %264 : vector<2x32xf32>
    %272 = arith.mulf %271, %269 : vector<2x32xf32>
    %273 = arith.mulf %264, %240 : vector<2x32xf32>
    %274 = arith.addf %272, %273 : vector<2x32xf32>
    %c7_75 = arith.constant 7 : index
    %c0_76 = arith.constant 0 : index
    %c0_77 = arith.constant 0 : index
    %275 = vector.load %arg4[%c7_75, %c0_76, %c0_77] : memref<16x2x32xf32, #tpu.memory_space<vmem>>, vector<1x2x32xf32>
    %276 = vector.shape_cast %275 : vector<1x2x32xf32> to vector<2x32xf32>
    %277 = vector.shape_cast %274 : vector<2x32xf32> to vector<1x2x32xf32>
    tpu.vector_store %arg4[%c7_75, %c0_76, %c0_77], %277 {strides = array<i32>} : memref<16x2x32xf32, #tpu.memory_space<vmem>>, vector<1x2x32xf32>,
    %cst_78 = arith.constant dense<0.000000e+00> : vector<2x96xf32>
    %278 = tpu.matmul %274, %3, %cst_78 {dimension_numbers = #tpu.dot_dimension_numbers<[1], [0], [0], [1], [0, 0, 1, 1], [], []>} : vector<2x32xf32>, vector<32x96xf32>, vector<2x96xf32> -> vector<2x96xf32>
    %279 = vector.broadcast %4 : vector<1x96xf32> to vector<2x96xf32>
    %280 = arith.addf %278, %279 : vector<2x96xf32>
    %c8 = arith.constant 8 : index
    %c0_79 = arith.constant 0 : index
    %c0_80 = arith.constant 0 : index
    %281 = vector.load %arg1[%c8, %c0_79, %c0_80] : memref<16x2x96xf32, #tpu.memory_space<vmem>>, vector<1x2x96xf32>
    %282 = vector.shape_cast %281 : vector<1x2x96xf32> to vector<2x96xf32>
    %283 = vector.extract_strided_slice %282 {offsets = [0, 0], sizes = [2, 32], strides = [1, 1]} : vector<2x96xf32> to vector<2x32xf32>
    %284 = vector.extract_strided_slice %280 {offsets = [0, 0], sizes = [2, 32], strides = [1, 1]} : vector<2x96xf32> to vector<2x32xf32>
    %285 = arith.addf %283, %284 : vector<2x32xf32>
    %286 = arith.negf %285 : vector<2x32xf32>
    %287 = math.exp %286 : vector<2x32xf32>
    %cst_81 = arith.constant 1.000000e+00 : f32
    %288 = vector.broadcast %cst_81 : f32 to vector<2x32xf32>
    %289 = arith.addf %288, %287 : vector<2x32xf32>
    %290 = arith.divf %288, %289 : vector<2x32xf32>
    %291 = vector.extract_strided_slice %282 {offsets = [0, 32], sizes = [2, 32], strides = [1, 1]} : vector<2x96xf32> to vector<2x32xf32>
    %292 = vector.extract_strided_slice %280 {offsets = [0, 32], sizes = [2, 32], strides = [1, 1]} : vector<2x96xf32> to vector<2x32xf32>
    %293 = arith.addf %291, %292 : vector<2x32xf32>
    %294 = arith.negf %293 : vector<2x32xf32>
    %295 = math.exp %294 : vector<2x32xf32>
    %cst_82 = arith.constant 1.000000e+00 : f32
    %296 = vector.broadcast %cst_82 : f32 to vector<2x32xf32>
    %297 = arith.addf %296, %295 : vector<2x32xf32>
    %298 = arith.divf %296, %297 : vector<2x32xf32>
    %299 = vector.extract_strided_slice %282 {offsets = [0, 64], sizes = [2, 32], strides = [1, 1]} : vector<2x96xf32> to vector<2x32xf32>
    %300 = vector.extract_strided_slice %280 {offsets = [0, 64], sizes = [2, 32], strides = [1, 1]} : vector<2x96xf32> to vector<2x32xf32>
    %301 = arith.mulf %290, %300 : vector<2x32xf32>
    %302 = arith.addf %299, %301 : vector<2x32xf32>
    %303 = math.tanh %302 : vector<2x32xf32>
    %cst_83 = arith.constant 1.000000e+00 : f32
    %304 = vector.broadcast %cst_83 : f32 to vector<2x32xf32>
    %305 = arith.subf %304, %298 : vector<2x32xf32>
    %306 = arith.mulf %305, %303 : vector<2x32xf32>
    %307 = arith.mulf %298, %274 : vector<2x32xf32>
    %308 = arith.addf %306, %307 : vector<2x32xf32>
    %c8_84 = arith.constant 8 : index
    %c0_85 = arith.constant 0 : index
    %c0_86 = arith.constant 0 : index
    %309 = vector.load %arg4[%c8_84, %c0_85, %c0_86] : memref<16x2x32xf32, #tpu.memory_space<vmem>>, vector<1x2x32xf32>
    %310 = vector.shape_cast %309 : vector<1x2x32xf32> to vector<2x32xf32>
    %311 = vector.shape_cast %308 : vector<2x32xf32> to vector<1x2x32xf32>
    tpu.vector_store %arg4[%c8_84, %c0_85, %c0_86], %311 {strides = array<i32>} : memref<16x2x32xf32, #tpu.memory_space<vmem>>, vector<1x2x32xf32>,
    %cst_87 = arith.constant dense<0.000000e+00> : vector<2x96xf32>
    %312 = tpu.matmul %308, %3, %cst_87 {dimension_numbers = #tpu.dot_dimension_numbers<[1], [0], [0], [1], [0, 0, 1, 1], [], []>} : vector<2x32xf32>, vector<32x96xf32>, vector<2x96xf32> -> vector<2x96xf32>
    %313 = vector.broadcast %4 : vector<1x96xf32> to vector<2x96xf32>
    %314 = arith.addf %312, %313 : vector<2x96xf32>
    %c9 = arith.constant 9 : index
    %c0_88 = arith.constant 0 : index
    %c0_89 = arith.constant 0 : index
    %315 = vector.load %arg1[%c9, %c0_88, %c0_89] : memref<16x2x96xf32, #tpu.memory_space<vmem>>, vector<1x2x96xf32>
    %316 = vector.shape_cast %315 : vector<1x2x96xf32> to vector<2x96xf32>
    %317 = vector.extract_strided_slice %316 {offsets = [0, 0], sizes = [2, 32], strides = [1, 1]} : vector<2x96xf32> to vector<2x32xf32>
    %318 = vector.extract_strided_slice %314 {offsets = [0, 0], sizes = [2, 32], strides = [1, 1]} : vector<2x96xf32> to vector<2x32xf32>
    %319 = arith.addf %317, %318 : vector<2x32xf32>
    %320 = arith.negf %319 : vector<2x32xf32>
    %321 = math.exp %320 : vector<2x32xf32>
    %cst_90 = arith.constant 1.000000e+00 : f32
    %322 = vector.broadcast %cst_90 : f32 to vector<2x32xf32>
    %323 = arith.addf %322, %321 : vector<2x32xf32>
    %324 = arith.divf %322, %323 : vector<2x32xf32>
    %325 = vector.extract_strided_slice %316 {offsets = [0, 32], sizes = [2, 32], strides = [1, 1]} : vector<2x96xf32> to vector<2x32xf32>
    %326 = vector.extract_strided_slice %314 {offsets = [0, 32], sizes = [2, 32], strides = [1, 1]} : vector<2x96xf32> to vector<2x32xf32>
    %327 = arith.addf %325, %326 : vector<2x32xf32>
    %328 = arith.negf %327 : vector<2x32xf32>
    %329 = math.exp %328 : vector<2x32xf32>
    %cst_91 = arith.constant 1.000000e+00 : f32
    %330 = vector.broadcast %cst_91 : f32 to vector<2x32xf32>
    %331 = arith.addf %330, %329 : vector<2x32xf32>
    %332 = arith.divf %330, %331 : vector<2x32xf32>
    %333 = vector.extract_strided_slice %316 {offsets = [0, 64], sizes = [2, 32], strides = [1, 1]} : vector<2x96xf32> to vector<2x32xf32>
    %334 = vector.extract_strided_slice %314 {offsets = [0, 64], sizes = [2, 32], strides = [1, 1]} : vector<2x96xf32> to vector<2x32xf32>
    %335 = arith.mulf %324, %334 : vector<2x32xf32>
    %336 = arith.addf %333, %335 : vector<2x32xf32>
    %337 = math.tanh %336 : vector<2x32xf32>
    %cst_92 = arith.constant 1.000000e+00 : f32
    %338 = vector.broadcast %cst_92 : f32 to vector<2x32xf32>
    %339 = arith.subf %338, %332 : vector<2x32xf32>
    %340 = arith.mulf %339, %337 : vector<2x32xf32>
    %341 = arith.mulf %332, %308 : vector<2x32xf32>
    %342 = arith.addf %340, %341 : vector<2x32xf32>
    %c9_93 = arith.constant 9 : index
    %c0_94 = arith.constant 0 : index
    %c0_95 = arith.constant 0 : index
    %343 = vector.load %arg4[%c9_93, %c0_94, %c0_95] : memref<16x2x32xf32, #tpu.memory_space<vmem>>, vector<1x2x32xf32>
    %344 = vector.shape_cast %343 : vector<1x2x32xf32> to vector<2x32xf32>
    %345 = vector.shape_cast %342 : vector<2x32xf32> to vector<1x2x32xf32>
    tpu.vector_store %arg4[%c9_93, %c0_94, %c0_95], %345 {strides = array<i32>} : memref<16x2x32xf32, #tpu.memory_space<vmem>>, vector<1x2x32xf32>,
    %cst_96 = arith.constant dense<0.000000e+00> : vector<2x96xf32>
    %346 = tpu.matmul %342, %3, %cst_96 {dimension_numbers = #tpu.dot_dimension_numbers<[1], [0], [0], [1], [0, 0, 1, 1], [], []>} : vector<2x32xf32>, vector<32x96xf32>, vector<2x96xf32> -> vector<2x96xf32>
    %347 = vector.broadcast %4 : vector<1x96xf32> to vector<2x96xf32>
    %348 = arith.addf %346, %347 : vector<2x96xf32>
    %c10 = arith.constant 10 : index
    %c0_97 = arith.constant 0 : index
    %c0_98 = arith.constant 0 : index
    %349 = vector.load %arg1[%c10, %c0_97, %c0_98] : memref<16x2x96xf32, #tpu.memory_space<vmem>>, vector<1x2x96xf32>
    %350 = vector.shape_cast %349 : vector<1x2x96xf32> to vector<2x96xf32>
    %351 = vector.extract_strided_slice %350 {offsets = [0, 0], sizes = [2, 32], strides = [1, 1]} : vector<2x96xf32> to vector<2x32xf32>
    %352 = vector.extract_strided_slice %348 {offsets = [0, 0], sizes = [2, 32], strides = [1, 1]} : vector<2x96xf32> to vector<2x32xf32>
    %353 = arith.addf %351, %352 : vector<2x32xf32>
    %354 = arith.negf %353 : vector<2x32xf32>
    %355 = math.exp %354 : vector<2x32xf32>
    %cst_99 = arith.constant 1.000000e+00 : f32
    %356 = vector.broadcast %cst_99 : f32 to vector<2x32xf32>
    %357 = arith.addf %356, %355 : vector<2x32xf32>
    %358 = arith.divf %356, %357 : vector<2x32xf32>
    %359 = vector.extract_strided_slice %350 {offsets = [0, 32], sizes = [2, 32], strides = [1, 1]} : vector<2x96xf32> to vector<2x32xf32>
    %360 = vector.extract_strided_slice %348 {offsets = [0, 32], sizes = [2, 32], strides = [1, 1]} : vector<2x96xf32> to vector<2x32xf32>
    %361 = arith.addf %359, %360 : vector<2x32xf32>
    %362 = arith.negf %361 : vector<2x32xf32>
    %363 = math.exp %362 : vector<2x32xf32>
    %cst_100 = arith.constant 1.000000e+00 : f32
    %364 = vector.broadcast %cst_100 : f32 to vector<2x32xf32>
    %365 = arith.addf %364, %363 : vector<2x32xf32>
    %366 = arith.divf %364, %365 : vector<2x32xf32>
    %367 = vector.extract_strided_slice %350 {offsets = [0, 64], sizes = [2, 32], strides = [1, 1]} : vector<2x96xf32> to vector<2x32xf32>
    %368 = vector.extract_strided_slice %348 {offsets = [0, 64], sizes = [2, 32], strides = [1, 1]} : vector<2x96xf32> to vector<2x32xf32>
    %369 = arith.mulf %358, %368 : vector<2x32xf32>
    %370 = arith.addf %367, %369 : vector<2x32xf32>
    %371 = math.tanh %370 : vector<2x32xf32>
    %cst_101 = arith.constant 1.000000e+00 : f32
    %372 = vector.broadcast %cst_101 : f32 to vector<2x32xf32>
    %373 = arith.subf %372, %366 : vector<2x32xf32>
    %374 = arith.mulf %373, %371 : vector<2x32xf32>
    %375 = arith.mulf %366, %342 : vector<2x32xf32>
    %376 = arith.addf %374, %375 : vector<2x32xf32>
    %c10_102 = arith.constant 10 : index
    %c0_103 = arith.constant 0 : index
    %c0_104 = arith.constant 0 : index
    %377 = vector.load %arg4[%c10_102, %c0_103, %c0_104] : memref<16x2x32xf32, #tpu.memory_space<vmem>>, vector<1x2x32xf32>
    %378 = vector.shape_cast %377 : vector<1x2x32xf32> to vector<2x32xf32>
    %379 = vector.shape_cast %376 : vector<2x32xf32> to vector<1x2x32xf32>
    tpu.vector_store %arg4[%c10_102, %c0_103, %c0_104], %379 {strides = array<i32>} : memref<16x2x32xf32, #tpu.memory_space<vmem>>, vector<1x2x32xf32>,
    %cst_105 = arith.constant dense<0.000000e+00> : vector<2x96xf32>
    %380 = tpu.matmul %376, %3, %cst_105 {dimension_numbers = #tpu.dot_dimension_numbers<[1], [0], [0], [1], [0, 0, 1, 1], [], []>} : vector<2x32xf32>, vector<32x96xf32>, vector<2x96xf32> -> vector<2x96xf32>
    %381 = vector.broadcast %4 : vector<1x96xf32> to vector<2x96xf32>
    %382 = arith.addf %380, %381 : vector<2x96xf32>
    %c11 = arith.constant 11 : index
    %c0_106 = arith.constant 0 : index
    %c0_107 = arith.constant 0 : index
    %383 = vector.load %arg1[%c11, %c0_106, %c0_107] : memref<16x2x96xf32, #tpu.memory_space<vmem>>, vector<1x2x96xf32>
    %384 = vector.shape_cast %383 : vector<1x2x96xf32> to vector<2x96xf32>
    %385 = vector.extract_strided_slice %384 {offsets = [0, 0], sizes = [2, 32], strides = [1, 1]} : vector<2x96xf32> to vector<2x32xf32>
    %386 = vector.extract_strided_slice %382 {offsets = [0, 0], sizes = [2, 32], strides = [1, 1]} : vector<2x96xf32> to vector<2x32xf32>
    %387 = arith.addf %385, %386 : vector<2x32xf32>
    %388 = arith.negf %387 : vector<2x32xf32>
    %389 = math.exp %388 : vector<2x32xf32>
    %cst_108 = arith.constant 1.000000e+00 : f32
    %390 = vector.broadcast %cst_108 : f32 to vector<2x32xf32>
    %391 = arith.addf %390, %389 : vector<2x32xf32>
    %392 = arith.divf %390, %391 : vector<2x32xf32>
    %393 = vector.extract_strided_slice %384 {offsets = [0, 32], sizes = [2, 32], strides = [1, 1]} : vector<2x96xf32> to vector<2x32xf32>
    %394 = vector.extract_strided_slice %382 {offsets = [0, 32], sizes = [2, 32], strides = [1, 1]} : vector<2x96xf32> to vector<2x32xf32>
    %395 = arith.addf %393, %394 : vector<2x32xf32>
    %396 = arith.negf %395 : vector<2x32xf32>
    %397 = math.exp %396 : vector<2x32xf32>
    %cst_109 = arith.constant 1.000000e+00 : f32
    %398 = vector.broadcast %cst_109 : f32 to vector<2x32xf32>
    %399 = arith.addf %398, %397 : vector<2x32xf32>
    %400 = arith.divf %398, %399 : vector<2x32xf32>
    %401 = vector.extract_strided_slice %384 {offsets = [0, 64], sizes = [2, 32], strides = [1, 1]} : vector<2x96xf32> to vector<2x32xf32>
    %402 = vector.extract_strided_slice %382 {offsets = [0, 64], sizes = [2, 32], strides = [1, 1]} : vector<2x96xf32> to vector<2x32xf32>
    %403 = arith.mulf %392, %402 : vector<2x32xf32>
    %404 = arith.addf %401, %403 : vector<2x32xf32>
    %405 = math.tanh %404 : vector<2x32xf32>
    %cst_110 = arith.constant 1.000000e+00 : f32
    %406 = vector.broadcast %cst_110 : f32 to vector<2x32xf32>
    %407 = arith.subf %406, %400 : vector<2x32xf32>
    %408 = arith.mulf %407, %405 : vector<2x32xf32>
    %409 = arith.mulf %400, %376 : vector<2x32xf32>
    %410 = arith.addf %408, %409 : vector<2x32xf32>
    %c11_111 = arith.constant 11 : index
    %c0_112 = arith.constant 0 : index
    %c0_113 = arith.constant 0 : index
    %411 = vector.load %arg4[%c11_111, %c0_112, %c0_113] : memref<16x2x32xf32, #tpu.memory_space<vmem>>, vector<1x2x32xf32>
    %412 = vector.shape_cast %411 : vector<1x2x32xf32> to vector<2x32xf32>
    %413 = vector.shape_cast %410 : vector<2x32xf32> to vector<1x2x32xf32>
    tpu.vector_store %arg4[%c11_111, %c0_112, %c0_113], %413 {strides = array<i32>} : memref<16x2x32xf32, #tpu.memory_space<vmem>>, vector<1x2x32xf32>,
    %cst_114 = arith.constant dense<0.000000e+00> : vector<2x96xf32>
    %414 = tpu.matmul %410, %3, %cst_114 {dimension_numbers = #tpu.dot_dimension_numbers<[1], [0], [0], [1], [0, 0, 1, 1], [], []>} : vector<2x32xf32>, vector<32x96xf32>, vector<2x96xf32> -> vector<2x96xf32>
    %415 = vector.broadcast %4 : vector<1x96xf32> to vector<2x96xf32>
    %416 = arith.addf %414, %415 : vector<2x96xf32>
    %c12 = arith.constant 12 : index
    %c0_115 = arith.constant 0 : index
    %c0_116 = arith.constant 0 : index
    %417 = vector.load %arg1[%c12, %c0_115, %c0_116] : memref<16x2x96xf32, #tpu.memory_space<vmem>>, vector<1x2x96xf32>
    %418 = vector.shape_cast %417 : vector<1x2x96xf32> to vector<2x96xf32>
    %419 = vector.extract_strided_slice %418 {offsets = [0, 0], sizes = [2, 32], strides = [1, 1]} : vector<2x96xf32> to vector<2x32xf32>
    %420 = vector.extract_strided_slice %416 {offsets = [0, 0], sizes = [2, 32], strides = [1, 1]} : vector<2x96xf32> to vector<2x32xf32>
    %421 = arith.addf %419, %420 : vector<2x32xf32>
    %422 = arith.negf %421 : vector<2x32xf32>
    %423 = math.exp %422 : vector<2x32xf32>
    %cst_117 = arith.constant 1.000000e+00 : f32
    %424 = vector.broadcast %cst_117 : f32 to vector<2x32xf32>
    %425 = arith.addf %424, %423 : vector<2x32xf32>
    %426 = arith.divf %424, %425 : vector<2x32xf32>
    %427 = vector.extract_strided_slice %418 {offsets = [0, 32], sizes = [2, 32], strides = [1, 1]} : vector<2x96xf32> to vector<2x32xf32>
    %428 = vector.extract_strided_slice %416 {offsets = [0, 32], sizes = [2, 32], strides = [1, 1]} : vector<2x96xf32> to vector<2x32xf32>
    %429 = arith.addf %427, %428 : vector<2x32xf32>
    %430 = arith.negf %429 : vector<2x32xf32>
    %431 = math.exp %430 : vector<2x32xf32>
    %cst_118 = arith.constant 1.000000e+00 : f32
    %432 = vector.broadcast %cst_118 : f32 to vector<2x32xf32>
    %433 = arith.addf %432, %431 : vector<2x32xf32>
    %434 = arith.divf %432, %433 : vector<2x32xf32>
    %435 = vector.extract_strided_slice %418 {offsets = [0, 64], sizes = [2, 32], strides = [1, 1]} : vector<2x96xf32> to vector<2x32xf32>
    %436 = vector.extract_strided_slice %416 {offsets = [0, 64], sizes = [2, 32], strides = [1, 1]} : vector<2x96xf32> to vector<2x32xf32>
    %437 = arith.mulf %426, %436 : vector<2x32xf32>
    %438 = arith.addf %435, %437 : vector<2x32xf32>
    %439 = math.tanh %438 : vector<2x32xf32>
    %cst_119 = arith.constant 1.000000e+00 : f32
    %440 = vector.broadcast %cst_119 : f32 to vector<2x32xf32>
    %441 = arith.subf %440, %434 : vector<2x32xf32>
    %442 = arith.mulf %441, %439 : vector<2x32xf32>
    %443 = arith.mulf %434, %410 : vector<2x32xf32>
    %444 = arith.addf %442, %443 : vector<2x32xf32>
    %c12_120 = arith.constant 12 : index
    %c0_121 = arith.constant 0 : index
    %c0_122 = arith.constant 0 : index
    %445 = vector.load %arg4[%c12_120, %c0_121, %c0_122] : memref<16x2x32xf32, #tpu.memory_space<vmem>>, vector<1x2x32xf32>
    %446 = vector.shape_cast %445 : vector<1x2x32xf32> to vector<2x32xf32>
    %447 = vector.shape_cast %444 : vector<2x32xf32> to vector<1x2x32xf32>
    tpu.vector_store %arg4[%c12_120, %c0_121, %c0_122], %447 {strides = array<i32>} : memref<16x2x32xf32, #tpu.memory_space<vmem>>, vector<1x2x32xf32>,
    %cst_123 = arith.constant dense<0.000000e+00> : vector<2x96xf32>
    %448 = tpu.matmul %444, %3, %cst_123 {dimension_numbers = #tpu.dot_dimension_numbers<[1], [0], [0], [1], [0, 0, 1, 1], [], []>} : vector<2x32xf32>, vector<32x96xf32>, vector<2x96xf32> -> vector<2x96xf32>
    %449 = vector.broadcast %4 : vector<1x96xf32> to vector<2x96xf32>
    %450 = arith.addf %448, %449 : vector<2x96xf32>
    %c13 = arith.constant 13 : index
    %c0_124 = arith.constant 0 : index
    %c0_125 = arith.constant 0 : index
    %451 = vector.load %arg1[%c13, %c0_124, %c0_125] : memref<16x2x96xf32, #tpu.memory_space<vmem>>, vector<1x2x96xf32>
    %452 = vector.shape_cast %451 : vector<1x2x96xf32> to vector<2x96xf32>
    %453 = vector.extract_strided_slice %452 {offsets = [0, 0], sizes = [2, 32], strides = [1, 1]} : vector<2x96xf32> to vector<2x32xf32>
    %454 = vector.extract_strided_slice %450 {offsets = [0, 0], sizes = [2, 32], strides = [1, 1]} : vector<2x96xf32> to vector<2x32xf32>
    %455 = arith.addf %453, %454 : vector<2x32xf32>
    %456 = arith.negf %455 : vector<2x32xf32>
    %457 = math.exp %456 : vector<2x32xf32>
    %cst_126 = arith.constant 1.000000e+00 : f32
    %458 = vector.broadcast %cst_126 : f32 to vector<2x32xf32>
    %459 = arith.addf %458, %457 : vector<2x32xf32>
    %460 = arith.divf %458, %459 : vector<2x32xf32>
    %461 = vector.extract_strided_slice %452 {offsets = [0, 32], sizes = [2, 32], strides = [1, 1]} : vector<2x96xf32> to vector<2x32xf32>
    %462 = vector.extract_strided_slice %450 {offsets = [0, 32], sizes = [2, 32], strides = [1, 1]} : vector<2x96xf32> to vector<2x32xf32>
    %463 = arith.addf %461, %462 : vector<2x32xf32>
    %464 = arith.negf %463 : vector<2x32xf32>
    %465 = math.exp %464 : vector<2x32xf32>
    %cst_127 = arith.constant 1.000000e+00 : f32
    %466 = vector.broadcast %cst_127 : f32 to vector<2x32xf32>
    %467 = arith.addf %466, %465 : vector<2x32xf32>
    %468 = arith.divf %466, %467 : vector<2x32xf32>
    %469 = vector.extract_strided_slice %452 {offsets = [0, 64], sizes = [2, 32], strides = [1, 1]} : vector<2x96xf32> to vector<2x32xf32>
    %470 = vector.extract_strided_slice %450 {offsets = [0, 64], sizes = [2, 32], strides = [1, 1]} : vector<2x96xf32> to vector<2x32xf32>
    %471 = arith.mulf %460, %470 : vector<2x32xf32>
    %472 = arith.addf %469, %471 : vector<2x32xf32>
    %473 = math.tanh %472 : vector<2x32xf32>
    %cst_128 = arith.constant 1.000000e+00 : f32
    %474 = vector.broadcast %cst_128 : f32 to vector<2x32xf32>
    %475 = arith.subf %474, %468 : vector<2x32xf32>
    %476 = arith.mulf %475, %473 : vector<2x32xf32>
    %477 = arith.mulf %468, %444 : vector<2x32xf32>
    %478 = arith.addf %476, %477 : vector<2x32xf32>
    %c13_129 = arith.constant 13 : index
    %c0_130 = arith.constant 0 : index
    %c0_131 = arith.constant 0 : index
    %479 = vector.load %arg4[%c13_129, %c0_130, %c0_131] : memref<16x2x32xf32, #tpu.memory_space<vmem>>, vector<1x2x32xf32>
    %480 = vector.shape_cast %479 : vector<1x2x32xf32> to vector<2x32xf32>
    %481 = vector.shape_cast %478 : vector<2x32xf32> to vector<1x2x32xf32>
    tpu.vector_store %arg4[%c13_129, %c0_130, %c0_131], %481 {strides = array<i32>} : memref<16x2x32xf32, #tpu.memory_space<vmem>>, vector<1x2x32xf32>,
    %cst_132 = arith.constant dense<0.000000e+00> : vector<2x96xf32>
    %482 = tpu.matmul %478, %3, %cst_132 {dimension_numbers = #tpu.dot_dimension_numbers<[1], [0], [0], [1], [0, 0, 1, 1], [], []>} : vector<2x32xf32>, vector<32x96xf32>, vector<2x96xf32> -> vector<2x96xf32>
    %483 = vector.broadcast %4 : vector<1x96xf32> to vector<2x96xf32>
    %484 = arith.addf %482, %483 : vector<2x96xf32>
    %c14 = arith.constant 14 : index
    %c0_133 = arith.constant 0 : index
    %c0_134 = arith.constant 0 : index
    %485 = vector.load %arg1[%c14, %c0_133, %c0_134] : memref<16x2x96xf32, #tpu.memory_space<vmem>>, vector<1x2x96xf32>
    %486 = vector.shape_cast %485 : vector<1x2x96xf32> to vector<2x96xf32>
    %487 = vector.extract_strided_slice %486 {offsets = [0, 0], sizes = [2, 32], strides = [1, 1]} : vector<2x96xf32> to vector<2x32xf32>
    %488 = vector.extract_strided_slice %484 {offsets = [0, 0], sizes = [2, 32], strides = [1, 1]} : vector<2x96xf32> to vector<2x32xf32>
    %489 = arith.addf %487, %488 : vector<2x32xf32>
    %490 = arith.negf %489 : vector<2x32xf32>
    %491 = math.exp %490 : vector<2x32xf32>
    %cst_135 = arith.constant 1.000000e+00 : f32
    %492 = vector.broadcast %cst_135 : f32 to vector<2x32xf32>
    %493 = arith.addf %492, %491 : vector<2x32xf32>
    %494 = arith.divf %492, %493 : vector<2x32xf32>
    %495 = vector.extract_strided_slice %486 {offsets = [0, 32], sizes = [2, 32], strides = [1, 1]} : vector<2x96xf32> to vector<2x32xf32>
    %496 = vector.extract_strided_slice %484 {offsets = [0, 32], sizes = [2, 32], strides = [1, 1]} : vector<2x96xf32> to vector<2x32xf32>
    %497 = arith.addf %495, %496 : vector<2x32xf32>
    %498 = arith.negf %497 : vector<2x32xf32>
    %499 = math.exp %498 : vector<2x32xf32>
    %cst_136 = arith.constant 1.000000e+00 : f32
    %500 = vector.broadcast %cst_136 : f32 to vector<2x32xf32>
    %501 = arith.addf %500, %499 : vector<2x32xf32>
    %502 = arith.divf %500, %501 : vector<2x32xf32>
    %503 = vector.extract_strided_slice %486 {offsets = [0, 64], sizes = [2, 32], strides = [1, 1]} : vector<2x96xf32> to vector<2x32xf32>
    %504 = vector.extract_strided_slice %484 {offsets = [0, 64], sizes = [2, 32], strides = [1, 1]} : vector<2x96xf32> to vector<2x32xf32>
    %505 = arith.mulf %494, %504 : vector<2x32xf32>
    %506 = arith.addf %503, %505 : vector<2x32xf32>
    %507 = math.tanh %506 : vector<2x32xf32>
    %cst_137 = arith.constant 1.000000e+00 : f32
    %508 = vector.broadcast %cst_137 : f32 to vector<2x32xf32>
    %509 = arith.subf %508, %502 : vector<2x32xf32>
    %510 = arith.mulf %509, %507 : vector<2x32xf32>
    %511 = arith.mulf %502, %478 : vector<2x32xf32>
    %512 = arith.addf %510, %511 : vector<2x32xf32>
    %c14_138 = arith.constant 14 : index
    %c0_139 = arith.constant 0 : index
    %c0_140 = arith.constant 0 : index
    %513 = vector.load %arg4[%c14_138, %c0_139, %c0_140] : memref<16x2x32xf32, #tpu.memory_space<vmem>>, vector<1x2x32xf32>
    %514 = vector.shape_cast %513 : vector<1x2x32xf32> to vector<2x32xf32>
    %515 = vector.shape_cast %512 : vector<2x32xf32> to vector<1x2x32xf32>
    tpu.vector_store %arg4[%c14_138, %c0_139, %c0_140], %515 {strides = array<i32>} : memref<16x2x32xf32, #tpu.memory_space<vmem>>, vector<1x2x32xf32>,
    %cst_141 = arith.constant dense<0.000000e+00> : vector<2x96xf32>
    %516 = tpu.matmul %512, %3, %cst_141 {dimension_numbers = #tpu.dot_dimension_numbers<[1], [0], [0], [1], [0, 0, 1, 1], [], []>} : vector<2x32xf32>, vector<32x96xf32>, vector<2x96xf32> -> vector<2x96xf32>
    %517 = vector.broadcast %4 : vector<1x96xf32> to vector<2x96xf32>
    %518 = arith.addf %516, %517 : vector<2x96xf32>
    %c15 = arith.constant 15 : index
    %c0_142 = arith.constant 0 : index
    %c0_143 = arith.constant 0 : index
    %519 = vector.load %arg1[%c15, %c0_142, %c0_143] : memref<16x2x96xf32, #tpu.memory_space<vmem>>, vector<1x2x96xf32>
    %520 = vector.shape_cast %519 : vector<1x2x96xf32> to vector<2x96xf32>
    %521 = vector.extract_strided_slice %520 {offsets = [0, 0], sizes = [2, 32], strides = [1, 1]} : vector<2x96xf32> to vector<2x32xf32>
    %522 = vector.extract_strided_slice %518 {offsets = [0, 0], sizes = [2, 32], strides = [1, 1]} : vector<2x96xf32> to vector<2x32xf32>
    %523 = arith.addf %521, %522 : vector<2x32xf32>
    %524 = arith.negf %523 : vector<2x32xf32>
    %525 = math.exp %524 : vector<2x32xf32>
    %cst_144 = arith.constant 1.000000e+00 : f32
    %526 = vector.broadcast %cst_144 : f32 to vector<2x32xf32>
    %527 = arith.addf %526, %525 : vector<2x32xf32>
    %528 = arith.divf %526, %527 : vector<2x32xf32>
    %529 = vector.extract_strided_slice %520 {offsets = [0, 32], sizes = [2, 32], strides = [1, 1]} : vector<2x96xf32> to vector<2x32xf32>
    %530 = vector.extract_strided_slice %518 {offsets = [0, 32], sizes = [2, 32], strides = [1, 1]} : vector<2x96xf32> to vector<2x32xf32>
    %531 = arith.addf %529, %530 : vector<2x32xf32>
    %532 = arith.negf %531 : vector<2x32xf32>
    %533 = math.exp %532 : vector<2x32xf32>
    %cst_145 = arith.constant 1.000000e+00 : f32
    %534 = vector.broadcast %cst_145 : f32 to vector<2x32xf32>
    %535 = arith.addf %534, %533 : vector<2x32xf32>
    %536 = arith.divf %534, %535 : vector<2x32xf32>
    %537 = vector.extract_strided_slice %520 {offsets = [0, 64], sizes = [2, 32], strides = [1, 1]} : vector<2x96xf32> to vector<2x32xf32>
    %538 = vector.extract_strided_slice %518 {offsets = [0, 64], sizes = [2, 32], strides = [1, 1]} : vector<2x96xf32> to vector<2x32xf32>
    %539 = arith.mulf %528, %538 : vector<2x32xf32>
    %540 = arith.addf %537, %539 : vector<2x32xf32>
    %541 = math.tanh %540 : vector<2x32xf32>
    %cst_146 = arith.constant 1.000000e+00 : f32
    %542 = vector.broadcast %cst_146 : f32 to vector<2x32xf32>
    %543 = arith.subf %542, %536 : vector<2x32xf32>
    %544 = arith.mulf %543, %541 : vector<2x32xf32>
    %545 = arith.mulf %536, %512 : vector<2x32xf32>
    %546 = arith.addf %544, %545 : vector<2x32xf32>
    %c15_147 = arith.constant 15 : index
    %c0_148 = arith.constant 0 : index
    %c0_149 = arith.constant 0 : index
    %547 = vector.load %arg4[%c15_147, %c0_148, %c0_149] : memref<16x2x32xf32, #tpu.memory_space<vmem>>, vector<1x2x32xf32>
    %548 = vector.shape_cast %547 : vector<1x2x32xf32> to vector<2x32xf32>
    %549 = vector.shape_cast %546 : vector<2x32xf32> to vector<1x2x32xf32>
    tpu.vector_store %arg4[%c15_147, %c0_148, %c0_149], %549 {strides = array<i32>} : memref<16x2x32xf32, #tpu.memory_space<vmem>>, vector<1x2x32xf32>,
    %c0_150 = arith.constant 0 : index
    %c0_151 = arith.constant 0 : index
    %550 = vector.load %arg5[%c0_150, %c0_151] : memref<2x32xf32, #tpu.memory_space<vmem>>, vector<2x32xf32>
    tpu.vector_store %arg5[%c0_150, %c0_151], %546 {strides = array<i32>} : memref<2x32xf32, #tpu.memory_space<vmem>>, vector<2x32xf32>,
    return
  }
  func.func @transform_0(%arg0: i32) -> (i32, i32, i32) {
    %c0_i32 = arith.constant 0 : i32
    %c0_i32_0 = arith.constant 0 : i32
    %c0_i32_1 = arith.constant 0 : i32
    return %arg0, %c0_i32, %c0_i32_0 : i32, i32, i32
  }
  func.func @transform_1(%arg0: i32) -> (i32, i32) {
    %c0_i32 = arith.constant 0 : i32
    %c0_i32_0 = arith.constant 0 : i32
    %c0_i32_1 = arith.constant 0 : i32
    return %c0_i32, %c0_i32_0 : i32, i32
  }
  func.func @transform_2(%arg0: i32) -> (i32, i32) {
    %c0_i32 = arith.constant 0 : i32
    %c0_i32_0 = arith.constant 0 : i32
    %c0_i32_1 = arith.constant 0 : i32
    return %c0_i32, %c0_i32_0 : i32, i32
  }
  func.func @transform_3(%arg0: i32) -> (i32, i32, i32) {
    %c0_i32 = arith.constant 0 : i32
    %c0_i32_0 = arith.constant 0 : i32
    %c0_i32_1 = arith.constant 0 : i32
    return %arg0, %c0_i32, %c0_i32_0 : i32, i32, i32
  }
}

module attributes {stable_mosaic.version = 11 : i64} {
  func.func @kernel(%arg0: i32, %arg1: memref<48x32xf32, #tpu.memory_space<vmem>>, %arg2: memref<48x8xf32, #tpu.memory_space<vmem>>, %arg3: memref<32x96xf32, #tpu.memory_space<vmem>>, %arg4: memref<8x96xf32, #tpu.memory_space<vmem>>, %arg5: memref<1x96xf32, #tpu.memory_space<vmem>>, %arg6: memref<48x96xf32, #tpu.memory_space<vmem>>) attributes {dimension_semantics = [#tpu.dimension_semantics<parallel>], iteration_bounds = array<i64: 1>, scalar_prefetch = 0 : i64, scratch_operands = 0 : i64, tpu.core_type = #tpu.core_type<tc>, window_params = [{transform_indices = @transform_0, window_bounds = array<i64: 48, 32>}, {transform_indices = @transform_1, window_bounds = array<i64: 48, 8>}, {pipeline_mode = #tpu.pipeline_mode<synchronous>, transform_indices = @transform_2, window_bounds = array<i64: 32, 96>}, {pipeline_mode = #tpu.pipeline_mode<synchronous>, transform_indices = @transform_3, window_bounds = array<i64: 8, 96>}, {pipeline_mode = #tpu.pipeline_mode<synchronous>, transform_indices = @transform_4, window_bounds = array<i64: 1, 96>}, {transform_indices = @transform_5, window_bounds = array<i64: 48, 96>}]} {
    %c0 = arith.constant 0 : index
    %c0_0 = arith.constant 0 : index
    %0 = vector.load %arg5[%c0, %c0_0] : memref<1x96xf32, #tpu.memory_space<vmem>>, vector<1x96xf32>
    %c0_1 = arith.constant 0 : index
    %c0_2 = arith.constant 0 : index
    %1 = vector.load %arg1[%c0_1, %c0_2] : memref<48x32xf32, #tpu.memory_space<vmem>>, vector<48x32xf32>
    %c0_3 = arith.constant 0 : index
    %c0_4 = arith.constant 0 : index
    %2 = vector.load %arg3[%c0_3, %c0_4] : memref<32x96xf32, #tpu.memory_space<vmem>>, vector<32x96xf32>
    %cst = arith.constant dense<0.000000e+00> : vector<48x96xf32>
    %3 = tpu.matmul %1, %2, %cst {dimension_numbers = #tpu.dot_dimension_numbers<[1], [0], [0], [1], [0, 0, 1, 1], [], []>} : vector<48x32xf32>, vector<32x96xf32>, vector<48x96xf32> -> vector<48x96xf32>
    %4 = vector.broadcast %0 : vector<1x96xf32> to vector<48x96xf32>
    %5 = arith.addf %4, %3 : vector<48x96xf32>
    %c0_5 = arith.constant 0 : index
    %c0_6 = arith.constant 0 : index
    %6 = vector.load %arg2[%c0_5, %c0_6] : memref<48x8xf32, #tpu.memory_space<vmem>>, vector<48x8xf32>
    %c0_7 = arith.constant 0 : index
    %c0_8 = arith.constant 0 : index
    %7 = vector.load %arg4[%c0_7, %c0_8] : memref<8x96xf32, #tpu.memory_space<vmem>>, vector<8x96xf32>
    %cst_9 = arith.constant dense<0.000000e+00> : vector<48x96xf32>
    %8 = tpu.matmul %6, %7, %cst_9 {dimension_numbers = #tpu.dot_dimension_numbers<[1], [0], [0], [1], [0, 0, 1, 1], [], []>} : vector<48x8xf32>, vector<8x96xf32>, vector<48x96xf32> -> vector<48x96xf32>
    %9 = arith.addf %5, %8 : vector<48x96xf32>
    %c0_10 = arith.constant 0 : index
    %c0_11 = arith.constant 0 : index
    %10 = vector.load %arg6[%c0_10, %c0_11] : memref<48x96xf32, #tpu.memory_space<vmem>>, vector<48x96xf32>
    tpu.vector_store %arg6[%c0_10, %c0_11], %9 {strides = array<i32>} : memref<48x96xf32, #tpu.memory_space<vmem>>, vector<48x96xf32>,
    return
  }
  func.func @transform_0(%arg0: i32) -> (i32, i32) {
    %c0_i32 = arith.constant 0 : i32
    %c0_i32_0 = arith.constant 0 : i32
    return %arg0, %c0_i32 : i32, i32
  }
  func.func @transform_1(%arg0: i32) -> (i32, i32) {
    %c0_i32 = arith.constant 0 : i32
    %c0_i32_0 = arith.constant 0 : i32
    return %arg0, %c0_i32 : i32, i32
  }
  func.func @transform_2(%arg0: i32) -> (i32, i32) {
    %c0_i32 = arith.constant 0 : i32
    %c0_i32_0 = arith.constant 0 : i32
    %c0_i32_1 = arith.constant 0 : i32
    return %c0_i32, %c0_i32_0 : i32, i32
  }
  func.func @transform_3(%arg0: i32) -> (i32, i32) {
    %c0_i32 = arith.constant 0 : i32
    %c0_i32_0 = arith.constant 0 : i32
    %c0_i32_1 = arith.constant 0 : i32
    return %c0_i32, %c0_i32_0 : i32, i32
  }
  func.func @transform_4(%arg0: i32) -> (i32, i32) {
    %c0_i32 = arith.constant 0 : i32
    %c0_i32_0 = arith.constant 0 : i32
    %c0_i32_1 = arith.constant 0 : i32
    return %c0_i32, %c0_i32_0 : i32, i32
  }
  func.func @transform_5(%arg0: i32) -> (i32, i32) {
    %c0_i32 = arith.constant 0 : i32
    %c0_i32_0 = arith.constant 0 : i32
    return %arg0, %c0_i32 : i32, i32
  }
}

module attributes {stable_mosaic.version = 11 : i64} {
  func.func @kernel(%arg0: i32, %arg1: memref<48x32xf32, #tpu.memory_space<vmem>>, %arg2: memref<48x8xf32, #tpu.memory_space<vmem>>, %arg3: memref<32x32xf32, #tpu.memory_space<vmem>>, %arg4: memref<8x32xf32, #tpu.memory_space<vmem>>, %arg5: memref<1x32xf32, #tpu.memory_space<vmem>>, %arg6: memref<48x32xf32, #tpu.memory_space<vmem>>) attributes {dimension_semantics = [#tpu.dimension_semantics<parallel>], iteration_bounds = array<i64: 1>, scalar_prefetch = 0 : i64, scratch_operands = 0 : i64, tpu.core_type = #tpu.core_type<tc>, window_params = [{transform_indices = @transform_0, window_bounds = array<i64: 48, 32>}, {transform_indices = @transform_1, window_bounds = array<i64: 48, 8>}, {pipeline_mode = #tpu.pipeline_mode<synchronous>, transform_indices = @transform_2, window_bounds = array<i64: 32, 32>}, {pipeline_mode = #tpu.pipeline_mode<synchronous>, transform_indices = @transform_3, window_bounds = array<i64: 8, 32>}, {pipeline_mode = #tpu.pipeline_mode<synchronous>, transform_indices = @transform_4, window_bounds = array<i64: 1, 32>}, {transform_indices = @transform_5, window_bounds = array<i64: 48, 32>}]} {
    %c0 = arith.constant 0 : index
    %c0_0 = arith.constant 0 : index
    %0 = vector.load %arg5[%c0, %c0_0] : memref<1x32xf32, #tpu.memory_space<vmem>>, vector<1x32xf32>
    %c0_1 = arith.constant 0 : index
    %c0_2 = arith.constant 0 : index
    %1 = vector.load %arg1[%c0_1, %c0_2] : memref<48x32xf32, #tpu.memory_space<vmem>>, vector<48x32xf32>
    %c0_3 = arith.constant 0 : index
    %c0_4 = arith.constant 0 : index
    %2 = vector.load %arg3[%c0_3, %c0_4] : memref<32x32xf32, #tpu.memory_space<vmem>>, vector<32x32xf32>
    %cst = arith.constant dense<0.000000e+00> : vector<48x32xf32>
    %3 = tpu.matmul %1, %2, %cst {dimension_numbers = #tpu.dot_dimension_numbers<[1], [0], [0], [1], [0, 0, 1, 1], [], []>} : vector<48x32xf32>, vector<32x32xf32>, vector<48x32xf32> -> vector<48x32xf32>
    %4 = vector.broadcast %0 : vector<1x32xf32> to vector<48x32xf32>
    %5 = arith.addf %4, %3 : vector<48x32xf32>
    %c0_5 = arith.constant 0 : index
    %c0_6 = arith.constant 0 : index
    %6 = vector.load %arg2[%c0_5, %c0_6] : memref<48x8xf32, #tpu.memory_space<vmem>>, vector<48x8xf32>
    %c0_7 = arith.constant 0 : index
    %c0_8 = arith.constant 0 : index
    %7 = vector.load %arg4[%c0_7, %c0_8] : memref<8x32xf32, #tpu.memory_space<vmem>>, vector<8x32xf32>
    %cst_9 = arith.constant dense<0.000000e+00> : vector<48x32xf32>
    %8 = tpu.matmul %6, %7, %cst_9 {dimension_numbers = #tpu.dot_dimension_numbers<[1], [0], [0], [1], [0, 0, 1, 1], [], []>} : vector<48x8xf32>, vector<8x32xf32>, vector<48x32xf32> -> vector<48x32xf32>
    %9 = arith.addf %5, %8 : vector<48x32xf32>
    %cst_10 = arith.constant 0.000000e+00 : f32
    %10 = vector.broadcast %cst_10 : f32 to vector<48x32xf32>
    %11 = arith.maximumf %9, %10 : vector<48x32xf32>
    %c0_11 = arith.constant 0 : index
    %c0_12 = arith.constant 0 : index
    %12 = vector.load %arg6[%c0_11, %c0_12] : memref<48x32xf32, #tpu.memory_space<vmem>>, vector<48x32xf32>
    tpu.vector_store %arg6[%c0_11, %c0_12], %11 {strides = array<i32>} : memref<48x32xf32, #tpu.memory_space<vmem>>, vector<48x32xf32>,
    return
  }
  func.func @transform_0(%arg0: i32) -> (i32, i32) {
    %c0_i32 = arith.constant 0 : i32
    %c0_i32_0 = arith.constant 0 : i32
    return %arg0, %c0_i32 : i32, i32
  }
  func.func @transform_1(%arg0: i32) -> (i32, i32) {
    %c0_i32 = arith.constant 0 : i32
    %c0_i32_0 = arith.constant 0 : i32
    return %arg0, %c0_i32 : i32, i32
  }
  func.func @transform_2(%arg0: i32) -> (i32, i32) {
    %c0_i32 = arith.constant 0 : i32
    %c0_i32_0 = arith.constant 0 : i32
    %c0_i32_1 = arith.constant 0 : i32
    return %c0_i32, %c0_i32_0 : i32, i32
  }
  func.func @transform_3(%arg0: i32) -> (i32, i32) {
    %c0_i32 = arith.constant 0 : i32
    %c0_i32_0 = arith.constant 0 : i32
    %c0_i32_1 = arith.constant 0 : i32
    return %c0_i32, %c0_i32_0 : i32, i32
  }
  func.func @transform_4(%arg0: i32) -> (i32, i32) {
    %c0_i32 = arith.constant 0 : i32
    %c0_i32_0 = arith.constant 0 : i32
    %c0_i32_1 = arith.constant 0 : i32
    return %c0_i32, %c0_i32_0 : i32, i32
  }
  func.func @transform_5(%arg0: i32) -> (i32, i32) {
    %c0_i32 = arith.constant 0 : i32
    %c0_i32_0 = arith.constant 0 : i32
    return %arg0, %c0_i32 : i32, i32
  }
}

module attributes {stable_mosaic.version = 11 : i64} {
  func.func @kernel(%arg0: i32, %arg1: memref<48x32xf32, #tpu.memory_space<vmem>>, %arg2: memref<32x16xf32, #tpu.memory_space<vmem>>, %arg3: memref<1x16xf32, #tpu.memory_space<vmem>>, %arg4: memref<48x16xf32, #tpu.memory_space<vmem>>) attributes {dimension_semantics = [#tpu.dimension_semantics<parallel>], iteration_bounds = array<i64: 1>, scalar_prefetch = 0 : i64, scratch_operands = 0 : i64, tpu.core_type = #tpu.core_type<tc>, window_params = [{transform_indices = @transform_0, window_bounds = array<i64: 48, 32>}, {pipeline_mode = #tpu.pipeline_mode<synchronous>, transform_indices = @transform_1, window_bounds = array<i64: 32, 16>}, {pipeline_mode = #tpu.pipeline_mode<synchronous>, transform_indices = @transform_2, window_bounds = array<i64: 1, 16>}, {transform_indices = @transform_3, window_bounds = array<i64: 48, 16>}]} {
    %c0 = arith.constant 0 : index
    %c0_0 = arith.constant 0 : index
    %0 = vector.load %arg3[%c0, %c0_0] : memref<1x16xf32, #tpu.memory_space<vmem>>, vector<1x16xf32>
    %c0_1 = arith.constant 0 : index
    %c0_2 = arith.constant 0 : index
    %1 = vector.load %arg1[%c0_1, %c0_2] : memref<48x32xf32, #tpu.memory_space<vmem>>, vector<48x32xf32>
    %c0_3 = arith.constant 0 : index
    %c0_4 = arith.constant 0 : index
    %2 = vector.load %arg2[%c0_3, %c0_4] : memref<32x16xf32, #tpu.memory_space<vmem>>, vector<32x16xf32>
    %cst = arith.constant dense<0.000000e+00> : vector<48x16xf32>
    %3 = tpu.matmul %1, %2, %cst {dimension_numbers = #tpu.dot_dimension_numbers<[1], [0], [0], [1], [0, 0, 1, 1], [], []>} : vector<48x32xf32>, vector<32x16xf32>, vector<48x16xf32> -> vector<48x16xf32>
    %4 = vector.broadcast %0 : vector<1x16xf32> to vector<48x16xf32>
    %5 = arith.addf %4, %3 : vector<48x16xf32>
    %c0_5 = arith.constant 0 : index
    %c0_6 = arith.constant 0 : index
    %6 = vector.load %arg4[%c0_5, %c0_6] : memref<48x16xf32, #tpu.memory_space<vmem>>, vector<48x16xf32>
    tpu.vector_store %arg4[%c0_5, %c0_6], %5 {strides = array<i32>} : memref<48x16xf32, #tpu.memory_space<vmem>>, vector<48x16xf32>,
    return
  }
  func.func @transform_0(%arg0: i32) -> (i32, i32) {
    %c0_i32 = arith.constant 0 : i32
    %c0_i32_0 = arith.constant 0 : i32
    return %arg0, %c0_i32 : i32, i32
  }
  func.func @transform_1(%arg0: i32) -> (i32, i32) {
    %c0_i32 = arith.constant 0 : i32
    %c0_i32_0 = arith.constant 0 : i32
    %c0_i32_1 = arith.constant 0 : i32
    return %c0_i32, %c0_i32_0 : i32, i32
  }
  func.func @transform_2(%arg0: i32) -> (i32, i32) {
    %c0_i32 = arith.constant 0 : i32
    %c0_i32_0 = arith.constant 0 : i32
    %c0_i32_1 = arith.constant 0 : i32
    return %c0_i32, %c0_i32_0 : i32, i32
  }
  func.func @transform_3(%arg0: i32) -> (i32, i32) {
    %c0_i32 = arith.constant 0 : i32
    %c0_i32_0 = arith.constant 0 : i32
    return %arg0, %c0_i32 : i32, i32
  }
}

</mosaic_0001>

<bundles_post_ra>
// kernel: _lambda_.14
= control target key start
LH: loop header
LB: loop body
LE: loop exit
PB: predicated region body
PF: predicated region fallthrough
CT: control target
= control target key end

     0   :  { %vm27_vm0 = vcmask 654336   ;;  %vm62_vm1 = vcmask 261120   ;;  %s147_s1 = inlined_call_operand.vmem [shape: f32[80,32], index: 1, kind: input, shape index: {}]   ;;  %s148_s2 = inlined_call_operand.vmem [shape: f32[1,32], index: 2, kind: input, shape index: {}]   ;;  %s149_s0 = inlined_call_operand.vmem [shape: f32[16,80], index: 0, kind: input, shape index: {}]   ;;  %s150_s3 = inlined_call_operand.vmem [shape: f32[16,32], index: 3, kind: output, shape index: {}]  }
   0x1   :  { %v26_v0 = vld [vmem:[%s147_s1 + $0x48] sm:$0xff]  ;;  %v25_v1 = vld [vmem:[%s147_s1 + $0x40] sm:$0xff]  ;;  %v24_v2 = vld [vmem:[%s147_s1 + $0x38] sm:$0xff] }
   0x2   :  { %40 = vmatpush.msra.mxu0 %v26_v0  ;;  %71 = vmatpush.msra.mxu1 %v26_v0  ;;  %v23_v3 = vld [vmem:[%s147_s1 + $0x30] sm:$0xff]  ;;  %v22_v4 = vld [vmem:[%s147_s1 + $0x28] sm:$0xff]  ;;  %v21_v5 = vld [vmem:[%s147_s1 + $0x20] sm:$0xff] }
   0x3   :  { %v20_v6 = vld [vmem:[%s147_s1 + $0x18] sm:$0xff]  ;;  %v19_v7 = vld [vmem:[%s147_s1 + $0x10] sm:$0xff]  ;;  %v18_v8 = vld [vmem:[%s147_s1 + $0x8] sm:$0xff] }
   0x4   :  { %41 = vmatpush.msra.mxu0 %v25_v1  ;;  %72 = vmatpush.msra.mxu1 %v25_v1  ;;  %v17_v9 = vld [vmem:[%s147_s1] sm:$0xff]  ;;  %v16_v11 = vld [vmem:[%s149_s0 + $0x8] sm:$0xff] }
   0x5   :  { %v15_v10 = vld [vmem:[%s149_s0] sm:$0xff] }
   0x6   :  { %42 = vmatpush.msra.mxu0 %v24_v2  ;;  %73 = vmatpush.msra.mxu1 %v24_v2  ;;  %v81_v12 = vld [vmem:[%s148_s2] ss:$0 sm:$0xff] }
   0x8   :  { %43 = vmatpush.msra.mxu0 %v23_v3  ;;  %74 = vmatpush.msra.mxu1 %v23_v3 }
   0xa   :  { %44 = vmatpush.msra.mxu0 %v22_v4  ;;  %75 = vmatpush.msra.mxu1 %v22_v4 }
   0xc   :  { %45 = vmatpush.msra.mxu0 %v21_v5  ;;  %76 = vmatpush.msra.mxu1 %v21_v5 }
   0xe   :  { %46 = vmatpush.msra.mxu0 %v20_v6  ;;  %77 = vmatpush.msra.mxu1 %v20_v6 }
  0x10   :  { %47 = vmatpush.msra.mxu0 %v19_v7  ;;  %78 = vmatpush.msra.mxu1 %v19_v7 }
  0x12   :  { %48 = vmatpush.msra.mxu0 %v18_v8  ;;  %79 = vmatpush.msra.mxu1 %v18_v8 }
  0x14   :  { %49 = vmatpush.msra.mxu0 %v17_v9  ;;  %80 = vmatpush.msra.mxu1 %v17_v9 }
  0x15   :  { %69 = vmatmul.msk.f32.vlgmr.msra.gmra.mxu0 %vm27_vm0, %v15_v10  ;;  %70 = vmatmul.msk.f32.vlgmr.msra.gmra.mxu1 %vm27_vm0, %v16_v11 }
  0x92   :  { %v51_v13 = vpop.f32.mrf.mxu0  ;;  %v54_v14 = vpop.f32.mrf.mxu1 }
  0x93   :  { %v60_v15 = vadd.f32 %v81_v12, %v51_v13  ;;  %v61_v16 = vadd.f32 %v81_v12, %v54_v14 }
  0x95   :  { %63 = vst.msk [vmem:[%s150_s3] sm:$0xff] %vm62_vm1, %v60_v15 }
  0x96   :  { %64 = vst.msk [vmem:[%s150_s3 + $0x8] sm:$0xff] %vm62_vm1, %v61_v16 }

// kernel: _lambda_.15
= control target key start
LH: loop header
LB: loop body
LE: loop exit
PB: predicated region body
PF: predicated region fallthrough
CT: control target
= control target key end

     0   :  { %vm21_vm0 = vcmask 261120   ;;  %s116_s1 = inlined_call_operand.vmem [shape: f32[32,32], index: 1, kind: input, shape index: {}]   ;;  %s117_s2 = inlined_call_operand.vmem [shape: f32[1,32], index: 2, kind: input, shape index: {}]   ;;  %s118_s0 = inlined_call_operand.vmem [shape: f32[16,32], index: 0, kind: input, shape index: {}]   ;;  %s119_s3 = inlined_call_operand.vmem [shape: f32[16,32], index: 3, kind: output, shape index: {}]  }
   0x1   :  { %v20_v0 = vld [vmem:[%s116_s1 + $0x18] sm:$0xff]  ;;  %v19_v1 = vld [vmem:[%s116_s1 + $0x10] sm:$0xff]  ;;  %v18_v2 = vld [vmem:[%s116_s1 + $0x8] sm:$0xff] }
   0x2   :  { %40 = vmatpush.msra.mxu0 %v20_v0  ;;  %64 = vmatpush.msra.mxu1 %v20_v0  ;;  %v17_v3 = vld [vmem:[%s116_s1] sm:$0xff]  ;;  %v16_v5 = vld [vmem:[%s118_s0 + $0x8] sm:$0xff] }
   0x3   :  { %v15_v4 = vld [vmem:[%s118_s0] sm:$0xff] }
   0x4   :  { %41 = vmatpush.msra.mxu0 %v19_v1  ;;  %65 = vmatpush.msra.mxu1 %v19_v1  ;;  %v68_v6 = vld [vmem:[%s117_s2] ss:$0 sm:$0xff] }
   0x6   :  { %42 = vmatpush.msra.mxu0 %v18_v2  ;;  %66 = vmatpush.msra.mxu1 %v18_v2 }
   0x8   :  { %43 = vmatpush.msra.mxu0 %v17_v3  ;;  %67 = vmatpush.msra.mxu1 %v17_v3 }
   0x9   :  { %62 = vmatmul.msk.f32.vlgmr.msra.gmra.mxu0 %vm21_vm0, %v15_v4  ;;  %63 = vmatmul.msk.f32.vlgmr.msra.gmra.mxu1 %vm21_vm0, %v16_v5 }
  0x86   :  { %v45_v7 = vpop.f32.mrf.mxu0  ;;  %v48_v8 = vpop.f32.mrf.mxu1 }
  0x87   :  { %v54_v9 = vadd.f32 %v68_v6, %v45_v7  ;;  %v55_v10 = vadd.f32 %v68_v6, %v48_v8 }
  0x89   :  { %56 = vst.msk [vmem:[%s119_s3] sm:$0xff] %vm21_vm0, %v54_v9 }
  0x8a   :  { %57 = vst.msk [vmem:[%s119_s3 + $0x8] sm:$0xff] %vm21_vm0, %v55_v10 }

// kernel: _lambda_.20
= control target key start
LH: loop header
LB: loop body
LE: loop exit
PB: predicated region body
PF: predicated region fallthrough
CT: control target
= control target key end

     0   :  { %vm53_vm0 = vcmask 1040384   ;;  %vm34_vm1 = vcmask 7168   ;;  %vm176_vm2 = vcmask 64512   ;;  %vm109_vm3 = vcmask 130048   ;;  %s422_s3 = inlined_call_operand.vmem [shape: f32[1,32], index: 3, kind: input, shape index: {}]   ;;  %s423_s4 = inlined_call_operand.vmem [shape: f32[16,32], index: 4, kind: input, shape index: {}]   ;;  %s424_s0 = inlined_call_operand.vmem [shape: f32[48,1], index: 0, kind: input, shape index: {}]   ;;  %s425_s1 = inlined_call_operand.vmem [shape: f32[48,16], index: 1, kind: input, shape index: {}]   ;;  %s426_s5 = inlined_call_operand.vmem [shape: f32[8,32], index: 5, kind: input, shape index: {}]   ;;  %s427_s2 = inlined_call_operand.vmem [shape: f32[48,8], index: 2, kind: input, shape index: {}]   ;;  %s428_s6 = inlined_call_operand.vmem [shape: f32[1,32], index: 6, kind: input, shape index: {}]   ;;  %s429_s7 = inlined_call_operand.vmem [shape: f32[48,32], index: 7, kind: output, shape index: {}]  }
   0x1   :  { %v33_v0 = vld [vmem:[%s422_s3] sm:$0x1]  ;;  %v108_v1 = vld [vmem:[%s423_s4 + $0x8] sm:$0xff]  ;;  %v171_v10 = vld [vmem:[%s427_s2 + $0x10] sm:$0xff]  ;;  %vm236_vm4 = vcmask 261120  }
   0x2   :  { %v27_v2 = vld [vmem:[%s424_s0] sm:$0xff]  ;;  %247 = vmatpush.msk.msra.mxu0 %vm53_vm0, %v33_v0  ;;  %266 = vmatpush.msk.msra.mxu1 %vm53_vm0, %v33_v0  ;;  %v32_v3 = vld [vmem:[%s424_s0 + $0x28] sm:$0xff]  ;;  %v103_v11 = vld [vmem:[%s425_s1 + $0x10] sm:$0xff] }
   0x3   :  { %v107_v4 = vld [vmem:[%s423_s4] sm:$0xff]  ;;  %267 = vmatpush.msra.mxu3 %v108_v1  ;;  %248 = vmatmul.msk.f32.vlgmr.msra.gmra.mxu0 %vm34_vm1, %v27_v2  ;;  %v102_v5 = vld [vmem:[%s425_s1 + $0x8] sm:$0xff]  ;;  %v29_v12 = vld [vmem:[%s424_s0 + $0x10] sm:$0xff] }
   0x4   :  { %v175_v6 = vld [vmem:[%s426_s5] sm:$0xff]  ;;  %v170_v7 = vld [vmem:[%s427_s2 + $0x8] sm:$0xff]  ;;  %253 = vmatmul.msk.f32.vlgmr.msra.gmra.mxu1 %vm34_vm1, %v32_v3  ;;  %v172_v14 = vld [vmem:[%s427_s2 + $0x18] sm:$0xff] }
   0x5   :  { %269 = vmatpush.msra.mxu2 %v175_v6  ;;  %268 = vmatpush.msra.mxu3 %v107_v4  ;;  %v28_v8 = vld [vmem:[%s424_s0 + $0x8] sm:$0xff]  ;;  %v101_v9 = vld [vmem:[%s425_s1] sm:$0xff]  ;;  %v104_v15 = vld [vmem:[%s425_s1 + $0x18] sm:$0xff] }
   0x6   :  { %261 = vmatmul.msk.f32.vlgmr.msra.gmra.mxu2 %vm176_vm2, %v170_v7  ;;  %255 = vmatmul.msk.f32.vlgmr.msra.gmra.mxu3 %vm109_vm3, %v102_v5  ;;  %v169_v13 = vld [vmem:[%s427_s2] sm:$0xff]  ;;  %v30_v16 = vld [vmem:[%s424_s0 + $0x18] sm:$0xff]  ;;  %v174_v20 = vld [vmem:[%s427_s2 + $0x28] sm:$0xff] }
   0x7   :  { %142 = vmatpush.msrb.mxu1 %v108_v1  ;;  %v173_v17 = vld [vmem:[%s427_s2 + $0x20] sm:$0xff]  ;;  %v106_v21 = vld [vmem:[%s425_s1 + $0x28] sm:$0xff] }
   0x8   :  { %v105_v18 = vld [vmem:[%s425_s1 + $0x20] sm:$0xff] }
   0x9   :  { %143 = vmatpush.msrb.mxu1 %v107_v4  ;;  %v31_v19 = vld [vmem:[%s424_s0 + $0x20] sm:$0xff] }
   0xa   :  { %v270_v24 = vld [vmem:[%s428_s6] ss:$0 sm:$0xff] }
   0xb   :  { %210 = vmatpush.msra.mxu1 %v175_v6  ;;  %249 = vmatmul.msk.f32.gmra.mxu0 %vm34_vm1, %v28_v8 }
   0xc   :  { %254 = vmatmul.msk.f32.vlgmr.msrb.gmra.mxu1 %vm109_vm3, %v101_v9 }
   0xe   :  { %262 = vmatmul.msk.f32.gmra.mxu2 %vm176_vm2, %v171_v10  ;;  %256 = vmatmul.msk.f32.gmra.mxu3 %vm109_vm3, %v103_v11 }
  0x13   :  { %250 = vmatmul.msk.f32.gmra.mxu0 %vm34_vm1, %v29_v12 }
  0x14   :  { %260 = vmatmul.msk.f32.vlgmr.msra.gmra.mxu1 %vm176_vm2, %v169_v13 }
  0x16   :  { %263 = vmatmul.msk.f32.gmra.mxu2 %vm176_vm2, %v172_v14  ;;  %257 = vmatmul.msk.f32.gmra.mxu3 %vm109_vm3, %v104_v15 }
  0x1b   :  { %251 = vmatmul.msk.f32.gmra.mxu0 %vm34_vm1, %v30_v16 }
  0x1e   :  { %264 = vmatmul.msk.f32.gmra.mxu2 %vm176_vm2, %v173_v17  ;;  %258 = vmatmul.msk.f32.gmra.mxu3 %vm109_vm3, %v105_v18 }
  0x23   :  { %252 = vmatmul.msk.f32.gmra.mxu0 %vm34_vm1, %v31_v19 }
  0x26   :  { %265 = vmatmul.msk.f32.gmra.mxu2 %vm176_vm2, %v174_v20  ;;  %259 = vmatmul.msk.f32.gmra.mxu3 %vm109_vm3, %v106_v21 }
  0x80   :  { %v74_v22 = vpop.f32.mrf.mxu0 }
  0x81   :  { %v89_v23 = vpop.f32.mrf.mxu1  ;;  %v95_v31 = vadd.f32 %v270_v24, %v74_v22 }
  0x82   :  { %v100_v54 = vadd.f32 %v270_v24, %v89_v23 }
  0x88   :  { %v77_v25 = vpop.f32.mrf.mxu0 }
  0x89   :  { %v215_v26 = vpop.f32.mrf.mxu2  ;;  %v96_v27 = vadd.f32 %v270_v24, %v77_v25  ;;  %v145_v28 = vpop.f32.mrf.mxu1 }
  0x8a   :  { %v148_v29 = vpop.f32.mrf.mxu3  ;;  %v163_v33 = vadd.f32 %v145_v28, %v95_v31 }
  0x8b   :  { %v164_v30 = vadd.f32 %v148_v29, %v96_v27 }
  0x8d   :  { %v231_v32 = vadd.f32 %v215_v26, %v164_v30 }
  0x8f   :  { %238 = vst.msk [vmem:[%s429_s7 + $0x8] sm:$0xff] %vm236_vm4, %v231_v32 }
  0x90   :  { %v80_v34 = vpop.f32.mrf.mxu0 }
  0x91   :  { %v218_v35 = vpop.f32.mrf.mxu2  ;;  %v97_v36 = vadd.f32 %v270_v24, %v80_v34  ;;  %v212_v38 = vpop.f32.mrf.mxu1 }
  0x92   :  { %v151_v37 = vpop.f32.mrf.mxu3  ;;  %v230_v39 = vadd.f32 %v212_v38, %v163_v33 }
  0x93   :  { %v165_v40 = vadd.f32 %v151_v37, %v97_v36 }
  0x94   :  { %237 = vst.msk [vmem:[%s429_s7] sm:$0xff] %vm236_vm4, %v230_v39 }
  0x95   :  { %v232_v41 = vadd.f32 %v218_v35, %v165_v40 }
  0x97   :  { %239 = vst.msk [vmem:[%s429_s7 + $0x10] sm:$0xff] %vm236_vm4, %v232_v41 }
  0x98   :  { %v83_v42 = vpop.f32.mrf.mxu0 }
  0x99   :  { %v221_v43 = vpop.f32.mrf.mxu2  ;;  %v98_v44 = vadd.f32 %v270_v24, %v83_v42 }
  0x9a   :  { %v154_v45 = vpop.f32.mrf.mxu3 }
  0x9b   :  { %v166_v46 = vadd.f32 %v154_v45, %v98_v44 }
  0x9d   :  { %v233_v47 = vadd.f32 %v221_v43, %v166_v46 }
  0x9f   :  { %240 = vst.msk [vmem:[%s429_s7 + $0x18] sm:$0xff] %vm236_vm4, %v233_v47 }
  0xa0   :  { %v86_v48 = vpop.f32.mrf.mxu0 }
  0xa1   :  { %v224_v49 = vpop.f32.mrf.mxu2  ;;  %v99_v50 = vadd.f32 %v270_v24, %v86_v48 }
  0xa2   :  { %v157_v51 = vpop.f32.mrf.mxu3 }
  0xa3   :  { %v167_v52 = vadd.f32 %v157_v51, %v99_v50 }
  0xa5   :  { %v234_v53 = vadd.f32 %v224_v49, %v167_v52 }
  0xa7   :  { %241 = vst.msk [vmem:[%s429_s7 + $0x20] sm:$0xff] %vm236_vm4, %v234_v53 }
  0xa9   :  { %v227_v56 = vpop.f32.mrf.mxu2 }
  0xaa   :  { %v160_v55 = vpop.f32.mrf.mxu3 }
  0xab   :  { %v168_v57 = vadd.f32 %v160_v55, %v100_v54 }
  0xad   :  { %v235_v58 = vadd.f32 %v227_v56, %v168_v57 }
  0xaf   :  { %242 = vst.msk [vmem:[%s429_s7 + $0x28] sm:$0xff] %vm236_vm4, %v235_v58 }

// kernel: _lambda_.21
= control target key start
LH: loop header
LB: loop body
LE: loop exit
PB: predicated region body
PF: predicated region fallthrough
CT: control target
= control target key end

     0   :  { %vm25_vm0 = vcmask 261120   ;;  %vm88_vm1 = vcmask 785408   ;;  %s201_s1 = inlined_call_operand.vmem [shape: f32[32,96], index: 1, kind: input, shape index: {}]   ;;  %s202_s0 = inlined_call_operand.vmem [shape: f32[48,32], index: 0, kind: input, shape index: {}]   ;;  %s203_s2 = inlined_call_operand.vmem [shape: f32[1,96], index: 2, kind: input, shape index: {}]   ;;  %s204_s3 = inlined_call_operand.vmem [shape: f32[48,96], index: 3, kind: output, shape index: {}]  }
   0x1   :  { %v24_v0 = vld [vmem:[%s201_s1 + $0x18] sm:$0xff]  ;;  %v23_v1 = vld [vmem:[%s201_s1 + $0x10] sm:$0xff]  ;;  %v22_v2 = vld [vmem:[%s201_s1 + $0x8] sm:$0xff] }
   0x2   :  { %107 = vmatpush.msra.mxu3 %v24_v0  ;;  %105 = vmatpush.msra.mxu1 %v24_v0  ;;  %v21_v3 = vld [vmem:[%s201_s1] sm:$0xff]  ;;  %v16_v5 = vld [vmem:[%s202_s0 + $0x8] sm:$0xff]  ;;  %v18_v6 = vld [vmem:[%s202_s0 + $0x18] sm:$0xff] }
   0x3   :  { %106 = vmatpush.msra.mxu2 %v24_v0  ;;  %56 = vmatpush.msra.mxu0 %v24_v0  ;;  %v19_v4 = vld [vmem:[%s202_s0 + $0x20] sm:$0xff]  ;;  %v20_v8 = vld [vmem:[%s202_s0 + $0x28] sm:$0xff]  ;;  %v17_v9 = vld [vmem:[%s202_s0 + $0x10] sm:$0xff] }
   0x4   :  { %110 = vmatpush.msra.mxu3 %v23_v1  ;;  %108 = vmatpush.msra.mxu1 %v23_v1  ;;  %v15_v7 = vld [vmem:[%s202_s0] sm:$0xff] }
   0x5   :  { %109 = vmatpush.msra.mxu2 %v23_v1  ;;  %57 = vmatpush.msra.mxu0 %v23_v1  ;;  %v117_v10 = vld [vmem:[%s203_s2] ss:$0 sm:$0xff] }
   0x6   :  { %113 = vmatpush.msra.mxu3 %v22_v2  ;;  %111 = vmatpush.msra.mxu1 %v22_v2 }
   0x7   :  { %112 = vmatpush.msra.mxu2 %v22_v2  ;;  %58 = vmatpush.msra.mxu0 %v22_v2 }
   0x8   :  { %116 = vmatpush.msra.mxu3 %v21_v3  ;;  %114 = vmatpush.msra.mxu1 %v21_v3 }
   0x9   :  { %103 = vmatmul.msk.f32.vlgmr.msra.gmra.mxu3 %vm25_vm0, %v19_v4  ;;  %100 = vmatmul.msk.f32.vlgmr.msra.gmra.mxu1 %vm25_vm0, %v16_v5 }
   0xa   :  { %115 = vmatpush.msra.mxu2 %v21_v3  ;;  %59 = vmatpush.msra.mxu0 %v21_v3 }
   0xb   :  { %102 = vmatmul.msk.f32.vlgmr.msra.gmra.mxu2 %vm25_vm0, %v18_v6  ;;  %99 = vmatmul.msk.f32.vlgmr.msra.gmra.mxu0 %vm25_vm0, %v15_v7 }
  0x11   :  { %104 = vmatmul.msk.f32.gmra.mxu3 %vm25_vm0, %v20_v8  ;;  %101 = vmatmul.msk.f32.gmra.mxu1 %vm25_vm0, %v17_v9 }
  0x86   :  { %v64_v11 = vpop.f32.mrf.mxu1 }
  0x87   :  { %v83_v12 = vadd.f32 %v117_v10, %v64_v11 }
  0x88   :  { %v61_v13 = vpop.f32.mrf.mxu0 }
  0x89   :  { %90 = vst.msk [vmem:[%s204_s3 + $0x8] sm:$0xff] %vm88_vm1, %v83_v12  ;;  %v82_v14 = vadd.f32 %v117_v10, %v61_v13 }
  0x8b   :  { %89 = vst.msk [vmem:[%s204_s3] sm:$0xff] %vm88_vm1, %v82_v14 }
  0x8c   :  { %v73_v15 = vpop.f32.mrf.mxu3 }
  0x8d   :  { %v86_v16 = vadd.f32 %v117_v10, %v73_v15 }
  0x8e   :  { %v67_v17 = vpop.f32.mrf.mxu1  ;;  %v70_v18 = vpop.f32.mrf.mxu2 }
  0x8f   :  { %93 = vst.msk [vmem:[%s204_s3 + $0x20] sm:$0xff] %vm88_vm1, %v86_v16  ;;  %v84_v19 = vadd.f32 %v117_v10, %v67_v17  ;;  %v85_v20 = vadd.f32 %v117_v10, %v70_v18 }
  0x91   :  { %91 = vst.msk [vmem:[%s204_s3 + $0x10] sm:$0xff] %vm88_vm1, %v84_v19 }
  0x92   :  { %92 = vst.msk [vmem:[%s204_s3 + $0x18] sm:$0xff] %vm88_vm1, %v85_v20 }
  0x94   :  { %v76_v21 = vpop.f32.mrf.mxu3 }
  0x95   :  { %v87_v22 = vadd.f32 %v117_v10, %v76_v21 }
  0x97   :  { %94 = vst.msk [vmem:[%s204_s3 + $0x28] sm:$0xff] %vm88_vm1, %v87_v22 }

// kernel: _lambda_.23
= control target key start
LH: loop header
LB: loop body
LE: loop exit
PB: predicated region body
PF: predicated region fallthrough
CT: control target
= control target key end

     0   :  { %vm101_vm0 = vcmask 64512   ;;  %vm31_vm1 = vcmask 261120   ;;  %vm161_vm2 = vcmask 785408   ;;  %s310_s2 = inlined_call_operand.vmem [shape: f32[32,96], index: 2, kind: input, shape index: {}]   ;;  %s311_s3 = inlined_call_operand.vmem [shape: f32[8,96], index: 3, kind: input, shape index: {}]   ;;  %s312_s1 = inlined_call_operand.vmem [shape: f32[48,8], index: 1, kind: input, shape index: {}]   ;;  %s313_s0 = inlined_call_operand.vmem [shape: f32[48,32], index: 0, kind: input, shape index: {}]   ;;  %s314_s4 = inlined_call_operand.vmem [shape: f32[1,96], index: 4, kind: input, shape index: {}]   ;;  %s315_s5 = inlined_call_operand.vmem [shape: f32[48,96], index: 5, kind: output, shape index: {}]  }
   0x1   :  { %v30_v0 = vld [vmem:[%s310_s2 + $0x18] sm:$0xff]  ;;  %v100_v1 = vld [vmem:[%s311_s3] sm:$0xff]  ;;  %v29_v3 = vld [vmem:[%s310_s2 + $0x10] sm:$0xff] }
   0x2   :  { %v94_v2 = vld [vmem:[%s312_s1] sm:$0xff]  ;;  %62 = vmatpush.msra.mxu0 %v30_v0  ;;  %184 = vmatpush.msra.mxu2 %v30_v0  ;;  %v28_v4 = vld [vmem:[%s310_s2 + $0x8] sm:$0xff]  ;;  %v24_v8 = vld [vmem:[%s313_s0 + $0x18] sm:$0xff] }
   0x3   :  { %135 = vmatpush.msra.mxu1 %v100_v1  ;;  %188 = vmatpush.msra.mxu3 %v100_v1  ;;  %v27_v5 = vld [vmem:[%s310_s2] sm:$0xff]  ;;  %v95_v9 = vld [vmem:[%s312_s1 + $0x8] sm:$0xff]  ;;  %v96_v13 = vld [vmem:[%s312_s1 + $0x10] sm:$0xff] }
   0x4   :  { %178 = vmatmul.msk.f32.vlgmr.msra.gmra.mxu1 %vm101_vm0, %v94_v2  ;;  %63 = vmatpush.msra.mxu0 %v29_v3  ;;  %v98_v6 = vld [vmem:[%s312_s1 + $0x20] sm:$0xff]  ;;  %v99_v10 = vld [vmem:[%s312_s1 + $0x28] sm:$0xff]  ;;  %v23_v14 = vld [vmem:[%s313_s0 + $0x10] sm:$0xff] }
   0x5   :  { %185 = vmatpush.msra.mxu2 %v29_v3  ;;  %v21_v7 = vld [vmem:[%s313_s0] sm:$0xff]  ;;  %182 = vmatmul.msk.f32.vlgmr.msra.gmra.mxu3 %vm101_vm0, %v98_v6  ;;  %v22_v11 = vld [vmem:[%s313_s0 + $0x8] sm:$0xff]  ;;  %v97_v16 = vld [vmem:[%s312_s1 + $0x18] sm:$0xff] }
   0x6   :  { %64 = vmatpush.msra.mxu0 %v28_v4  ;;  %v25_v12 = vld [vmem:[%s313_s0 + $0x20] sm:$0xff]  ;;  %v26_v15 = vld [vmem:[%s313_s0 + $0x28] sm:$0xff] }
   0x7   :  { %186 = vmatpush.msra.mxu2 %v28_v4  ;;  %v189_v18 = vld [vmem:[%s314_s4] ss:$0 sm:$0xff] }
   0x8   :  { %65 = vmatpush.msra.mxu0 %v27_v5 }
   0x9   :  { %187 = vmatpush.msra.mxu2 %v27_v5  ;;  %172 = vmatmul.msk.f32.vlgmr.msra.gmra.mxu0 %vm31_vm1, %v21_v7 }
   0xa   :  { %175 = vmatmul.msk.f32.vlgmr.msra.gmra.mxu2 %vm31_vm1, %v24_v8 }
   0xc   :  { %179 = vmatmul.msk.f32.gmra.mxu1 %vm101_vm0, %v95_v9 }
   0xd   :  { %183 = vmatmul.msk.f32.gmra.mxu3 %vm101_vm0, %v99_v10 }
  0x11   :  { %173 = vmatmul.msk.f32.gmra.mxu0 %vm31_vm1, %v22_v11 }
  0x12   :  { %176 = vmatmul.msk.f32.gmra.mxu2 %vm31_vm1, %v25_v12 }
  0x14   :  { %180 = vmatmul.msk.f32.gmra.mxu1 %vm101_vm0, %v96_v13 }
  0x19   :  { %174 = vmatmul.msk.f32.gmra.mxu0 %vm31_vm1, %v23_v14 }
  0x1a   :  { %177 = vmatmul.msk.f32.gmra.mxu2 %vm31_vm1, %v26_v15 }
  0x1c   :  { %181 = vmatmul.msk.f32.gmra.mxu1 %vm101_vm0, %v97_v16 }
  0x81   :  { %v137_v17 = vpop.f32.mrf.mxu1 }
  0x86   :  { %v67_v19 = vpop.f32.mrf.mxu0 }
  0x87   :  { %v88_v20 = vadd.f32 %v189_v18, %v67_v19 }
  0x88   :  { %v149_v28 = vpop.f32.mrf.mxu3 }
  0x89   :  { %v155_v21 = vadd.f32 %v137_v17, %v88_v20  ;;  %v140_v22 = vpop.f32.mrf.mxu1 }
  0x8b   :  { %162 = vst.msk [vmem:[%s315_s5] sm:$0xff] %vm161_vm2, %v155_v21 }
  0x8d   :  { %v76_v23 = vpop.f32.mrf.mxu2 }
  0x8e   :  { %v70_v24 = vpop.f32.mrf.mxu0  ;;  %v91_v33 = vadd.f32 %v189_v18, %v76_v23 }
  0x8f   :  { %v89_v25 = vadd.f32 %v189_v18, %v70_v24 }
  0x90   :  { %v152_v39 = vpop.f32.mrf.mxu3 }
  0x91   :  { %v156_v26 = vadd.f32 %v140_v22, %v89_v25  ;;  %v143_v27 = vpop.f32.mrf.mxu1 }
  0x93   :  { %163 = vst.msk [vmem:[%s315_s5 + $0x8] sm:$0xff] %vm161_vm2, %v156_v26 }
  0x95   :  { %v79_v29 = vpop.f32.mrf.mxu2 }
  0x96   :  { %v92_v30 = vadd.f32 %v189_v18, %v79_v29  ;;  %v73_v31 = vpop.f32.mrf.mxu0 }
  0x97   :  { %v90_v32 = vadd.f32 %v189_v18, %v73_v31 }
  0x98   :  { %v159_v34 = vadd.f32 %v149_v28, %v92_v30 }
  0x99   :  { %v157_v35 = vadd.f32 %v143_v27, %v90_v32  ;;  %v146_v36 = vpop.f32.mrf.mxu1 }
  0x9a   :  { %166 = vst.msk [vmem:[%s315_s5 + $0x20] sm:$0xff] %vm161_vm2, %v159_v34  ;;  %v158_v37 = vadd.f32 %v146_v36, %v91_v33 }
  0x9b   :  { %164 = vst.msk [vmem:[%s315_s5 + $0x10] sm:$0xff] %vm161_vm2, %v157_v35 }
  0x9c   :  { %165 = vst.msk [vmem:[%s315_s5 + $0x18] sm:$0xff] %vm161_vm2, %v158_v37 }
  0x9d   :  { %v82_v38 = vpop.f32.mrf.mxu2 }
  0x9e   :  { %v93_v40 = vadd.f32 %v189_v18, %v82_v38 }
  0xa0   :  { %v160_v41 = vadd.f32 %v152_v39, %v93_v40 }
  0xa2   :  { %167 = vst.msk [vmem:[%s315_s5 + $0x28] sm:$0xff] %vm161_vm2, %v160_v41 }

// kernel: _lambda_.25
= control target key start
LH: loop header
LB: loop body
LE: loop exit
PB: predicated region body
PF: predicated region fallthrough
CT: control target
= control target key end

     0   :  { %vm101_vm0 = vcmask 64512   ;;  %vm31_vm1 = vcmask 261120   ;;  %s315_s2 = inlined_call_operand.vmem [shape: f32[32,32], index: 2, kind: input, shape index: {}]   ;;  %s316_s3 = inlined_call_operand.vmem [shape: f32[8,32], index: 3, kind: input, shape index: {}]   ;;  %s317_s1 = inlined_call_operand.vmem [shape: f32[48,8], index: 1, kind: input, shape index: {}]   ;;  %s318_s0 = inlined_call_operand.vmem [shape: f32[48,32], index: 0, kind: input, shape index: {}]   ;;  %s319_s4 = inlined_call_operand.vmem [shape: f32[1,32], index: 4, kind: input, shape index: {}]   ;;  %s320_s5 = inlined_call_operand.vmem [shape: f32[48,32], index: 5, kind: output, shape index: {}]  }
   0x1   :  { %v30_v0 = vld [vmem:[%s315_s2 + $0x18] sm:$0xff]  ;;  %v100_v1 = vld [vmem:[%s316_s3] sm:$0xff]  ;;  %v29_v3 = vld [vmem:[%s315_s2 + $0x10] sm:$0xff] }
   0x2   :  { %v94_v2 = vld [vmem:[%s317_s1] sm:$0xff]  ;;  %62 = vmatpush.msra.mxu0 %v30_v0  ;;  %189 = vmatpush.msra.mxu2 %v30_v0  ;;  %v28_v4 = vld [vmem:[%s315_s2 + $0x8] sm:$0xff]  ;;  %v24_v8 = vld [vmem:[%s318_s0 + $0x18] sm:$0xff] }
   0x3   :  { %135 = vmatpush.msra.mxu1 %v100_v1  ;;  %193 = vmatpush.msra.mxu3 %v100_v1  ;;  %v27_v5 = vld [vmem:[%s315_s2] sm:$0xff]  ;;  %v95_v9 = vld [vmem:[%s317_s1 + $0x8] sm:$0xff]  ;;  %v96_v13 = vld [vmem:[%s317_s1 + $0x10] sm:$0xff] }
   0x4   :  { %183 = vmatmul.msk.f32.vlgmr.msra.gmra.mxu1 %vm101_vm0, %v94_v2  ;;  %63 = vmatpush.msra.mxu0 %v29_v3  ;;  %v98_v6 = vld [vmem:[%s317_s1 + $0x20] sm:$0xff]  ;;  %v99_v10 = vld [vmem:[%s317_s1 + $0x28] sm:$0xff]  ;;  %v23_v14 = vld [vmem:[%s318_s0 + $0x10] sm:$0xff] }
   0x5   :  { %190 = vmatpush.msra.mxu2 %v29_v3  ;;  %v21_v7 = vld [vmem:[%s318_s0] sm:$0xff]  ;;  %187 = vmatmul.msk.f32.vlgmr.msra.gmra.mxu3 %vm101_vm0, %v98_v6  ;;  %v22_v11 = vld [vmem:[%s318_s0 + $0x8] sm:$0xff]  ;;  %v97_v16 = vld [vmem:[%s317_s1 + $0x18] sm:$0xff] }
   0x6   :  { %64 = vmatpush.msra.mxu0 %v28_v4  ;;  %v25_v12 = vld [vmem:[%s318_s0 + $0x20] sm:$0xff]  ;;  %v26_v15 = vld [vmem:[%s318_s0 + $0x28] sm:$0xff] }
   0x7   :  { %191 = vmatpush.msra.mxu2 %v28_v4  ;;  %v194_v18 = vld [vmem:[%s319_s4] ss:$0 sm:$0xff] }
   0x8   :  { %65 = vmatpush.msra.mxu0 %v27_v5 }
   0x9   :  { %192 = vmatpush.msra.mxu2 %v27_v5  ;;  %177 = vmatmul.msk.f32.vlgmr.msra.gmra.mxu0 %vm31_vm1, %v21_v7 }
   0xa   :  { %180 = vmatmul.msk.f32.vlgmr.msra.gmra.mxu2 %vm31_vm1, %v24_v8 }
   0xc   :  { %184 = vmatmul.msk.f32.gmra.mxu1 %vm101_vm0, %v95_v9 }
   0xd   :  { %188 = vmatmul.msk.f32.gmra.mxu3 %vm101_vm0, %v99_v10 }
  0x11   :  { %178 = vmatmul.msk.f32.gmra.mxu0 %vm31_vm1, %v22_v11 }
  0x12   :  { %181 = vmatmul.msk.f32.gmra.mxu2 %vm31_vm1, %v25_v12 }
  0x14   :  { %185 = vmatmul.msk.f32.gmra.mxu1 %vm101_vm0, %v96_v13 }
  0x19   :  { %179 = vmatmul.msk.f32.gmra.mxu0 %vm31_vm1, %v23_v14 }
  0x1a   :  { %182 = vmatmul.msk.f32.gmra.mxu2 %vm31_vm1, %v26_v15 }
  0x1c   :  { %186 = vmatmul.msk.f32.gmra.mxu1 %vm101_vm0, %v97_v16 }
  0x81   :  { %v137_v17 = vpop.f32.mrf.mxu1 }
  0x86   :  { %v67_v19 = vpop.f32.mrf.mxu0 }
  0x87   :  { %v88_v20 = vadd.f32 %v194_v18, %v67_v19 }
  0x88   :  { %v149_v30 = vpop.f32.mrf.mxu3 }
  0x89   :  { %v155_v21 = vadd.f32 %v137_v17, %v88_v20  ;;  %v140_v22 = vpop.f32.mrf.mxu1 }
  0x8b   :  { %v161_v23 = vmax.f32 %v155_v21, 0.0 }
  0x8d   :  { %167 = vst.msk [vmem:[%s320_s5] sm:$0xff] %vm31_vm1, %v161_v23  ;;  %v76_v24 = vpop.f32.mrf.mxu2 }
  0x8e   :  { %v70_v25 = vpop.f32.mrf.mxu0  ;;  %v91_v35 = vadd.f32 %v194_v18, %v76_v24 }
  0x8f   :  { %v89_v26 = vadd.f32 %v194_v18, %v70_v25 }
  0x90   :  { %v152_v44 = vpop.f32.mrf.mxu3 }
  0x91   :  { %v156_v27 = vadd.f32 %v140_v22, %v89_v26  ;;  %v143_v28 = vpop.f32.mrf.mxu1 }
  0x93   :  { %v162_v29 = vmax.f32 %v156_v27, 0.0 }
  0x95   :  { %168 = vst.msk [vmem:[%s320_s5 + $0x8] sm:$0xff] %vm31_vm1, %v162_v29  ;;  %v79_v31 = vpop.f32.mrf.mxu2 }
  0x96   :  { %v92_v32 = vadd.f32 %v194_v18, %v79_v31  ;;  %v73_v33 = vpop.f32.mrf.mxu0 }
  0x97   :  { %v90_v34 = vadd.f32 %v194_v18, %v73_v33 }
  0x98   :  { %v159_v36 = vadd.f32 %v149_v30, %v92_v32 }
  0x99   :  { %v157_v37 = vadd.f32 %v143_v28, %v90_v34  ;;  %v146_v38 = vpop.f32.mrf.mxu1 }
  0x9a   :  { %v165_v39 = vmax.f32 %v159_v36, 0.0  ;;  %v158_v40 = vadd.f32 %v146_v38, %v91_v35 }
  0x9b   :  { %v163_v41 = vmax.f32 %v157_v37, 0.0 }
  0x9c   :  { %171 = vst.msk [vmem:[%s320_s5 + $0x20] sm:$0xff] %vm31_vm1, %v165_v39  ;;  %v164_v42 = vmax.f32 %v158_v40, 0.0 }
  0x9d   :  { %169 = vst.msk [vmem:[%s320_s5 + $0x10] sm:$0xff] %vm31_vm1, %v163_v41  ;;  %v82_v43 = vpop.f32.mrf.mxu2 }
  0x9e   :  { %170 = vst.msk [vmem:[%s320_s5 + $0x18] sm:$0xff] %vm31_vm1, %v164_v42  ;;  %v93_v45 = vadd.f32 %v194_v18, %v82_v43 }
  0xa0   :  { %v160_v46 = vadd.f32 %v152_v44, %v93_v45 }
  0xa2   :  { %v166_v47 = vmax.f32 %v160_v46, 0.0 }
  0xa4   :  { %172 = vst.msk [vmem:[%s320_s5 + $0x28] sm:$0xff] %vm31_vm1, %v166_v47 }

// kernel: _lambda_.27
= control target key start
LH: loop header
LB: loop body
LE: loop exit
PB: predicated region body
PF: predicated region fallthrough
CT: control target
= control target key end

     0   :  { %vm25_vm0 = vcmask 261120   ;;  %vm88_vm1 = vcmask 130048   ;;  %s201_s1 = inlined_call_operand.vmem [shape: f32[32,16], index: 1, kind: input, shape index: {}]   ;;  %s202_s0 = inlined_call_operand.vmem [shape: f32[48,32], index: 0, kind: input, shape index: {}]   ;;  %s203_s2 = inlined_call_operand.vmem [shape: f32[1,16], index: 2, kind: input, shape index: {}]   ;;  %s204_s3 = inlined_call_operand.vmem [shape: f32[48,16], index: 3, kind: output, shape index: {}]  }
   0x1   :  { %v24_v0 = vld [vmem:[%s201_s1 + $0x18] sm:$0xff]  ;;  %v23_v1 = vld [vmem:[%s201_s1 + $0x10] sm:$0xff]  ;;  %v22_v2 = vld [vmem:[%s201_s1 + $0x8] sm:$0xff] }
   0x2   :  { %107 = vmatpush.msra.mxu3 %v24_v0  ;;  %105 = vmatpush.msra.mxu1 %v24_v0  ;;  %v21_v3 = vld [vmem:[%s201_s1] sm:$0xff]  ;;  %v16_v5 = vld [vmem:[%s202_s0 + $0x8] sm:$0xff]  ;;  %v18_v6 = vld [vmem:[%s202_s0 + $0x18] sm:$0xff] }
   0x3   :  { %106 = vmatpush.msra.mxu2 %v24_v0  ;;  %56 = vmatpush.msra.mxu0 %v24_v0  ;;  %v19_v4 = vld [vmem:[%s202_s0 + $0x20] sm:$0xff]  ;;  %v20_v8 = vld [vmem:[%s202_s0 + $0x28] sm:$0xff]  ;;  %v17_v9 = vld [vmem:[%s202_s0 + $0x10] sm:$0xff] }
   0x4   :  { %110 = vmatpush.msra.mxu3 %v23_v1  ;;  %108 = vmatpush.msra.mxu1 %v23_v1  ;;  %v15_v7 = vld [vmem:[%s202_s0] sm:$0xff] }
   0x5   :  { %109 = vmatpush.msra.mxu2 %v23_v1  ;;  %57 = vmatpush.msra.mxu0 %v23_v1  ;;  %v117_v10 = vld [vmem:[%s203_s2] ss:$0 sm:$0xff] }
   0x6   :  { %113 = vmatpush.msra.mxu3 %v22_v2  ;;  %111 = vmatpush.msra.mxu1 %v22_v2 }
   0x7   :  { %112 = vmatpush.msra.mxu2 %v22_v2  ;;  %58 = vmatpush.msra.mxu0 %v22_v2 }
   0x8   :  { %116 = vmatpush.msra.mxu3 %v21_v3  ;;  %114 = vmatpush.msra.mxu1 %v21_v3 }
   0x9   :  { %103 = vmatmul.msk.f32.vlgmr.msra.gmra.mxu3 %vm25_vm0, %v19_v4  ;;  %100 = vmatmul.msk.f32.vlgmr.msra.gmra.mxu1 %vm25_vm0, %v16_v5 }
   0xa   :  { %115 = vmatpush.msra.mxu2 %v21_v3  ;;  %59 = vmatpush.msra.mxu0 %v21_v3 }
   0xb   :  { %102 = vmatmul.msk.f32.vlgmr.msra.gmra.mxu2 %vm25_vm0, %v18_v6  ;;  %99 = vmatmul.msk.f32.vlgmr.msra.gmra.mxu0 %vm25_vm0, %v15_v7 }
  0x11   :  { %104 = vmatmul.msk.f32.gmra.mxu3 %vm25_vm0, %v20_v8  ;;  %101 = vmatmul.msk.f32.gmra.mxu1 %vm25_vm0, %v17_v9 }
  0x86   :  { %v64_v11 = vpop.f32.mrf.mxu1 }
  0x87   :  { %v83_v12 = vadd.f32 %v117_v10, %v64_v11 }
  0x88   :  { %v61_v13 = vpop.f32.mrf.mxu0 }
  0x89   :  { %90 = vst.msk [vmem:[%s204_s3 + $0x8] sm:$0xff] %vm88_vm1, %v83_v12  ;;  %v82_v14 = vadd.f32 %v117_v10, %v61_v13 }
  0x8b   :  { %89 = vst.msk [vmem:[%s204_s3] sm:$0xff] %vm88_vm1, %v82_v14 }
  0x8c   :  { %v73_v15 = vpop.f32.mrf.mxu3 }
  0x8d   :  { %v86_v16 = vadd.f32 %v117_v10, %v73_v15 }
  0x8e   :  { %v67_v17 = vpop.f32.mrf.mxu1  ;;  %v70_v18 = vpop.f32.mrf.mxu2 }
  0x8f   :  { %93 = vst.msk [vmem:[%s204_s3 + $0x20] sm:$0xff] %vm88_vm1, %v86_v16  ;;  %v84_v19 = vadd.f32 %v117_v10, %v67_v17  ;;  %v85_v20 = vadd.f32 %v117_v10, %v70_v18 }
  0x91   :  { %91 = vst.msk [vmem:[%s204_s3 + $0x10] sm:$0xff] %vm88_vm1, %v84_v19 }
  0x92   :  { %92 = vst.msk [vmem:[%s204_s3 + $0x18] sm:$0xff] %vm88_vm1, %v85_v20 }
  0x94   :  { %v76_v21 = vpop.f32.mrf.mxu3 }
  0x95   :  { %v87_v22 = vadd.f32 %v117_v10, %v76_v21 }
  0x97   :  { %94 = vst.msk [vmem:[%s204_s3 + $0x28] sm:$0xff] %vm88_vm1, %v87_v22 }

// kernel: _lambda_.22
= control target key start
LH: loop header
LB: loop body
LE: loop exit
PB: predicated region body
PF: predicated region fallthrough
CT: control target
= control target key end

     0   :  { %s1570_s12 = smov 0   ;;  %s1834_s0 = inlined_call_operand.vmem [shape: f32[32,2,96], index: 0, kind: input, shape index: {}]   ;;  %s1835_s1 = inlined_call_operand.vmem [shape: f32[32,96], index: 1, kind: input, shape index: {}]   ;;  %s1836_s2 = inlined_call_operand.vmem [shape: f32[1,96], index: 2, kind: input, shape index: {}]   ;;  %s1837_s3 = inlined_call_operand.vmem [shape: f32[32,2,32], index: 3, kind: output, shape index: {}]  }
   0x1 LB: > { %s1354_s13 = sadd.s32 4294967295, %s1544_s12   ;;  %p1358_p0 = scmp.ge.s32.totalorder %s1544_s12, 1  ;;  %s1544_s12 = sphi %s1570_s12, %s13_s12  }
   0x2   : > { %p138_p1 = scmp.lt.s32.totalorder %s1544_s12, 3 }
   0x4   : > { %p139_p2 = pnand %p1358_p0, %p138_p1 }
   0x5   : > { %s1359_s14 = sshll.u32 (!%p139_p2), %s1354_s13, 4  ;;  %p1363_p4 = scmp.ne.s32.totalorder (!%p139_p2), %s1354_s13, 0 }
   0x6   : > { %142 = sbr.rel (%p139_p2) target bundleno = 9228 (0x240c), region = 32  ;;  %p163_p3 = scmp.lt.s32.totalorder (!%p139_p2), %s1359_s14, 31 }
   0xb   : > { %s1839_s14 = smov (!%p163_p3, %s1359_s14), 31  ;;  %177 = sbr.rel (%p1363_p4) target bundleno = 18 (0x12), region = 36 }
   0xc   : > { %s1360_s15 = sshll.u32 %s1839_s14, 1 }
   0xd   : > { %s1581_s18 = scalar_lea.vmem %s1834_s0, %s1360_s15  ;;  %s1586_s21 = scalar_lea.vmem %s1837_s3, %s1360_s15 }
  0x10   : > { %vm178_vm0 = vcmask 254976   ;;  %v1546_v0 = vmov 0.0  }
  0x11   : > { %179 = vst.msk [vmem:[#allocation2] sm:$0x3] %vm178_vm0, %v1546_v0 }
  0x12 PF: > { %v1591_v1 = vld [vmem:[%s1835_s1 + $0x18] sm:$0xff]  ;;  %v1596_v2 = vld [vmem:[%s1835_s1 + $0x10] sm:$0xff]  ;;  %v1603_v3 = vld [vmem:[%s1835_s1 + $0x8] sm:$0xff]  ;;  %vm189_vm1 = vcmask 261120   ;;  %s1547_s5 = smov 64   ;;  %s1548_s6 = smov 96  }
  0x13   : > { %205 = vmatpush.msra.mxu0 %v1591_v1  ;;  %276 = vmatpush.msra.mxu1 %v1591_v1  ;;  %v1612_v4 = vld [vmem:[%s1835_s1] sm:$0xff]  ;;  %s1549_s7 = smov 32   ;;  %vm260_vm6 = vcmask 254976  }
  0x14   : > { %345 = vmatpush.msra.mxu2 %v1591_v1  ;;  %414 = vmatpush.msra.mxu3 %v1591_v1  ;;  %v1651_v6 = vld [vmem:[%s1836_s2] ss:$0 sm:$0xff]  ;;  %v1367_v38 = vld [vmem:[%s1581_s18 + $0x2] sm:$0x3] }
  0x15   : > { %206 = vmatpush.msra.mxu0 %v1596_v2  ;;  %277 = vmatpush.msra.mxu1 %v1596_v2  ;;  %v213_v9 = vld [vmem:[%s1581_s18] sm:$0x3] }
  0x16   : > { %346 = vmatpush.msra.mxu2 %v1596_v2  ;;  %415 = vmatpush.msra.mxu3 %v1596_v2 }
  0x17   : > { %207 = vmatpush.msra.mxu0 %v1603_v3  ;;  %278 = vmatpush.msra.mxu1 %v1603_v3 }
  0x18   : > { %v1617_v5 = vld [vmem:[#allocation2] sm:$0x3]  ;;  %347 = vmatpush.msra.mxu2 %v1603_v3  ;;  %416 = vmatpush.msra.mxu3 %v1603_v3 }
  0x19   : > { %208 = vmatpush.msra.mxu0 %v1612_v4  ;;  %279 = vmatpush.msra.mxu1 %v1612_v4 }
  0x1a   : > { %1364 = vmatmul.msk.f32.vlgmr.msra.gmra.mxu0 %vm189_vm1, %v1617_v5  ;;  %348 = vmatpush.msra.mxu2 %v1612_v4 }
  0x1b   : > { %417 = vmatpush.msra.mxu3 %v1612_v4  ;;  %483 = vmatpush.msrb.mxu0 %v1591_v1 }
  0x1c   : > { %552 = vmatpush.msrb.mxu1 %v1591_v1  ;;  %621 = vmatpush.msrb.mxu2 %v1591_v1 }
  0x1d   : > { %484 = vmatpush.msrb.mxu0 %v1596_v2  ;;  %690 = vmatpush.msrb.mxu3 %v1591_v1 }
  0x1e   : > { %553 = vmatpush.msrb.mxu1 %v1596_v2  ;;  %622 = vmatpush.msrb.mxu2 %v1596_v2 }
  0x1f   : > { %485 = vmatpush.msrb.mxu0 %v1603_v3  ;;  %691 = vmatpush.msrb.mxu3 %v1596_v2 }
  0x20   : > { %554 = vmatpush.msrb.mxu1 %v1603_v3  ;;  %623 = vmatpush.msrb.mxu2 %v1603_v3 }
  0x21   : > { %486 = vmatpush.msrb.mxu0 %v1612_v4  ;;  %692 = vmatpush.msrb.mxu3 %v1603_v3 }
  0x22   : > { %555 = vmatpush.msrb.mxu1 %v1612_v4  ;;  %624 = vmatpush.msrb.mxu2 %v1612_v4 }
  0x23   : > { %693 = vmatpush.msrb.mxu3 %v1612_v4  ;;  %759 = vmatpush.msra.mxu0 %v1591_v1 }
  0x25   : > { %760 = vmatpush.msra.mxu0 %v1596_v2 }
  0x27   : > { %761 = vmatpush.msra.mxu0 %v1603_v3 }
  0x29   : > { %762 = vmatpush.msra.mxu0 %v1612_v4 }
  0x97   : > { %v210_v7 = vpop.f32.mrf.mxu0 }
  0x98   : > { %v211_v8 = vadd.f32 %v1651_v6, %v210_v7  ;;  %v1371_v7 = vld [vmem:[%s1581_s18 + $0x4] sm:$0x3] }
  0x9a   : > { %235 = vrot.lane.b32.xlu0 %v211_v8, %s1547_s5  ;;  %v214_v10 = vadd.f32 %v213_v9, %v211_v8 }
  0x9c   : > { %v1365_v11 = vmul.f32 -1.442695, %v214_v10 }
  0x9e   : > { %1441 = vpow2.f32 %v1365_v11 }
  0xa4   : > { %v1442_v12 = vpop.eup %1441 }
  0xa5   : > { %v218_v13 = vadd.f32 1.0, %v1442_v12 }
  0xa7   : > { %1443 = vrcp.f32 %v218_v13  ;;  %v230_v19 = vand.u32 2147483648, %v218_v13  ;;  %vm224_vm3 = vweird.f32 %v218_v13  ;;  %v228_v20 = vand.u32 2147483647, %v218_v13 }
  0xa9   : > { %v231_v22 = vor.u32 1.1754944e-38, %v230_v19  ;;  %vm229_vm5 = vcmp.eq.f32.partialorder %v228_v20, 8.507059e+37 }
  0xad   : > { %v1444_v14 = vpop.eup %1443 }
  0xae   : > { %v220_v15 = vmul.f32 %v1444_v14, %v218_v13  ;;  %vm225_vm2 = vweird.f32 %v1444_v14 }
  0xaf   : > { %vm226_vm4 = vmor %vm224_vm3, %vm225_vm2 }
  0xb0   : > { %v221_v16 = vsub.f32 1.0, %v220_v15 }
  0xb2   : > { %v222_v17 = vmul.f32 %v1444_v14, %v221_v16 }
  0xb4   : > { %v223_v18 = vadd.f32 %v1444_v14, %v222_v17 }
  0xb6   : > { %v227_v21 = vsel %vm226_vm4, %v1444_v14, %v223_v18 }
  0xb7   : > { %v232_v24 = vsel %vm229_vm5, %v231_v22, %v227_v21 }
  0xb8   : > { %v245_v30 = vsub.f32 1.0, %v232_v24 }
 0x10c   : > { %v236_v23 = vpop.permute.xlu0 %235 }
 0x10d   : > { %v238_v25 = vmul.f32 %v236_v23, %v232_v24 }
 0x10f   : > { %240 = vrot.lane.b32.xlu0 %v238_v25, %s1547_s5 }
 0x181   : > { %v241_v26 = vpop.permute.xlu0 %240 }
 0x182   : > { %v243_v27 = vadd.f32 %v241_v26, %v213_v9 }
 0x184   : > { %1445 = vtanh.f32 %v243_v27 }
 0x18a   : > { %v1446_v28 = vpop.eup %1445 }
 0x18b   : > { %247 = vrot.lane.b32.xlu1 %v1446_v28, %s1548_s6 }
 0x193   : > { %251 = vrot.lane.b32.xlu1 %v1617_v5, %s1549_s7 }
 0x1fd   : > { %v248_v29 = vpop.permute.xlu1 %247 }
 0x1fe   : > { %v250_v32 = vmul.f32 %v248_v29, %v245_v30 }
 0x205   : > { %v252_v31 = vpop.permute.xlu1 %251 }
 0x206   : > { %v254_v33 = vmul.f32 %v252_v31, %v232_v24 }
 0x208   : > { %v255_v34 = vadd.f32 %v254_v33, %v250_v32 }
 0x20a   : > { %257 = vrot.lane.b32.xlu2 %v255_v34, %s1548_s6 }
 0x264   : > { %v258_v35 = vpop.permute.xlu2 %257 }
 0x265   : > { %261 = vst.msk [vmem:[%s1586_s21] sm:$0x3] %vm260_vm6, %v258_v35  ;;  %1366 = vmatmul.msk.f32.vlgmr.msra.gmra.mxu1 %vm189_vm1, %v258_v35  ;;  %v1375_v35 = vld [vmem:[%s1581_s18 + $0x6] sm:$0x3] }
 0x266   : > { %828 = vmatpush.msra.mxu1 %v1591_v1 }
 0x268   : > { %829 = vmatpush.msra.mxu1 %v1596_v2 }
 0x26a   : > { %830 = vmatpush.msra.mxu1 %v1603_v3 }
 0x26c   : > { %831 = vmatpush.msra.mxu1 %v1612_v4 }
 0x2e2   : > { %v281_v36 = vpop.f32.mrf.mxu1 }
 0x2e3   : > { %v282_v37 = vadd.f32 %v1651_v6, %v281_v36 }
 0x2e5   : > { %307 = vrot.lane.b32.xlu2 %v282_v37, %s1547_s5  ;;  %v286_v39 = vadd.f32 %v1367_v38, %v282_v37 }
 0x2e7   : > { %v1368_v40 = vmul.f32 -1.442695, %v286_v39 }
 0x2e9   : > { %1447 = vpow2.f32 %v1368_v40 }
 0x2ef   : > { %v1448_v41 = vpop.eup %1447 }
 0x2f0   : > { %v290_v42 = vadd.f32 1.0, %v1448_v41 }
 0x2f2   : > { %1449 = vrcp.f32 %v290_v42  ;;  %v302_v48 = vand.u32 2147483648, %v290_v42  ;;  %vm296_vm8 = vweird.f32 %v290_v42  ;;  %v300_v49 = vand.u32 2147483647, %v290_v42 }
 0x2f4   : > { %v303_v51 = vor.u32 1.1754944e-38, %v302_v48  ;;  %vm301_vm10 = vcmp.eq.f32.partialorder %v300_v49, 8.507059e+37 }
 0x2f8   : > { %v1450_v43 = vpop.eup %1449 }
 0x2f9   : > { %v292_v44 = vmul.f32 %v1450_v43, %v290_v42  ;;  %vm297_vm7 = vweird.f32 %v1450_v43 }
 0x2fa   : > { %vm298_vm9 = vmor %vm296_vm8, %vm297_vm7 }
 0x2fb   : > { %v293_v45 = vsub.f32 1.0, %v292_v44 }
 0x2fd   : > { %v294_v46 = vmul.f32 %v1450_v43, %v293_v45 }
 0x2ff   : > { %v295_v47 = vadd.f32 %v1450_v43, %v294_v46 }
 0x301   : > { %v299_v50 = vsel %vm298_vm9, %v1450_v43, %v295_v47 }
 0x302   : > { %v304_v53 = vsel %vm301_vm10, %v303_v51, %v299_v50 }
 0x303   : > { %v317_v58 = vsub.f32 1.0, %v304_v53  ;;  %v323_v60 = vmul.f32 %v304_v53, %v255_v34 }
 0x33f   : > { %v308_v52 = vpop.permute.xlu2 %307 }
 0x340   : > { %v310_v54 = vmul.f32 %v308_v52, %v304_v53 }
 0x342   : > { %312 = vrot.lane.b32.xlu0 %v310_v54, %s1547_s5 }
 0x3b4   : > { %v313_v55 = vpop.permute.xlu0 %312 }
 0x3b5   : > { %v315_v56 = vadd.f32 %v1367_v38, %v313_v55 }
 0x3b7   : > { %1451 = vtanh.f32 %v315_v56 }
 0x3bd   : > { %v1452_v57 = vpop.eup %1451 }
 0x3be   : > { %319 = vrot.lane.b32.xlu1 %v1452_v57, %s1548_s6 }
 0x430   : > { %v320_v59 = vpop.permute.xlu1 %319 }
 0x431   : > { %v322_v61 = vmul.f32 %v320_v59, %v317_v58 }
 0x433   : > { %v324_v62 = vadd.f32 %v323_v60, %v322_v61 }
 0x435   : > { %326 = vrot.lane.b32.xlu2 %v324_v62, %s1548_s6 }
 0x48f   : > { %v327_v63 = vpop.permute.xlu2 %326 }
 0x490   : > { %1369 = vst.msk [vmem:[%s1586_s21 + $0x2] sm:$0x3] %vm260_vm6, %v327_v63  ;;  %1370 = vmatmul.msk.f32.vlgmr.msra.gmra.mxu2 %vm189_vm1, %v327_v63  ;;  %v1379_v63 = vld [vmem:[%s1581_s18 + $0x8] sm:$0x3] }
 0x491   : > { %897 = vmatpush.msra.mxu2 %v1591_v1 }
 0x493   : > { %898 = vmatpush.msra.mxu2 %v1596_v2 }
 0x495   : > { %899 = vmatpush.msra.mxu2 %v1603_v3 }
 0x497   : > { %900 = vmatpush.msra.mxu2 %v1612_v4 }
 0x513   : > { %v350_v0 = vpop.f32.mrf.mxu2 }
 0x514   : > { %v351_v5 = vadd.f32 %v1651_v6, %v350_v0 }
 0x516   : > { %376 = vrot.lane.b32.xlu0 %v351_v5, %s1547_s5  ;;  %v355_v8 = vadd.f32 %v1371_v7, %v351_v5 }
 0x518   : > { %v1372_v9 = vmul.f32 -1.442695, %v355_v8 }
 0x51a   : > { %1453 = vpow2.f32 %v1372_v9 }
 0x520   : > { %v1454_v10 = vpop.eup %1453 }
 0x521   : > { %v359_v11 = vadd.f32 1.0, %v1454_v10 }
 0x523   : > { %1455 = vrcp.f32 %v359_v11  ;;  %v371_v17 = vand.u32 2147483648, %v359_v11  ;;  %vm365_vm12 = vweird.f32 %v359_v11  ;;  %v369_v18 = vand.u32 2147483647, %v359_v11 }
 0x525   : > { %v372_v20 = vor.u32 1.1754944e-38, %v371_v17  ;;  %vm370_vm14 = vcmp.eq.f32.partialorder %v369_v18, 8.507059e+37 }
 0x529   : > { %v1456_v12 = vpop.eup %1455 }
 0x52a   : > { %v361_v13 = vmul.f32 %v1456_v12, %v359_v11  ;;  %vm366_vm11 = vweird.f32 %v1456_v12 }
 0x52b   : > { %vm367_vm13 = vmor %vm365_vm12, %vm366_vm11 }
 0x52c   : > { %v362_v14 = vsub.f32 1.0, %v361_v13 }
 0x52e   : > { %v363_v15 = vmul.f32 %v1456_v12, %v362_v14 }
 0x530   : > { %v364_v16 = vadd.f32 %v1456_v12, %v363_v15 }
 0x532   : > { %v368_v19 = vsel %vm367_vm13, %v1456_v12, %v364_v16 }
 0x533   : > { %v373_v22 = vsel %vm370_vm14, %v372_v20, %v368_v19 }
 0x534   : > { %v386_v27 = vsub.f32 1.0, %v373_v22  ;;  %v392_v29 = vmul.f32 %v373_v22, %v324_v62 }
 0x588   : > { %v377_v21 = vpop.permute.xlu0 %376 }
 0x589   : > { %v379_v23 = vmul.f32 %v377_v21, %v373_v22 }
 0x58b   : > { %381 = vrot.lane.b32.xlu1 %v379_v23, %s1547_s5 }
 0x5fd   : > { %v382_v24 = vpop.permute.xlu1 %381 }
 0x5fe   : > { %v384_v25 = vadd.f32 %v1371_v7, %v382_v24 }
 0x600   : > { %1457 = vtanh.f32 %v384_v25 }
 0x606   : > { %v1458_v26 = vpop.eup %1457 }
 0x607   : > { %388 = vrot.lane.b32.xlu2 %v1458_v26, %s1548_s6 }
 0x661   : > { %v389_v28 = vpop.permute.xlu2 %388 }
 0x662   : > { %v391_v30 = vmul.f32 %v389_v28, %v386_v27 }
 0x664   : > { %v393_v31 = vadd.f32 %v392_v29, %v391_v30 }
 0x666   : > { %395 = vrot.lane.b32.xlu0 %v393_v31, %s1548_s6 }
 0x6d8   : > { %v396_v32 = vpop.permute.xlu0 %395 }
 0x6d9   : > { %1373 = vst.msk [vmem:[%s1586_s21 + $0x4] sm:$0x3] %vm260_vm6, %v396_v32  ;;  %1374 = vmatmul.msk.f32.vlgmr.msra.gmra.mxu3 %vm189_vm1, %v396_v32  ;;  %v1383_v32 = vld [vmem:[%s1581_s18 + $0xa] sm:$0x3] }
 0x6da   : > { %966 = vmatpush.msra.mxu3 %v1591_v1 }
 0x6dc   : > { %967 = vmatpush.msra.mxu3 %v1596_v2 }
 0x6de   : > { %968 = vmatpush.msra.mxu3 %v1603_v3 }
 0x6e0   : > { %969 = vmatpush.msra.mxu3 %v1612_v4 }
 0x75c   : > { %v419_v33 = vpop.f32.mrf.mxu3 }
 0x75d   : > { %v420_v34 = vadd.f32 %v1651_v6, %v419_v33 }
 0x75f   : > { %445 = vrot.lane.b32.xlu1 %v420_v34, %s1547_s5  ;;  %v424_v36 = vadd.f32 %v1375_v35, %v420_v34 }
 0x761   : > { %v1376_v37 = vmul.f32 -1.442695, %v424_v36 }
 0x763   : > { %1459 = vpow2.f32 %v1376_v37 }
 0x769   : > { %v1460_v38 = vpop.eup %1459 }
 0x76a   : > { %v428_v39 = vadd.f32 1.0, %v1460_v38 }
 0x76c   : > { %1461 = vrcp.f32 %v428_v39  ;;  %v440_v45 = vand.u32 2147483648, %v428_v39  ;;  %vm434_vm0 = vweird.f32 %v428_v39  ;;  %v438_v46 = vand.u32 2147483647, %v428_v39 }
 0x76e   : > { %v441_v48 = vor.u32 1.1754944e-38, %v440_v45  ;;  %vm439_vm3 = vcmp.eq.f32.partialorder %v438_v46, 8.507059e+37 }
 0x772   : > { %v1462_v40 = vpop.eup %1461 }
 0x773   : > { %v430_v41 = vmul.f32 %v1462_v40, %v428_v39  ;;  %vm435_vm15 = vweird.f32 %v1462_v40 }
 0x774   : > { %vm436_vm2 = vmor %vm434_vm0, %vm435_vm15 }
 0x775   : > { %v431_v42 = vsub.f32 1.0, %v430_v41 }
 0x777   : > { %v432_v43 = vmul.f32 %v1462_v40, %v431_v42 }
 0x779   : > { %v433_v44 = vadd.f32 %v1462_v40, %v432_v43 }
 0x77b   : > { %v437_v47 = vsel %vm436_vm2, %v1462_v40, %v433_v44 }
 0x77c   : > { %v442_v50 = vsel %vm439_vm3, %v441_v48, %v437_v47 }
 0x77d   : > { %v455_v55 = vsub.f32 1.0, %v442_v50  ;;  %v461_v57 = vmul.f32 %v442_v50, %v393_v31 }
 0x7d1   : > { %v446_v49 = vpop.permute.xlu1 %445 }
 0x7d2   : > { %v448_v51 = vmul.f32 %v446_v49, %v442_v50 }
 0x7d4   : > { %450 = vrot.lane.b32.xlu2 %v448_v51, %s1547_s5 }
 0x82e   : > { %v451_v52 = vpop.permute.xlu2 %450 }
 0x82f   : > { %v453_v53 = vadd.f32 %v1375_v35, %v451_v52 }
 0x831   : > { %1463 = vtanh.f32 %v453_v53 }
 0x837   : > { %v1464_v54 = vpop.eup %1463 }
 0x838   : > { %457 = vrot.lane.b32.xlu0 %v1464_v54, %s1548_s6 }
 0x8aa   : > { %v458_v56 = vpop.permute.xlu0 %457 }
 0x8ab   : > { %v460_v58 = vmul.f32 %v458_v56, %v455_v55 }
 0x8ad   : > { %v462_v59 = vadd.f32 %v461_v57, %v460_v58 }
 0x8af   : > { %464 = vrot.lane.b32.xlu1 %v462_v59, %s1548_s6 }
 0x921   : > { %v465_v60 = vpop.permute.xlu1 %464 }
 0x922   : > { %1377 = vst.msk [vmem:[%s1586_s21 + $0x6] sm:$0x3] %vm260_vm6, %v465_v60  ;;  %1378 = vmatmul.msk.f32.vlgmr.msrb.gmra.mxu0 %vm189_vm1, %v465_v60  ;;  %v1387_v60 = vld [vmem:[%s1581_s18 + $0xc] sm:$0x3] }
 0x923   : > { %1035 = vmatpush.msrb.mxu0 %v1591_v1 }
 0x925   : > { %1036 = vmatpush.msrb.mxu0 %v1596_v2 }
 0x927   : > { %1037 = vmatpush.msrb.mxu0 %v1603_v3 }
 0x929   : > { %1038 = vmatpush.msrb.mxu0 %v1612_v4 }
 0x99f   : > { %v488_v61 = vpop.f32.mrf.mxu0 }
 0x9a0   : > { %v489_v62 = vadd.f32 %v1651_v6, %v488_v61 }
 0x9a2   : > { %514 = vrot.lane.b32.xlu2 %v489_v62, %s1547_s5  ;;  %v493_v0 = vadd.f32 %v1379_v63, %v489_v62 }
 0x9a4   : > { %v1380_v5 = vmul.f32 -1.442695, %v493_v0 }
 0x9a6   : > { %1465 = vpow2.f32 %v1380_v5 }
 0x9ac   : > { %v1466_v7 = vpop.eup %1465 }
 0x9ad   : > { %v497_v8 = vadd.f32 1.0, %v1466_v7 }
 0x9af   : > { %1467 = vrcp.f32 %v497_v8  ;;  %v509_v14 = vand.u32 2147483648, %v497_v8  ;;  %vm503_vm5 = vweird.f32 %v497_v8  ;;  %v507_v15 = vand.u32 2147483647, %v497_v8 }
 0x9b1   : > { %v510_v17 = vor.u32 1.1754944e-38, %v509_v14  ;;  %vm508_vm8 = vcmp.eq.f32.partialorder %v507_v15, 8.507059e+37 }
 0x9b5   : > { %v1468_v9 = vpop.eup %1467 }
 0x9b6   : > { %v499_v10 = vmul.f32 %v1468_v9, %v497_v8  ;;  %vm504_vm4 = vweird.f32 %v1468_v9 }
 0x9b7   : > { %vm505_vm7 = vmor %vm503_vm5, %vm504_vm4 }
 0x9b8   : > { %v500_v11 = vsub.f32 1.0, %v499_v10 }
 0x9ba   : > { %v501_v12 = vmul.f32 %v1468_v9, %v500_v11 }
 0x9bc   : > { %v502_v13 = vadd.f32 %v1468_v9, %v501_v12 }
 0x9be   : > { %v506_v16 = vsel %vm505_vm7, %v1468_v9, %v502_v13 }
 0x9bf   : > { %v511_v19 = vsel %vm508_vm8, %v510_v17, %v506_v16 }
 0x9c0   : > { %v524_v24 = vsub.f32 1.0, %v511_v19  ;;  %v530_v26 = vmul.f32 %v511_v19, %v462_v59 }
 0x9fc   : > { %v515_v18 = vpop.permute.xlu2 %514 }
 0x9fd   : > { %v517_v20 = vmul.f32 %v515_v18, %v511_v19 }
 0x9ff   : > { %519 = vrot.lane.b32.xlu0 %v517_v20, %s1547_s5 }
 0xa71   : > { %v520_v21 = vpop.permute.xlu0 %519 }
 0xa72   : > { %v522_v22 = vadd.f32 %v1379_v63, %v520_v21 }
 0xa74   : > { %1469 = vtanh.f32 %v522_v22 }
 0xa7a   : > { %v1470_v23 = vpop.eup %1469 }
 0xa7b   : > { %526 = vrot.lane.b32.xlu1 %v1470_v23, %s1548_s6 }
 0xaed   : > { %v527_v25 = vpop.permute.xlu1 %526 }
 0xaee   : > { %v529_v27 = vmul.f32 %v527_v25, %v524_v24 }
 0xaf0   : > { %v531_v28 = vadd.f32 %v530_v26, %v529_v27 }
 0xaf2   : > { %533 = vrot.lane.b32.xlu2 %v531_v28, %s1548_s6 }
 0xb4c   : > { %v534_v29 = vpop.permute.xlu2 %533 }
 0xb4d   : > { %1381 = vst.msk [vmem:[%s1586_s21 + $0x8] sm:$0x3] %vm260_vm6, %v534_v29  ;;  %1382 = vmatmul.msk.f32.vlgmr.msrb.gmra.mxu1 %vm189_vm1, %v534_v29  ;;  %v1391_v29 = vld [vmem:[%s1581_s18 + $0xe] sm:$0x3] }
 0xb4e   : > { %1104 = vmatpush.msrb.mxu1 %v1591_v1 }
 0xb50   : > { %1105 = vmatpush.msrb.mxu1 %v1596_v2 }
 0xb52   : > { %1106 = vmatpush.msrb.mxu1 %v1603_v3 }
 0xb54   : > { %1107 = vmatpush.msrb.mxu1 %v1612_v4 }
 0xbca   : > { %v557_v30 = vpop.f32.mrf.mxu1 }
 0xbcb   : > { %v558_v31 = vadd.f32 %v1651_v6, %v557_v30 }
 0xbcd   : > { %583 = vrot.lane.b32.xlu0 %v558_v31, %s1547_s5  ;;  %v562_v33 = vadd.f32 %v1383_v32, %v558_v31 }
 0xbcf   : > { %v1384_v34 = vmul.f32 -1.442695, %v562_v33 }
 0xbd1   : > { %1471 = vpow2.f32 %v1384_v34 }
 0xbd7   : > { %v1472_v35 = vpop.eup %1471 }
 0xbd8   : > { %v566_v36 = vadd.f32 1.0, %v1472_v35 }
 0xbda   : > { %1473 = vrcp.f32 %v566_v36  ;;  %v578_v42 = vand.u32 2147483648, %v566_v36  ;;  %vm572_vm10 = vweird.f32 %v566_v36  ;;  %v576_v43 = vand.u32 2147483647, %v566_v36 }
 0xbdc   : > { %v579_v45 = vor.u32 1.1754944e-38, %v578_v42  ;;  %vm577_vm12 = vcmp.eq.f32.partialorder %v576_v43, 8.507059e+37 }
 0xbe0   : > { %v1474_v37 = vpop.eup %1473 }
 0xbe1   : > { %v568_v38 = vmul.f32 %v1474_v37, %v566_v36  ;;  %vm573_vm9 = vweird.f32 %v1474_v37 }
 0xbe2   : > { %vm574_vm11 = vmor %vm572_vm10, %vm573_vm9 }
 0xbe3   : > { %v569_v39 = vsub.f32 1.0, %v568_v38 }
 0xbe5   : > { %v570_v40 = vmul.f32 %v1474_v37, %v569_v39 }
 0xbe7   : > { %v571_v41 = vadd.f32 %v1474_v37, %v570_v40 }
 0xbe9   : > { %v575_v44 = vsel %vm574_vm11, %v1474_v37, %v571_v41 }
 0xbea   : > { %v580_v47 = vsel %vm577_vm12, %v579_v45, %v575_v44 }
 0xbeb   : > { %v593_v52 = vsub.f32 1.0, %v580_v47  ;;  %v599_v54 = vmul.f32 %v580_v47, %v531_v28 }
 0xc3f   : > { %v584_v46 = vpop.permute.xlu0 %583 }
 0xc40   : > { %v586_v48 = vmul.f32 %v584_v46, %v580_v47 }
 0xc42   : > { %588 = vrot.lane.b32.xlu1 %v586_v48, %s1547_s5 }
 0xcb4   : > { %v589_v49 = vpop.permute.xlu1 %588 }
 0xcb5   : > { %v591_v50 = vadd.f32 %v1383_v32, %v589_v49 }
 0xcb7   : > { %1475 = vtanh.f32 %v591_v50 }
 0xcbd   : > { %v1476_v51 = vpop.eup %1475 }
 0xcbe   : > { %595 = vrot.lane.b32.xlu2 %v1476_v51, %s1548_s6 }
 0xd18   : > { %v596_v53 = vpop.permute.xlu2 %595 }
 0xd19   : > { %v598_v55 = vmul.f32 %v596_v53, %v593_v52  ;;  %v1395_v53 = vld [vmem:[%s1581_s18 + $0x10] sm:$0x3] }
 0xd1b   : > { %v600_v56 = vadd.f32 %v599_v54, %v598_v55 }
 0xd1d   : > { %602 = vrot.lane.b32.xlu0 %v600_v56, %s1548_s6 }
 0xd8f   : > { %v603_v57 = vpop.permute.xlu0 %602 }
 0xd90   : > { %1385 = vst.msk [vmem:[%s1586_s21 + $0xa] sm:$0x3] %vm260_vm6, %v603_v57  ;;  %1386 = vmatmul.msk.f32.vlgmr.msrb.gmra.mxu2 %vm189_vm1, %v603_v57 }
 0xd91   : > { %1173 = vmatpush.msrb.mxu2 %v1591_v1 }
 0xd93   : > { %1174 = vmatpush.msrb.mxu2 %v1596_v2 }
 0xd95   : > { %1175 = vmatpush.msrb.mxu2 %v1603_v3 }
 0xd97   : > { %1176 = vmatpush.msrb.mxu2 %v1612_v4 }
 0xe13   : > { %v626_v58 = vpop.f32.mrf.mxu2 }
 0xe14   : > { %v627_v59 = vadd.f32 %v1651_v6, %v626_v58 }
 0xe16   : > { %652 = vrot.lane.b32.xlu1 %v627_v59, %s1547_s5  ;;  %v631_v61 = vadd.f32 %v1387_v60, %v627_v59 }
 0xe18   : > { %v1388_v62 = vmul.f32 -1.442695, %v631_v61 }
 0xe1a   : > { %1477 = vpow2.f32 %v1388_v62 }
 0xe20   : > { %v1478_v63 = vpop.eup %1477 }
 0xe21   : > { %v635_v0 = vadd.f32 1.0, %v1478_v63 }
 0xe23   : > { %1479 = vrcp.f32 %v635_v0  ;;  %v647_v11 = vand.u32 2147483648, %v635_v0  ;;  %vm641_vm14 = vweird.f32 %v635_v0  ;;  %v645_v12 = vand.u32 2147483647, %v635_v0 }
 0xe25   : > { %v648_v14 = vor.u32 1.1754944e-38, %v647_v11  ;;  %vm646_vm0 = vcmp.eq.f32.partialorder %v645_v12, 8.507059e+37 }
 0xe29   : > { %v1480_v5 = vpop.eup %1479 }
 0xe2a   : > { %v637_v7 = vmul.f32 %v1480_v5, %v635_v0  ;;  %vm642_vm13 = vweird.f32 %v1480_v5 }
 0xe2b   : > { %vm643_vm15 = vmor %vm641_vm14, %vm642_vm13 }
 0xe2c   : > { %v638_v8 = vsub.f32 1.0, %v637_v7 }
 0xe2e   : > { %v639_v9 = vmul.f32 %v1480_v5, %v638_v8 }
 0xe30   : > { %v640_v10 = vadd.f32 %v1480_v5, %v639_v9 }
 0xe32   : > { %v644_v13 = vsel %vm643_vm15, %v1480_v5, %v640_v10 }
 0xe33   : > { %v649_v16 = vsel %vm646_vm0, %v648_v14, %v644_v13 }
 0xe34   : > { %v662_v21 = vsub.f32 1.0, %v649_v16  ;;  %v668_v23 = vmul.f32 %v649_v16, %v600_v56 }
 0xe88   : > { %v653_v15 = vpop.permute.xlu1 %652 }
 0xe89   : > { %v655_v17 = vmul.f32 %v653_v15, %v649_v16 }
 0xe8b   : > { %657 = vrot.lane.b32.xlu2 %v655_v17, %s1547_s5 }
 0xee5   : > { %v658_v18 = vpop.permute.xlu2 %657 }
 0xee6   : > { %v660_v19 = vadd.f32 %v1387_v60, %v658_v18 }
 0xee8   : > { %1481 = vtanh.f32 %v660_v19 }
 0xeee   : > { %v1482_v20 = vpop.eup %1481 }
 0xeef   : > { %664 = vrot.lane.b32.xlu0 %v1482_v20, %s1548_s6 }
 0xf61   : > { %v665_v22 = vpop.permute.xlu0 %664 }
 0xf62   : > { %v667_v24 = vmul.f32 %v665_v22, %v662_v21  ;;  %v1399_v22 = vld [vmem:[%s1581_s18 + $0x12] sm:$0x3] }
 0xf64   : > { %v669_v25 = vadd.f32 %v668_v23, %v667_v24 }
 0xf66   : > { %671 = vrot.lane.b32.xlu1 %v669_v25, %s1548_s6 }
 0xfd8   : > { %v672_v26 = vpop.permute.xlu1 %671 }
 0xfd9   : > { %1389 = vst.msk [vmem:[%s1586_s21 + $0xc] sm:$0x3] %vm260_vm6, %v672_v26  ;;  %1390 = vmatmul.msk.f32.vlgmr.msrb.gmra.mxu3 %vm189_vm1, %v672_v26 }
 0xfda   : > { %1242 = vmatpush.msrb.mxu3 %v1591_v1 }
 0xfdc   : > { %1243 = vmatpush.msrb.mxu3 %v1596_v2 }
 0xfde   : > { %1244 = vmatpush.msrb.mxu3 %v1603_v3 }
 0xfe0   : > { %1245 = vmatpush.msrb.mxu3 %v1612_v4 }
0x105c   : > { %v695_v27 = vpop.f32.mrf.mxu3 }
0x105d   : > { %v696_v28 = vadd.f32 %v1651_v6, %v695_v27 }
0x105f   : > { %721 = vrot.lane.b32.xlu2 %v696_v28, %s1547_s5  ;;  %v700_v30 = vadd.f32 %v1391_v29, %v696_v28 }
0x1061   : > { %v1392_v31 = vmul.f32 -1.442695, %v700_v30 }
0x1063   : > { %1483 = vpow2.f32 %v1392_v31 }
0x1069   : > { %v1484_v32 = vpop.eup %1483 }
0x106a   : > { %v704_v33 = vadd.f32 1.0, %v1484_v32 }
0x106c   : > { %1485 = vrcp.f32 %v704_v33  ;;  %v716_v3 = vand.u32 2147483648, %v704_v33  ;;  %vm710_vm3 = vweird.f32 %v704_v33  ;;  %v714_v4 = vand.u32 2147483647, %v704_v33 }
0x106e   : > { %v717_v38 = vor.u32 1.1754944e-38, %v716_v3  ;;  %vm715_vm5 = vcmp.eq.f32.partialorder %v714_v4, 8.507059e+37 }
0x1072   : > { %v1486_v34 = vpop.eup %1485 }
0x1073   : > { %v706_v1 = vmul.f32 %v1486_v34, %v704_v33  ;;  %vm711_vm2 = vweird.f32 %v1486_v34 }
0x1074   : > { %vm712_vm4 = vmor %vm710_vm3, %vm711_vm2 }
0x1075   : > { %v707_v35 = vsub.f32 1.0, %v706_v1 }
0x1077   : > { %v708_v2 = vmul.f32 %v1486_v34, %v707_v35 }
0x1079   : > { %v709_v36 = vadd.f32 %v1486_v34, %v708_v2 }
0x107b   : > { %v713_v37 = vsel %vm712_vm4, %v1486_v34, %v709_v36 }
0x107c   : > { %v718_v40 = vsel %vm715_vm5, %v717_v38, %v713_v37 }
0x107d   : > { %v731_v45 = vsub.f32 1.0, %v718_v40  ;;  %v737_v47 = vmul.f32 %v718_v40, %v669_v25 }
0x10b9   : > { %v722_v39 = vpop.permute.xlu2 %721 }
0x10ba   : > { %v724_v41 = vmul.f32 %v722_v39, %v718_v40 }
0x10bc   : > { %726 = vrot.lane.b32.xlu0 %v724_v41, %s1547_s5 }
0x112e   : > { %v727_v42 = vpop.permute.xlu0 %726 }
0x112f   : > { %v729_v43 = vadd.f32 %v1391_v29, %v727_v42 }
0x1131   : > { %1487 = vtanh.f32 %v729_v43 }
0x1137   : > { %v1488_v44 = vpop.eup %1487 }
0x1138   : > { %733 = vrot.lane.b32.xlu1 %v1488_v44, %s1548_s6 }
0x11aa   : > { %v734_v46 = vpop.permute.xlu1 %733 }
0x11ab   : > { %v736_v48 = vmul.f32 %v734_v46, %v731_v45  ;;  %v1403_v46 = vld [vmem:[%s1581_s18 + $0x14] sm:$0x3] }
0x11ad   : > { %v738_v49 = vadd.f32 %v737_v47, %v736_v48 }
0x11af   : > { %740 = vrot.lane.b32.xlu2 %v738_v49, %s1548_s6 }
0x1209   : > { %v741_v50 = vpop.permute.xlu2 %740 }
0x120a   : > { %1393 = vst.msk [vmem:[%s1586_s21 + $0xe] sm:$0x3] %vm260_vm6, %v741_v50  ;;  %1394 = vmatmul.msk.f32.vlgmr.msra.gmra.mxu0 %vm189_vm1, %v741_v50 }
0x1287   : > { %v764_v51 = vpop.f32.mrf.mxu0 }
0x1288   : > { %v765_v52 = vadd.f32 %v1651_v6, %v764_v51 }
0x128a   : > { %790 = vrot.lane.b32.xlu0 %v765_v52, %s1547_s5  ;;  %v769_v54 = vadd.f32 %v1395_v53, %v765_v52 }
0x128c   : > { %v1396_v55 = vmul.f32 -1.442695, %v769_v54 }
0x128e   : > { %1489 = vpow2.f32 %v1396_v55 }
0x1294   : > { %v1490_v56 = vpop.eup %1489 }
0x1295   : > { %v773_v57 = vadd.f32 1.0, %v1490_v56 }
0x1297   : > { %1491 = vrcp.f32 %v773_v57  ;;  %v785_v63 = vand.u32 2147483648, %v773_v57  ;;  %vm779_vm8 = vweird.f32 %v773_v57  ;;  %v783_v0 = vand.u32 2147483647, %v773_v57 }
0x1299   : > { %v786_v7 = vor.u32 1.1754944e-38, %v785_v63  ;;  %vm784_vm10 = vcmp.eq.f32.partialorder %v783_v0, 8.507059e+37 }
0x129d   : > { %v1492_v58 = vpop.eup %1491 }
0x129e   : > { %v775_v59 = vmul.f32 %v1492_v58, %v773_v57  ;;  %vm780_vm7 = vweird.f32 %v1492_v58 }
0x129f   : > { %vm781_vm9 = vmor %vm779_vm8, %vm780_vm7 }
0x12a0   : > { %v776_v60 = vsub.f32 1.0, %v775_v59 }
0x12a2   : > { %v777_v61 = vmul.f32 %v1492_v58, %v776_v60 }
0x12a4   : > { %v778_v62 = vadd.f32 %v1492_v58, %v777_v61 }
0x12a6   : > { %v782_v5 = vsel %vm781_vm9, %v1492_v58, %v778_v62 }
0x12a7   : > { %v787_v9 = vsel %vm784_vm10, %v786_v7, %v782_v5 }
0x12a8   : > { %v800_v14 = vsub.f32 1.0, %v787_v9  ;;  %v806_v16 = vmul.f32 %v787_v9, %v738_v49 }
0x12fc   : > { %v791_v8 = vpop.permute.xlu0 %790 }
0x12fd   : > { %v793_v10 = vmul.f32 %v791_v8, %v787_v9 }
0x12ff   : > { %795 = vrot.lane.b32.xlu1 %v793_v10, %s1547_s5 }
0x1371   : > { %v796_v11 = vpop.permute.xlu1 %795 }
0x1372   : > { %v798_v12 = vadd.f32 %v1395_v53, %v796_v11 }
0x1374   : > { %1493 = vtanh.f32 %v798_v12 }
0x137a   : > { %v1494_v13 = vpop.eup %1493 }
0x137b   : > { %802 = vrot.lane.b32.xlu2 %v1494_v13, %s1548_s6 }
0x13d5   : > { %v803_v15 = vpop.permute.xlu2 %802 }
0x13d6   : > { %v805_v17 = vmul.f32 %v803_v15, %v800_v14  ;;  %v1407_v15 = vld [vmem:[%s1581_s18 + $0x16] sm:$0x3] }
0x13d8   : > { %v807_v18 = vadd.f32 %v806_v16, %v805_v17 }
0x13da   : > { %809 = vrot.lane.b32.xlu0 %v807_v18, %s1548_s6 }
0x144c   : > { %v810_v19 = vpop.permute.xlu0 %809 }
0x144d   : > { %1397 = vst.msk [vmem:[%s1586_s21 + $0x10] sm:$0x3] %vm260_vm6, %v810_v19  ;;  %1398 = vmatmul.msk.f32.vlgmr.msra.gmra.mxu1 %vm189_vm1, %v810_v19 }
0x14ca   : > { %v833_v20 = vpop.f32.mrf.mxu1 }
0x14cb   : > { %v834_v21 = vadd.f32 %v1651_v6, %v833_v20 }
0x14cd   : > { %859 = vrot.lane.b32.xlu1 %v834_v21, %s1547_s5  ;;  %v838_v23 = vadd.f32 %v1399_v22, %v834_v21 }
0x14cf   : > { %v1400_v24 = vmul.f32 -1.442695, %v838_v23 }
0x14d1   : > { %1495 = vpow2.f32 %v1400_v24 }
0x14d7   : > { %v1496_v25 = vpop.eup %1495 }
0x14d8   : > { %v842_v26 = vadd.f32 1.0, %v1496_v25 }
0x14da   : > { %1497 = vrcp.f32 %v842_v26  ;;  %v854_v32 = vand.u32 2147483648, %v842_v26  ;;  %vm848_vm12 = vweird.f32 %v842_v26  ;;  %v852_v33 = vand.u32 2147483647, %v842_v26 }
0x14dc   : > { %v855_v1 = vor.u32 1.1754944e-38, %v854_v32  ;;  %vm853_vm14 = vcmp.eq.f32.partialorder %v852_v33, 8.507059e+37 }
0x14e0   : > { %v1498_v27 = vpop.eup %1497 }
0x14e1   : > { %v844_v28 = vmul.f32 %v1498_v27, %v842_v26  ;;  %vm849_vm11 = vweird.f32 %v1498_v27 }
0x14e2   : > { %vm850_vm13 = vmor %vm848_vm12, %vm849_vm11 }
0x14e3   : > { %v845_v29 = vsub.f32 1.0, %v844_v28 }
0x14e5   : > { %v846_v30 = vmul.f32 %v1498_v27, %v845_v29 }
0x14e7   : > { %v847_v31 = vadd.f32 %v1498_v27, %v846_v30 }
0x14e9   : > { %v851_v34 = vsel %vm850_vm13, %v1498_v27, %v847_v31 }
0x14ea   : > { %v856_v2 = vsel %vm853_vm14, %v855_v1, %v851_v34 }
0x14eb   : > { %v869_v38 = vsub.f32 1.0, %v856_v2  ;;  %v875_v40 = vmul.f32 %v856_v2, %v807_v18 }
0x153f   : > { %v860_v35 = vpop.permute.xlu1 %859 }
0x1540   : > { %v862_v36 = vmul.f32 %v860_v35, %v856_v2 }
0x1542   : > { %864 = vrot.lane.b32.xlu2 %v862_v36, %s1547_s5 }
0x159c   : > { %v865_v3 = vpop.permute.xlu2 %864 }
0x159d   : > { %v867_v4 = vadd.f32 %v1399_v22, %v865_v3 }
0x159f   : > { %1499 = vtanh.f32 %v867_v4 }
0x15a5   : > { %v1500_v37 = vpop.eup %1499 }
0x15a6   : > { %871 = vrot.lane.b32.xlu0 %v1500_v37, %s1548_s6  ;;  %v1793_v37 = vld [vmem:[%s1836_s2] ss:$0 sm:$0xff] }
0x1618   : > { %v872_v39 = vpop.permute.xlu0 %871 }
0x1619   : > { %v874_v41 = vmul.f32 %v872_v39, %v869_v38  ;;  %v1411_v39 = vld [vmem:[%s1581_s18 + $0x18] sm:$0x3] }
0x161b   : > { %v876_v42 = vadd.f32 %v875_v40, %v874_v41 }
0x161d   : > { %878 = vrot.lane.b32.xlu1 %v876_v42, %s1548_s6 }
0x168f   : > { %v879_v43 = vpop.permute.xlu1 %878 }
0x1690   : > { %1401 = vst.msk [vmem:[%s1586_s21 + $0x12] sm:$0x3] %vm260_vm6, %v879_v43  ;;  %1402 = vmatmul.msk.f32.vlgmr.msra.gmra.mxu2 %vm189_vm1, %v879_v43 }
0x1713   : > { %v902_v44 = vpop.f32.mrf.mxu2 }
0x1714   : > { %v903_v45 = vadd.f32 %v1651_v6, %v902_v44 }
0x1716   : > { %928 = vrot.lane.b32.xlu2 %v903_v45, %s1547_s5  ;;  %v907_v47 = vadd.f32 %v1403_v46, %v903_v45 }
0x1718   : > { %v1404_v48 = vmul.f32 -1.442695, %v907_v47 }
0x171a   : > { %1501 = vpow2.f32 %v1404_v48 }
0x1720   : > { %v1502_v49 = vpop.eup %1501 }
0x1721   : > { %v911_v50 = vadd.f32 1.0, %v1502_v49 }
0x1723   : > { %1503 = vrcp.f32 %v911_v50  ;;  %v923_v56 = vand.u32 2147483648, %v911_v50  ;;  %vm917_vm0 = vweird.f32 %v911_v50  ;;  %v921_v57 = vand.u32 2147483647, %v911_v50 }
0x1725   : > { %v924_v59 = vor.u32 1.1754944e-38, %v923_v56  ;;  %vm922_vm3 = vcmp.eq.f32.partialorder %v921_v57, 8.507059e+37 }
0x1729   : > { %v1504_v51 = vpop.eup %1503 }
0x172a   : > { %v913_v52 = vmul.f32 %v1504_v51, %v911_v50  ;;  %vm918_vm15 = vweird.f32 %v1504_v51 }
0x172b   : > { %vm919_vm2 = vmor %vm917_vm0, %vm918_vm15 }
0x172c   : > { %v914_v53 = vsub.f32 1.0, %v913_v52 }
0x172e   : > { %v915_v54 = vmul.f32 %v1504_v51, %v914_v53 }
0x1730   : > { %v916_v55 = vadd.f32 %v1504_v51, %v915_v54 }
0x1732   : > { %v920_v58 = vsel %vm919_vm2, %v1504_v51, %v916_v55 }
0x1733   : > { %v925_v61 = vsel %vm922_vm3, %v924_v59, %v920_v58 }
0x1734   : > { %v938_v7 = vsub.f32 1.0, %v925_v61  ;;  %v944_v9 = vmul.f32 %v925_v61, %v876_v42 }
0x1770   : > { %v929_v60 = vpop.permute.xlu2 %928 }
0x1771   : > { %v931_v62 = vmul.f32 %v929_v60, %v925_v61 }
0x1773   : > { %933 = vrot.lane.b32.xlu0 %v931_v62, %s1547_s5 }
0x17e5   : > { %v934_v63 = vpop.permute.xlu0 %933 }
0x17e6   : > { %v936_v0 = vadd.f32 %v1403_v46, %v934_v63 }
0x17e8   : > { %1505 = vtanh.f32 %v936_v0 }
0x17ee   : > { %v1506_v5 = vpop.eup %1505 }
0x17ef   : > { %940 = vrot.lane.b32.xlu1 %v1506_v5, %s1548_s6 }
0x1861   : > { %v941_v8 = vpop.permute.xlu1 %940 }
0x1862   : > { %v943_v10 = vmul.f32 %v941_v8, %v938_v7  ;;  %v1415_v8 = vld [vmem:[%s1581_s18 + $0x1a] sm:$0x3] }
0x1864   : > { %v945_v11 = vadd.f32 %v944_v9, %v943_v10 }
0x1866   : > { %947 = vrot.lane.b32.xlu2 %v945_v11, %s1548_s6 }
0x18c0   : > { %v948_v12 = vpop.permute.xlu2 %947 }
0x18c1   : > { %1405 = vst.msk [vmem:[%s1586_s21 + $0x14] sm:$0x3] %vm260_vm6, %v948_v12  ;;  %1406 = vmatmul.msk.f32.vlgmr.msra.gmra.mxu3 %vm189_vm1, %v948_v12 }
0x1944   : > { %v971_v13 = vpop.f32.mrf.mxu3 }
0x1945   : > { %v972_v14 = vadd.f32 %v1651_v6, %v971_v13 }
0x1947   : > { %997 = vrot.lane.b32.xlu0 %v972_v14, %s1547_s5  ;;  %v976_v16 = vadd.f32 %v1407_v15, %v972_v14 }
0x1949   : > { %v1408_v17 = vmul.f32 -1.442695, %v976_v16 }
0x194b   : > { %1507 = vpow2.f32 %v1408_v17 }
0x1951   : > { %v1508_v18 = vpop.eup %1507 }
0x1952   : > { %v980_v19 = vadd.f32 1.0, %v1508_v18 }
0x1954   : > { %1509 = vrcp.f32 %v980_v19  ;;  %v992_v25 = vand.u32 2147483648, %v980_v19  ;;  %vm986_vm5 = vweird.f32 %v980_v19  ;;  %v990_v26 = vand.u32 2147483647, %v980_v19 }
0x1956   : > { %v993_v27 = vor.u32 1.1754944e-38, %v992_v25  ;;  %vm991_vm8 = vcmp.eq.f32.partialorder %v990_v26, 8.507059e+37 }
0x195a   : > { %v1510_v20 = vpop.eup %1509 }
0x195b   : > { %v982_v21 = vmul.f32 %v1510_v20, %v980_v19  ;;  %vm987_vm4 = vweird.f32 %v1510_v20 }
0x195c   : > { %vm988_vm7 = vmor %vm986_vm5, %vm987_vm4 }
0x195d   : > { %v983_v22 = vsub.f32 1.0, %v982_v21 }
0x195f   : > { %v984_v23 = vmul.f32 %v1510_v20, %v983_v22 }
0x1961   : > { %v985_v24 = vadd.f32 %v1510_v20, %v984_v23 }
0x1963   : > { %v989_v6 = vsel %vm988_vm7, %v1510_v20, %v985_v24 }
0x1964   : > { %v994_v29 = vsel %vm991_vm8, %v993_v27, %v989_v6 }
0x1965   : > { %v1007_v34 = vsub.f32 1.0, %v994_v29  ;;  %v1013_v35 = vmul.f32 %v994_v29, %v945_v11 }
0x19b9   : > { %v998_v28 = vpop.permute.xlu0 %997 }
0x19ba   : > { %v1000_v30 = vmul.f32 %v998_v28, %v994_v29 }
0x19bc   : > { %1002 = vrot.lane.b32.xlu1 %v1000_v30, %s1547_s5 }
0x1a2e   : > { %v1003_v31 = vpop.permute.xlu1 %1002 }
0x1a2f   : > { %v1005_v32 = vadd.f32 %v1407_v15, %v1003_v31 }
0x1a31   : > { %1511 = vtanh.f32 %v1005_v32 }
0x1a37   : > { %v1512_v33 = vpop.eup %1511 }
0x1a38   : > { %1009 = vrot.lane.b32.xlu2 %v1512_v33, %s1548_s6 }
0x1a92   : > { %v1010_v1 = vpop.permute.xlu2 %1009 }
0x1a93   : > { %v1012_v2 = vmul.f32 %v1010_v1, %v1007_v34  ;;  %v1419_v1 = vld [vmem:[%s1581_s18 + $0x1c] sm:$0x3] }
0x1a95   : > { %v1014_v36 = vadd.f32 %v1013_v35, %v1012_v2 }
0x1a97   : > { %1016 = vrot.lane.b32.xlu0 %v1014_v36, %s1548_s6 }
0x1b09   : > { %v1017_v3 = vpop.permute.xlu0 %1016 }
0x1b0a   : > { %1409 = vst.msk [vmem:[%s1586_s21 + $0x16] sm:$0x3] %vm260_vm6, %v1017_v3  ;;  %1410 = vmatmul.msk.f32.vlgmr.msrb.gmra.mxu0 %vm189_vm1, %v1017_v3 }
0x1b87   : > { %v1040_v4 = vpop.f32.mrf.mxu0 }
0x1b88   : > { %v1041_v38 = vadd.f32 %v1793_v37, %v1040_v4 }
0x1b8a   : > { %1066 = vrot.lane.b32.xlu1 %v1041_v38, %s1547_s5  ;;  %v1045_v40 = vadd.f32 %v1411_v39, %v1041_v38 }
0x1b8c   : > { %v1412_v41 = vmul.f32 -1.442695, %v1045_v40 }
0x1b8e   : > { %1513 = vpow2.f32 %v1412_v41 }
0x1b94   : > { %v1514_v42 = vpop.eup %1513 }
0x1b95   : > { %v1049_v43 = vadd.f32 1.0, %v1514_v42 }
0x1b97   : > { %1515 = vrcp.f32 %v1049_v43  ;;  %v1061_v49 = vand.u32 2147483648, %v1049_v43  ;;  %vm1055_vm10 = vweird.f32 %v1049_v43  ;;  %v1059_v50 = vand.u32 2147483647, %v1049_v43 }
0x1b99   : > { %v1062_v52 = vor.u32 1.1754944e-38, %v1061_v49  ;;  %vm1060_vm12 = vcmp.eq.f32.partialorder %v1059_v50, 8.507059e+37 }
0x1b9d   : > { %v1516_v44 = vpop.eup %1515 }
0x1b9e   : > { %v1051_v45 = vmul.f32 %v1516_v44, %v1049_v43  ;;  %vm1056_vm9 = vweird.f32 %v1516_v44 }
0x1b9f   : > { %vm1057_vm11 = vmor %vm1055_vm10, %vm1056_vm9 }
0x1ba0   : > { %v1052_v46 = vsub.f32 1.0, %v1051_v45 }
0x1ba2   : > { %v1053_v47 = vmul.f32 %v1516_v44, %v1052_v46 }
0x1ba4   : > { %v1054_v48 = vadd.f32 %v1516_v44, %v1053_v47 }
0x1ba6   : > { %v1058_v51 = vsel %vm1057_vm11, %v1516_v44, %v1054_v48 }
0x1ba7   : > { %v1063_v54 = vsel %vm1060_vm12, %v1062_v52, %v1058_v51 }
0x1ba8   : > { %v1076_v59 = vsub.f32 1.0, %v1063_v54  ;;  %v1082_v61 = vmul.f32 %v1063_v54, %v1014_v36 }
0x1bfc   : > { %v1067_v53 = vpop.permute.xlu1 %1066 }
0x1bfd   : > { %v1069_v55 = vmul.f32 %v1067_v53, %v1063_v54 }
0x1bff   : > { %1071 = vrot.lane.b32.xlu2 %v1069_v55, %s1547_s5 }
0x1c59   : > { %v1072_v56 = vpop.permute.xlu2 %1071 }
0x1c5a   : > { %v1074_v57 = vadd.f32 %v1411_v39, %v1072_v56 }
0x1c5c   : > { %1517 = vtanh.f32 %v1074_v57 }
0x1c62   : > { %v1518_v58 = vpop.eup %1517 }
0x1c63   : > { %1078 = vrot.lane.b32.xlu0 %v1518_v58, %s1548_s6 }
0x1cd5   : > { %v1079_v60 = vpop.permute.xlu0 %1078 }
0x1cd6   : > { %v1081_v62 = vmul.f32 %v1079_v60, %v1076_v59  ;;  %v1423_v60 = vld [vmem:[%s1581_s18 + $0x1e] sm:$0x3] }
0x1cd8   : > { %v1083_v63 = vadd.f32 %v1082_v61, %v1081_v62 }
0x1cda   : > { %1085 = vrot.lane.b32.xlu1 %v1083_v63, %s1548_s6 }
0x1d4c   : > { %v1086_v0 = vpop.permute.xlu1 %1085 }
0x1d4d   : > { %1413 = vst.msk [vmem:[%s1586_s21 + $0x18] sm:$0x3] %vm260_vm6, %v1086_v0  ;;  %1414 = vmatmul.msk.f32.vlgmr.msrb.gmra.mxu1 %vm189_vm1, %v1086_v0 }
0x1dca   : > { %v1109_v5 = vpop.f32.mrf.mxu1 }
0x1dcb   : > { %v1110_v7 = vadd.f32 %v1793_v37, %v1109_v5 }
0x1dcd   : > { %1135 = vrot.lane.b32.xlu2 %v1110_v7, %s1547_s5  ;;  %v1114_v9 = vadd.f32 %v1415_v8, %v1110_v7 }
0x1dcf   : > { %v1416_v10 = vmul.f32 -1.442695, %v1114_v9 }
0x1dd1   : > { %1519 = vpow2.f32 %v1416_v10 }
0x1dd7   : > { %v1520_v11 = vpop.eup %1519 }
0x1dd8   : > { %v1118_v12 = vadd.f32 1.0, %v1520_v11 }
0x1dda   : > { %1521 = vrcp.f32 %v1118_v12  ;;  %v1130_v18 = vand.u32 2147483648, %v1118_v12  ;;  %vm1124_vm14 = vweird.f32 %v1118_v12  ;;  %v1128_v19 = vand.u32 2147483647, %v1118_v12 }
0x1ddc   : > { %v1131_v21 = vor.u32 1.1754944e-38, %v1130_v18  ;;  %vm1129_vm0 = vcmp.eq.f32.partialorder %v1128_v19, 8.507059e+37 }
0x1de0   : > { %v1522_v13 = vpop.eup %1521 }
0x1de1   : > { %v1120_v14 = vmul.f32 %v1522_v13, %v1118_v12  ;;  %vm1125_vm13 = vweird.f32 %v1522_v13 }
0x1de2   : > { %vm1126_vm15 = vmor %vm1124_vm14, %vm1125_vm13 }
0x1de3   : > { %v1121_v15 = vsub.f32 1.0, %v1120_v14 }
0x1de5   : > { %v1122_v16 = vmul.f32 %v1522_v13, %v1121_v15 }
0x1de7   : > { %v1123_v17 = vadd.f32 %v1522_v13, %v1122_v16 }
0x1de9   : > { %v1127_v20 = vsel %vm1126_vm15, %v1522_v13, %v1123_v17 }
0x1dea   : > { %v1132_v23 = vsel %vm1129_vm0, %v1131_v21, %v1127_v20 }
0x1deb   : > { %v1145_v27 = vsub.f32 1.0, %v1132_v23  ;;  %v1151_v29 = vmul.f32 %v1132_v23, %v1083_v63 }
0x1e27   : > { %v1136_v22 = vpop.permute.xlu2 %1135 }
0x1e28   : > { %v1138_v24 = vmul.f32 %v1136_v22, %v1132_v23 }
0x1e2a   : > { %1140 = vrot.lane.b32.xlu0 %v1138_v24, %s1547_s5 }
0x1e9c   : > { %v1141_v25 = vpop.permute.xlu0 %1140 }
0x1e9d   : > { %v1143_v26 = vadd.f32 %v1415_v8, %v1141_v25 }
0x1e9f   : > { %1523 = vtanh.f32 %v1143_v26 }
0x1ea5   : > { %v1524_v6 = vpop.eup %1523 }
0x1ea6   : > { %1147 = vrot.lane.b32.xlu1 %v1524_v6, %s1548_s6 }
0x1f18   : > { %v1148_v28 = vpop.permute.xlu1 %1147 }
0x1f19   : > { %v1150_v30 = vmul.f32 %v1148_v28, %v1145_v27 }
0x1f1b   : > { %v1152_v31 = vadd.f32 %v1151_v29, %v1150_v30 }
0x1f1d   : > { %1154 = vrot.lane.b32.xlu2 %v1152_v31, %s1548_s6 }
0x1f77   : > { %v1155_v32 = vpop.permute.xlu2 %1154 }
0x1f78   : > { %1417 = vst.msk [vmem:[%s1586_s21 + $0x1a] sm:$0x3] %vm260_vm6, %v1155_v32  ;;  %1418 = vmatmul.msk.f32.vlgmr.msrb.gmra.mxu2 %vm189_vm1, %v1155_v32 }
0x1ffb   : > { %v1178_v33 = vpop.f32.mrf.mxu2 }
0x1ffc   : > { %v1179_v34 = vadd.f32 %v1793_v37, %v1178_v33 }
0x1ffe   : > { %1204 = vrot.lane.b32.xlu0 %v1179_v34, %s1547_s5  ;;  %v1183_v35 = vadd.f32 %v1419_v1, %v1179_v34 }
0x2000   : > { %v1420_v2 = vmul.f32 -1.442695, %v1183_v35 }
0x2002   : > { %1525 = vpow2.f32 %v1420_v2 }
0x2008   : > { %v1526_v36 = vpop.eup %1525 }
0x2009   : > { %v1187_v3 = vadd.f32 1.0, %v1526_v36 }
0x200b   : > { %1527 = vrcp.f32 %v1187_v3  ;;  %v1199_v42 = vand.u32 2147483648, %v1187_v3  ;;  %vm1193_vm3 = vweird.f32 %v1187_v3  ;;  %v1197_v43 = vand.u32 2147483647, %v1187_v3 }
0x200d   : > { %v1200_v45 = vor.u32 1.1754944e-38, %v1199_v42  ;;  %vm1198_vm5 = vcmp.eq.f32.partialorder %v1197_v43, 8.507059e+37 }
0x2011   : > { %v1528_v4 = vpop.eup %1527 }
0x2012   : > { %v1189_v38 = vmul.f32 %v1528_v4, %v1187_v3  ;;  %vm1194_vm2 = vweird.f32 %v1528_v4 }
0x2013   : > { %vm1195_vm4 = vmor %vm1193_vm3, %vm1194_vm2 }
0x2014   : > { %v1190_v39 = vsub.f32 1.0, %v1189_v38 }
0x2016   : > { %v1191_v40 = vmul.f32 %v1528_v4, %v1190_v39 }
0x2018   : > { %v1192_v41 = vadd.f32 %v1528_v4, %v1191_v40 }
0x201a   : > { %v1196_v44 = vsel %vm1195_vm4, %v1528_v4, %v1192_v41 }
0x201b   : > { %v1201_v47 = vsel %vm1198_vm5, %v1200_v45, %v1196_v44 }
0x201c   : > { %v1214_v52 = vsub.f32 1.0, %v1201_v47  ;;  %v1220_v54 = vmul.f32 %v1201_v47, %v1152_v31 }
0x2070   : > { %v1205_v46 = vpop.permute.xlu0 %1204 }
0x2071   : > { %v1207_v48 = vmul.f32 %v1205_v46, %v1201_v47 }
0x2073   : > { %1209 = vrot.lane.b32.xlu1 %v1207_v48, %s1547_s5 }
0x20e5   : > { %v1210_v49 = vpop.permute.xlu1 %1209 }
0x20e6   : > { %v1212_v50 = vadd.f32 %v1419_v1, %v1210_v49 }
0x20e8   : > { %1529 = vtanh.f32 %v1212_v50 }
0x20ee   : > { %v1530_v51 = vpop.eup %1529 }
0x20ef   : > { %1216 = vrot.lane.b32.xlu2 %v1530_v51, %s1548_s6 }
0x2149   : > { %v1217_v53 = vpop.permute.xlu2 %1216 }
0x214a   : > { %v1219_v55 = vmul.f32 %v1217_v53, %v1214_v52 }
0x214c   : > { %v1221_v56 = vadd.f32 %v1220_v54, %v1219_v55 }
0x214e   : > { %1223 = vrot.lane.b32.xlu0 %v1221_v56, %s1548_s6 }
0x21c0   : > { %v1224_v57 = vpop.permute.xlu0 %1223 }
0x21c1   : > { %1421 = vst.msk [vmem:[%s1586_s21 + $0x1c] sm:$0x3] %vm260_vm6, %v1224_v57  ;;  %1422 = vmatmul.msk.f32.vlgmr.msrb.gmra.mxu3 %vm189_vm1, %v1224_v57 }
0x2244   : > { %v1247_v58 = vpop.f32.mrf.mxu3 }
0x2245   : > { %v1248_v59 = vadd.f32 %v1793_v37, %v1247_v58 }
0x2247   : > { %1273 = vrot.lane.b32.xlu1 %v1248_v59, %s1547_s5  ;;  %v1252_v61 = vadd.f32 %v1423_v60, %v1248_v59 }
0x2249   : > { %v1424_v62 = vmul.f32 -1.442695, %v1252_v61 }
0x224b   : > { %1531 = vpow2.f32 %v1424_v62 }
0x2251   : > { %v1532_v63 = vpop.eup %1531 }
0x2252   : > { %v1256_v0 = vadd.f32 1.0, %v1532_v63 }
0x2254   : > { %1533 = vrcp.f32 %v1256_v0  ;;  %v1268_v11 = vand.u32 2147483648, %v1256_v0  ;;  %vm1262_vm1 = vweird.f32 %v1256_v0  ;;  %v1266_v12 = vand.u32 2147483647, %v1256_v0 }
0x2256   : > { %v1269_v13 = vor.u32 1.1754944e-38, %v1268_v11  ;;  %vm1267_vm9 = vcmp.eq.f32.partialorder %v1266_v12, 8.507059e+37 }
0x225a   : > { %v1534_v5 = vpop.eup %1533 }
0x225b   : > { %v1258_v7 = vmul.f32 %v1534_v5, %v1256_v0  ;;  %vm1263_vm7 = vweird.f32 %v1534_v5 }
0x225c   : > { %vm1264_vm8 = vmor %vm1262_vm1, %vm1263_vm7 }
0x225d   : > { %v1259_v8 = vsub.f32 1.0, %v1258_v7 }
0x225f   : > { %v1260_v9 = vmul.f32 %v1534_v5, %v1259_v8 }
0x2261   : > { %v1261_v10 = vadd.f32 %v1534_v5, %v1260_v9 }
0x2263   : > { %v1265_v37 = vsel %vm1264_vm8, %v1534_v5, %v1261_v10 }
0x2264   : > { %v1270_v15 = vsel %vm1267_vm9, %v1269_v13, %v1265_v37 }
0x2265   : > { %v1283_v20 = vsub.f32 1.0, %v1270_v15  ;;  %v1289_v22 = vmul.f32 %v1270_v15, %v1221_v56 }
0x22b9   : > { %v1274_v14 = vpop.permute.xlu1 %1273 }
0x22ba   : > { %v1276_v16 = vmul.f32 %v1274_v14, %v1270_v15 }
0x22bc   : > { %1278 = vrot.lane.b32.xlu2 %v1276_v16, %s1547_s5 }
0x2316   : > { %v1279_v17 = vpop.permute.xlu2 %1278 }
0x2317   : > { %v1281_v18 = vadd.f32 %v1423_v60, %v1279_v17 }
0x2319   : > { %1535 = vtanh.f32 %v1281_v18 }
0x231f   : > { %v1536_v19 = vpop.eup %1535 }
0x2320   : > { %1285 = vrot.lane.b32.xlu0 %v1536_v19, %s1548_s6 }
0x2392   : > { %v1286_v21 = vpop.permute.xlu0 %1285 }
0x2393   : > { %v1288_v23 = vmul.f32 %v1286_v21, %v1283_v20 }
0x2395   : > { %v1290_v24 = vadd.f32 %v1289_v22, %v1288_v23 }
0x2397   : > { %1292 = vrot.lane.b32.xlu1 %v1290_v24, %s1548_s6 }
0x2409   : > { %v1293_v25 = vpop.permute.xlu1 %1292 }
0x240a   : > { %1425 = vst.msk [vmem:[%s1586_s21 + $0x1e] sm:$0x3] %vm260_vm6, %v1293_v25 }
0x240b   : > { %1297 = vst.msk [vmem:[#allocation2] sm:$0x3] %vm260_vm6, %v1293_v25 }
0x240c PF: > { %s13_s12 = sadd.s32 1, %s1544_s12  }
0x240d   : > { %p10_p5 = scmp.ge.s32.totalorder %s13_s12, 4  }
0x240f   :  { %12 = sbr.rel (!%p10_p5) target bundleno = 1 (0x1), region = 96 }

</bundles_post_ra>
